<compile_context>
chip_gen: v7x
topology: tpu7x:2x2x1
jax: 0.10.0
libtpu: 0.0.40
codegen_flags: <defaults>
</compile_context>

<pallas_src>
import functools

import jax
import jax.numpy as jnp
from jax.experimental import pallas as pl
from jax.experimental.pallas import tpu as pltpu

# ----------------------------- model config (small) -------------------------------
BATCH = 2
IN_CH = 3
IMG = 16
PATCH = 4
N_PATCHES = (IMG // PATCH) * (IMG // PATCH)       # 16
SEQ = N_PATCHES + 1                               # 17 (CLS + patches)
S_PAD = ((SEQ + 7) // 8) * 8                      # 24 -> sublane multiple of 8
PATCH_DIM = IN_CH * PATCH * PATCH                 # 48
D = 32                                            # embed_dim
HEADS = 4
DH = D // HEADS                                   # 8
MLP = 4 * D                                       # 128
DEPTH = 2
NUM_CLASSES = 10
NC_PAD = 128                                      # lane-dense padded head output
LN_EPS = 1e-6                                     # MAE uses LayerNorm(eps=1e-6)
SCALE = float(DH) ** -0.5

assert NC_PAD == MLP, "head_w is stacked into the MLP weight slab (needs NC_PAD == MLP)"

_NT_DIMS = (((1,), (1,)), ((), ()))               # A @ B^T without materializing B^T


# --------------------------------- in-kernel helpers -------------------------------
def _ln_rows(x, g, b, eps=LN_EPS):
    """Row-wise LayerNorm over the feature axis (biased variance, as torch)."""
    mu = jnp.mean(x, axis=-1, keepdims=True)
    xc = x - mu
    var = jnp.mean(xc * xc, axis=-1, keepdims=True)
    return xc * jax.lax.rsqrt(var + eps) * g + b


def _gelu(x, exact):
    if exact:
        return jax.nn.gelu(x, approximate=False)      # exact erf GELU (nn.GELU default)
    # TODO(synk): erf not lowerable by some Pallas/Mosaic builds; tanh-approx fallback.
    c = 0.7978845608028654                            # sqrt(2/pi)
    return 0.5 * x * (1.0 + jnp.tanh(c * (x + 0.044715 * x * x * x)))


def _exact_gelu_supported():
    """Probe whether the erf-based (exact) GELU lowers inside a Pallas TPU kernel."""
    def k(x_ref, o_ref):
        o_ref[...] = jax.nn.gelu(x_ref[...], approximate=False)
    try:
        fn = pl.pallas_call(k, out_shape=jax.ShapeDtypeStruct((8, 128), jnp.float32))
        jax.jit(fn).lower(jnp.zeros((8, 128), jnp.float32)).compile()
        return True
    except Exception:  # any lowering/compile failure -> use tanh fallback
        return False


# ----------------------------------- fused kernel ----------------------------------
def _vit_kernel(patches_ref, mask_ref, embed_ref, attn_w_ref, qkv_b_ref,
                mlp_w_ref, vecs_ref, wvecs_ref, out_ref, *, b_tile, exact_gelu):
    f32, bf16 = jnp.float32, jnp.bfloat16
    st = b_tile * S_PAD

    # --- patch embedding: one matmul over the fused batch slab.  CLS token,
    #     pos-embed and conv bias are pre-folded (and batch-tiled) into the
    #     additive rows embed_ref[PATCH_DIM:].
    pw = embed_ref[0:PATCH_DIM, :].astype(bf16)                    # [PATCH_DIM, D]
    h = jnp.dot(patches_ref[...], pw, preferred_element_type=f32)
    h = h + embed_ref[PATCH_DIM:PATCH_DIM + st, :]                 # [st, D] f32

    mask = mask_ref[...]                 # additive: 0 same-image real key, -1e30 else

    for l in range(DEPTH):               # small static unroll over transformer blocks
        # ---------------- attention sub-block (pre-LN), per-head weights -----------
        y = _ln_rows(h, vecs_ref[6 * l + 0], vecs_ref[6 * l + 1])
        yb = y.astype(bf16)
        attn = None
        for hd in range(HEADS):
            def aw(which, _l=l, _h=hd):          # static slab indices -> free views
                return attn_w_ref[(_l * 4 + which) * HEADS + _h]
            def ab(which, _l=l, _h=hd):
                return qkv_b_ref[(_l * 3 + which) * HEADS + _h]
            q = jnp.dot(yb, aw(0), preferred_element_type=f32) + ab(0)   # scale folded
            k = jnp.dot(yb, aw(1), preferred_element_type=f32) + ab(1)
            v = jnp.dot(yb, aw(2), preferred_element_type=f32) + ab(2)
            s = jax.lax.dot_general(q.astype(bf16), k.astype(bf16), _NT_DIMS,
                                    preferred_element_type=f32) + mask
            m = jnp.max(s, axis=-1, keepdims=True)
            prob = jnp.exp(s - m)
            prob = prob * pl.reciprocal(jnp.sum(prob, axis=-1, keepdims=True),
                                        approx=True)
            o = jnp.dot(prob.astype(bf16), v.astype(bf16),
                        preferred_element_type=f32)                      # [st, DH]
            c = jax.lax.dot_general(o.astype(bf16), aw(3), _NT_DIMS,     # per-head proj
                                    preferred_element_type=f32)          # [st, D]
            attn = c if attn is None else attn + c
        h = h + attn + vecs_ref[6 * l + 4]                               # + proj bias

        # ---------------- MLP sub-block (pre-LN), GELU fused in --------------------
        y = _ln_rows(h, vecs_ref[6 * l + 2], vecs_ref[6 * l + 3])
        y = jnp.dot(y.astype(bf16), mlp_w_ref[2 * l + 0],
                    preferred_element_type=f32) + wvecs_ref[l]           # fc1 + b
        y = _gelu(y, exact_gelu)
        y = jax.lax.dot_general(y.astype(bf16), mlp_w_ref[2 * l + 1], _NT_DIMS,
                                preferred_element_type=f32) + vecs_ref[6 * l + 5]
        h = h + y

    # ---- gather CLS row of each image in the tile, final LN, linear head ----------
    cls_rows = [h[b * S_PAD:b * S_PAD + 1, :] for b in range(b_tile)]
    cls = cls_rows[0] if b_tile == 1 else jnp.concatenate(cls_rows, axis=0)
    cls = _ln_rows(cls, vecs_ref[6 * DEPTH + 0], vecs_ref[6 * DEPTH + 1])
    logits = jnp.dot(cls.astype(bf16), mlp_w_ref[2 * DEPTH],
                     preferred_element_type=f32) + wvecs_ref[DEPTH]      # [b_tile, 128]
    out_ref[0] = logits.astype(out_ref.dtype)


# -------------------------------------- wrapper -------------------------------------
def make_forward(b_tile=BATCH, exact_gelu=True):
    kernel = functools.partial(_vit_kernel, b_tile=b_tile, exact_gelu=exact_gelu)
    st = b_tile * S_PAD

    def _full_spec(arr):
        nd = arr.ndim
        return pl.BlockSpec(arr.shape, lambda i, _z=(0,) * nd: _z)

    def forward(pp, x):
        B = x.shape[0]
        assert B % b_tile == 0, "batch must be divisible by the batch tile"
        n_tiles = B // b_tile

        # im2col for Conv2d(kernel=stride=PATCH), patches flattened in (C, ph, pw)
        # order (matching conv weight.reshape(D, C*p*p)); row 0 of each image slab
        # (CLS) and rows >= SEQ stay zero so one matmul produces the token slab.
        p = x.reshape(B, IN_CH, IMG // PATCH, PATCH, IMG // PATCH, PATCH)
        p = p.transpose(0, 2, 4, 1, 3, 5).reshape(B, N_PATCHES, PATCH_DIM)
        patches = jnp.zeros((B, S_PAD, PATCH_DIM), jnp.float32)
        patches = patches.at[:, 1:1 + N_PATCHES].set(p)
        patches = patches.reshape(B * S_PAD, PATCH_DIM).astype(jnp.bfloat16)

        weights = [pp["mask"], pp["embed"], pp["attn_w"], pp["qkv_b"],
                   pp["mlp_head_w"], pp["vecs"], pp["wide_vecs"]]
        in_specs = ([pl.BlockSpec((st, PATCH_DIM), lambda i: (i, 0))]
                    + [_full_spec(w) for w in weights])

        logits = pl.pallas_call(
            kernel,
            out_shape=jax.ShapeDtypeStruct((n_tiles, b_tile, NC_PAD), jnp.float32),
            grid=(n_tiles,),
            in_specs=in_specs,
            out_specs=pl.BlockSpec((1, b_tile, NC_PAD), lambda i: (i, 0, 0)),
            compiler_params=pltpu.CompilerParams(
                dimension_semantics=("parallel",)),
        )(patches, *weights)
        return logits.reshape(B, NC_PAD)[:, :NUM_CLASSES]

    return jax.jit(forward)


# ------------------------------- deterministic params -------------------------------
def init_params(key):
    keys = list(jax.random.split(key, 64))
    it = iter(keys)

    def nrm(shape, scale=0.02):
        return (scale * jax.random.normal(next(it), shape)).astype(jnp.float32)

    params = {
        "patch_w": nrm((PATCH_DIM, D)),     # conv weight [D,C,p,p] -> [C*p*p, D]
        "patch_b": jnp.zeros((D,), jnp.float32),
        "cls_token": nrm((1, 1, D)),
        "pos_embed": nrm((1, SEQ, D)),
        "blocks": [],
        "norm_g": jnp.ones((D,), jnp.float32),
        "norm_b": jnp.zeros((D,), jnp.float32),
        "head_w": nrm((D, NUM_CLASSES)),
        "head_b": jnp.zeros((NUM_CLASSES,), jnp.float32),
    }
    for _ in range(DEPTH):
        params["blocks"].append({
            "n1_g": jnp.ones((D,), jnp.float32), "n1_b": jnp.zeros((D,), jnp.float32),
            "qkv_w": nrm((D, 3 * D)), "qkv_b": jnp.zeros((3 * D,), jnp.float32),
            "proj_w": nrm((D, D)), "proj_b": jnp.zeros((D,), jnp.float32),
            "n2_g": jnp.ones((D,), jnp.float32), "n2_b": jnp.zeros((D,), jnp.float32),
            "fc1_w": nrm((D, MLP)), "fc1_b": jnp.zeros((MLP,), jnp.float32),
            "fc2_w": nrm((MLP, D)), "fc2_b": jnp.zeros((D,), jnp.float32),
        })
    return params


def pack_params(params, b_tile=BATCH):
    """One-time repack into a handful of VMEM slabs: per-head-split attention
    weights (scale folded into Wq/bq, proj transposed), bf16 matmul operands,
    folded cls/pos/conv-bias `embed` rows, additive block-diag attention mask."""
    blocks = params["blocks"]

    # ---- attention weights / biases, pre-split per head --------------------------
    attn_mats, qkv_bias = [], []
    for blk in blocks:
        qkv_w, qkv_bv, proj_w = blk["qkv_w"], blk["qkv_b"], blk["proj_w"]
        per_which = {0: [], 1: [], 2: [], 3: []}
        for which in range(3):                              # Q, K, V
            w = qkv_w[:, which * D:(which + 1) * D]
            b = qkv_bv[which * D:(which + 1) * D]
            if which == 0:                                  # fold attention scale
                w = w * SCALE
                b = b * SCALE
            for hd in range(HEADS):
                per_which[which].append(w[:, hd * DH:(hd + 1) * DH])
                qkv_bias.append(b[hd * DH:(hd + 1) * DH][None, :])
        for hd in range(HEADS):                             # per-head proj, transposed
            per_which[3].append(proj_w[hd * DH:(hd + 1) * DH, :].T)
        for which in range(4):
            attn_mats.extend(per_which[which])
    attn_w = jnp.stack(attn_mats).astype(jnp.bfloat16)      # [DEPTH*4*HEADS, D, DH]
    qkv_b = jnp.stack(qkv_bias).astype(jnp.float32)         # [DEPTH*3*HEADS, 1, DH]

    # ---- MLP + head weights (bf16), fc2/head laid out for A @ B^T dots -----------
    mats = []
    for blk in blocks:
        mats.append(blk["fc1_w"])                           # [D, MLP]
        mats.append(blk["fc2_w"].T)                         # [D, MLP]
    head_w = jnp.zeros((D, NC_PAD), jnp.float32).at[:, :NUM_CLASSES].set(params["head_w"])
    mats.append(head_w)
    mlp_head_w = jnp.stack(mats).astype(jnp.bfloat16)       # [2*DEPTH+1, D, MLP]

    # ---- narrow (width-D) f32 vectors: LN gammas/betas, proj/fc2 bias, final LN --
    rows = []
    for blk in blocks:
        rows += [blk["n1_g"], blk["n1_b"], blk["n2_g"], blk["n2_b"],
                 blk["proj_b"], blk["fc2_b"]]
    rows += [params["norm_g"], params["norm_b"]]
    vecs = jnp.stack([r[None, :] for r in rows]).astype(jnp.float32)   # [6*DEPTH+2,1,D]

    # ---- wide (width-128) f32 vectors: fc1 biases + padded head bias -------------
    wrows = [blk["fc1_b"][None, :] for blk in blocks]
    head_b = jnp.zeros((1, NC_PAD), jnp.float32).at[0, :NUM_CLASSES].set(params["head_b"])
    wrows.append(head_b)
    wide_vecs = jnp.stack(wrows).astype(jnp.float32)                   # [DEPTH+1,1,MLP]

    # ---- patch-embed weight + folded additive base (cls+pos+conv bias), tiled ----
    base = jnp.zeros((S_PAD, D), jnp.float32)
    base = base.at[0:1].set(params["cls_token"][0] + params["pos_embed"][0, 0:1])
    base = base.at[1:SEQ].set(params["pos_embed"][0, 1:SEQ] + params["patch_b"][None, :])
    embed = jnp.concatenate([params["patch_w"].astype(jnp.float32),
                             jnp.tile(base, (b_tile, 1))], axis=0)     # [48+st, D]

    # ---- additive attention mask: block-diagonal over images + key padding -------
    st = b_tile * S_PAD
    idx = jnp.arange(st)
    same_img = (idx[:, None] // S_PAD) == (idx[None, :] // S_PAD)
    key_real = (idx[None, :] % S_PAD) < SEQ
    mask = jnp.where(same_img & key_real, 0.0, -1e30).astype(jnp.float32)

    return {"mask": mask, "embed": embed, "attn_w": attn_w, "qkv_b": qkv_b,
            "mlp_head_w": mlp_head_w, "vecs": vecs, "wide_vecs": wide_vecs}


if __name__ == "__main__":
    key = jax.random.PRNGKey(0)
    pkey, xkey = jax.random.split(key)
    params = init_params(pkey)

    # B_TILE = BATCH -> whole batch in one grid step (best on single-TC v5e/v6e).
    # On v7x, set b_tile = BATCH // 2 to keep both TensorCores busy.
    B_TILE = BATCH
    packed = pack_params(params, b_tile=B_TILE)
    x = jax.random.normal(xkey, (BATCH, IN_CH, IMG, IMG), dtype=jnp.float32)

    forward = make_forward(b_tile=B_TILE, exact_gelu=_exact_gelu_supported())
    logits = forward(packed, x)
    jax.block_until_ready(logits)
    assert logits.shape == (BATCH, NUM_CLASSES), logits.shape
    assert logits.dtype == jnp.float32
    print("KERNEL_OK")
</pallas_src>

<mosaic_0001>
module attributes {stable_mosaic.version = 11 : i64} {
  func.func @_vit_kernel(%arg0: i32, %arg1: memref<48x48xbf16, #tpu.memory_space<vmem>>, %arg2: memref<48x48xf32, #tpu.memory_space<vmem>>, %arg3: memref<96x32xf32, #tpu.memory_space<vmem>>, %arg4: memref<32x32x8xbf16, #tpu.memory_space<vmem>>, %arg5: memref<24x1x8xf32, #tpu.memory_space<vmem>>, %arg6: memref<5x32x128xbf16, #tpu.memory_space<vmem>>, %arg7: memref<14x1x32xf32, #tpu.memory_space<vmem>>, %arg8: memref<3x1x128xf32, #tpu.memory_space<vmem>>, %arg9: memref<1x2x128xf32, #tpu.memory_space<vmem>>) attributes {dimension_semantics = [#tpu.dimension_semantics<parallel>], iteration_bounds = array<i64: 1>, scalar_prefetch = 0 : i64, scratch_operands = 0 : i64, tpu.core_type = #tpu.core_type<tc>, window_params = [{transform_indices = @transform_0, window_bounds = array<i64: 48, 48>}, {pipeline_mode = #tpu.pipeline_mode<synchronous>, transform_indices = @transform_1, window_bounds = array<i64: 48, 48>}, {pipeline_mode = #tpu.pipeline_mode<synchronous>, transform_indices = @transform_2, window_bounds = array<i64: 96, 32>}, {pipeline_mode = #tpu.pipeline_mode<synchronous>, transform_indices = @transform_3, window_bounds = array<i64: 32, 32, 8>}, {pipeline_mode = #tpu.pipeline_mode<synchronous>, transform_indices = @transform_4, window_bounds = array<i64: 24, 1, 8>}, {pipeline_mode = #tpu.pipeline_mode<synchronous>, transform_indices = @transform_5, window_bounds = array<i64: 5, 32, 128>}, {pipeline_mode = #tpu.pipeline_mode<synchronous>, transform_indices = @transform_6, window_bounds = array<i64: 14, 1, 32>}, {pipeline_mode = #tpu.pipeline_mode<synchronous>, transform_indices = @transform_7, window_bounds = array<i64: 3, 1, 128>}, {transform_indices = @transform_8, window_bounds = array<i64: 1, 2, 128>}]} {
    %c0 = arith.constant 0 : index
    %c0_0 = arith.constant 0 : index
    %0 = vector.load %arg3[%c0, %c0_0] : memref<96x32xf32, #tpu.memory_space<vmem>>, vector<48x32xf32>
    %1 = arith.truncf %0 : vector<48x32xf32> to vector<48x32xbf16>
    %c0_1 = arith.constant 0 : index
    %c0_2 = arith.constant 0 : index
    %2 = vector.load %arg1[%c0_1, %c0_2] : memref<48x48xbf16, #tpu.memory_space<vmem>>, vector<48x48xbf16>
    %cst = arith.constant dense<0.000000e+00> : vector<48x32xf32>
    %3 = tpu.matmul %2, %1, %cst {dimension_numbers = #tpu.dot_dimension_numbers<[1], [0], [0], [1], [0, 0, 1, 1], [], []>} : vector<48x48xbf16>, vector<48x32xbf16>, vector<48x32xf32> -> vector<48x32xf32>
    %c48 = arith.constant 48 : index
    %c0_3 = arith.constant 0 : index
    %4 = vector.load %arg3[%c48, %c0_3] : memref<96x32xf32, #tpu.memory_space<vmem>>, vector<48x32xf32>
    %5 = arith.addf %3, %4 : vector<48x32xf32>
    %c0_4 = arith.constant 0 : index
    %c0_5 = arith.constant 0 : index
    %6 = vector.load %arg2[%c0_4, %c0_5] : memref<48x48xf32, #tpu.memory_space<vmem>>, vector<48x48xf32>
    %c0_6 = arith.constant 0 : index
    %c0_7 = arith.constant 0 : index
    %c0_8 = arith.constant 0 : index
    %7 = vector.load %arg7[%c0_6, %c0_7, %c0_8] : memref<14x1x32xf32, #tpu.memory_space<vmem>>, vector<1x1x32xf32>
    %8 = vector.shape_cast %7 : vector<1x1x32xf32> to vector<1x32xf32>
    %c1 = arith.constant 1 : index
    %c0_9 = arith.constant 0 : index
    %c0_10 = arith.constant 0 : index
    %9 = vector.load %arg7[%c1, %c0_9, %c0_10] : memref<14x1x32xf32, #tpu.memory_space<vmem>>, vector<1x1x32xf32>
    %10 = vector.shape_cast %9 : vector<1x1x32xf32> to vector<1x32xf32>
    %cst_11 = arith.constant dense<0.000000e+00> : vector<48xf32>
    %11 = vector.multi_reduction <add>, %5, %cst_11 [1] : vector<48x32xf32> to vector<48xf32>
    %12 = vector.shape_cast %11 : vector<48xf32> to vector<48x1xf32>
    %cst_12 = arith.constant 3.200000e+01 : f32
    %13 = vector.broadcast %cst_12 : f32 to vector<48x1xf32>
    %14 = arith.divf %12, %13 : vector<48x1xf32>
    %15 = vector.broadcast %14 : vector<48x1xf32> to vector<48x32xf32>
    %16 = arith.subf %5, %15 : vector<48x32xf32>
    %17 = arith.mulf %16, %16 : vector<48x32xf32>
    %cst_13 = arith.constant dense<0.000000e+00> : vector<48xf32>
    %18 = vector.multi_reduction <add>, %17, %cst_13 [1] : vector<48x32xf32> to vector<48xf32>
    %19 = vector.shape_cast %18 : vector<48xf32> to vector<48x1xf32>
    %cst_14 = arith.constant 3.200000e+01 : f32
    %20 = vector.broadcast %cst_14 : f32 to vector<48x1xf32>
    %21 = arith.divf %19, %20 : vector<48x1xf32>
    %cst_15 = arith.constant 9.99999997E-7 : f32
    %22 = vector.broadcast %cst_15 : f32 to vector<48x1xf32>
    %23 = arith.addf %21, %22 : vector<48x1xf32>
    %24 = math.rsqrt %23 : vector<48x1xf32>
    %25 = vector.broadcast %24 : vector<48x1xf32> to vector<48x32xf32>
    %26 = arith.mulf %16, %25 : vector<48x32xf32>
    %27 = vector.broadcast %8 : vector<1x32xf32> to vector<48x32xf32>
    %28 = arith.mulf %26, %27 : vector<48x32xf32>
    %29 = vector.broadcast %10 : vector<1x32xf32> to vector<48x32xf32>
    %30 = arith.addf %28, %29 : vector<48x32xf32>
    %31 = arith.truncf %30 : vector<48x32xf32> to vector<48x32xbf16>
    %c0_16 = arith.constant 0 : index
    %c0_17 = arith.constant 0 : index
    %c0_18 = arith.constant 0 : index
    %32 = vector.load %arg4[%c0_16, %c0_17, %c0_18] : memref<32x32x8xbf16, #tpu.memory_space<vmem>>, vector<1x32x8xbf16>
    %33 = vector.shape_cast %32 : vector<1x32x8xbf16> to vector<32x8xbf16>
    %cst_19 = arith.constant dense<0.000000e+00> : vector<48x8xf32>
    %34 = tpu.matmul %31, %33, %cst_19 {dimension_numbers = #tpu.dot_dimension_numbers<[1], [0], [0], [1], [0, 0, 1, 1], [], []>} : vector<48x32xbf16>, vector<32x8xbf16>, vector<48x8xf32> -> vector<48x8xf32>
    %c0_20 = arith.constant 0 : index
    %c0_21 = arith.constant 0 : index
    %c0_22 = arith.constant 0 : index
    %35 = vector.load %arg5[%c0_20, %c0_21, %c0_22] : memref<24x1x8xf32, #tpu.memory_space<vmem>>, vector<1x1x8xf32>
    %36 = vector.shape_cast %35 : vector<1x1x8xf32> to vector<1x8xf32>
    %37 = vector.broadcast %36 : vector<1x8xf32> to vector<48x8xf32>
    %38 = arith.addf %34, %37 : vector<48x8xf32>
    %c4 = arith.constant 4 : index
    %c0_23 = arith.constant 0 : index
    %c0_24 = arith.constant 0 : index
    %39 = vector.load %arg4[%c4, %c0_23, %c0_24] : memref<32x32x8xbf16, #tpu.memory_space<vmem>>, vector<1x32x8xbf16>
    %40 = vector.shape_cast %39 : vector<1x32x8xbf16> to vector<32x8xbf16>
    %cst_25 = arith.constant dense<0.000000e+00> : vector<48x8xf32>
    %41 = tpu.matmul %31, %40, %cst_25 {dimension_numbers = #tpu.dot_dimension_numbers<[1], [0], [0], [1], [0, 0, 1, 1], [], []>} : vector<48x32xbf16>, vector<32x8xbf16>, vector<48x8xf32> -> vector<48x8xf32>
    %c4_26 = arith.constant 4 : index
    %c0_27 = arith.constant 0 : index
    %c0_28 = arith.constant 0 : index
    %42 = vector.load %arg5[%c4_26, %c0_27, %c0_28] : memref<24x1x8xf32, #tpu.memory_space<vmem>>, vector<1x1x8xf32>
    %43 = vector.shape_cast %42 : vector<1x1x8xf32> to vector<1x8xf32>
    %44 = vector.broadcast %43 : vector<1x8xf32> to vector<48x8xf32>
    %45 = arith.addf %41, %44 : vector<48x8xf32>
    %c8 = arith.constant 8 : index
    %c0_29 = arith.constant 0 : index
    %c0_30 = arith.constant 0 : index
    %46 = vector.load %arg4[%c8, %c0_29, %c0_30] : memref<32x32x8xbf16, #tpu.memory_space<vmem>>, vector<1x32x8xbf16>
    %47 = vector.shape_cast %46 : vector<1x32x8xbf16> to vector<32x8xbf16>
    %cst_31 = arith.constant dense<0.000000e+00> : vector<48x8xf32>
    %48 = tpu.matmul %31, %47, %cst_31 {dimension_numbers = #tpu.dot_dimension_numbers<[1], [0], [0], [1], [0, 0, 1, 1], [], []>} : vector<48x32xbf16>, vector<32x8xbf16>, vector<48x8xf32> -> vector<48x8xf32>
    %c8_32 = arith.constant 8 : index
    %c0_33 = arith.constant 0 : index
    %c0_34 = arith.constant 0 : index
    %49 = vector.load %arg5[%c8_32, %c0_33, %c0_34] : memref<24x1x8xf32, #tpu.memory_space<vmem>>, vector<1x1x8xf32>
    %50 = vector.shape_cast %49 : vector<1x1x8xf32> to vector<1x8xf32>
    %51 = vector.broadcast %50 : vector<1x8xf32> to vector<48x8xf32>
    %52 = arith.addf %48, %51 : vector<48x8xf32>
    %53 = arith.truncf %38 : vector<48x8xf32> to vector<48x8xbf16>
    %54 = arith.truncf %45 : vector<48x8xf32> to vector<48x8xbf16>
    %cst_35 = arith.constant dense<0.000000e+00> : vector<48x48xf32>
    %55 = tpu.matmul %53, %54, %cst_35 {dimension_numbers = #tpu.dot_dimension_numbers<[1], [1], [0], [0], [0, 0, 1, 0], [], []>} : vector<48x8xbf16>, vector<48x8xbf16>, vector<48x48xf32> -> vector<48x48xf32>
    %56 = arith.addf %55, %6 : vector<48x48xf32>
    %cst_36 = arith.constant dense<0xFF800000> : vector<48xf32>
    %57 = vector.multi_reduction <maximumf>, %56, %cst_36 [1] : vector<48x48xf32> to vector<48xf32>
    %58 = vector.shape_cast %57 : vector<48xf32> to vector<48x1xf32>
    %59 = vector.broadcast %58 : vector<48x1xf32> to vector<48x48xf32>
    %60 = arith.subf %56, %59 : vector<48x48xf32>
    %61 = math.exp %60 : vector<48x48xf32>
    %cst_37 = arith.constant dense<0.000000e+00> : vector<48xf32>
    %62 = vector.multi_reduction <add>, %61, %cst_37 [1] : vector<48x48xf32> to vector<48xf32>
    %63 = vector.shape_cast %62 : vector<48xf32> to vector<48x1xf32>
    %64 = tpu.reciprocal %63 {approx = true} : vector<48x1xf32> -> vector<48x1xf32>
    %65 = vector.broadcast %64 : vector<48x1xf32> to vector<48x48xf32>
    %66 = arith.mulf %61, %65 : vector<48x48xf32>
    %67 = arith.truncf %66 : vector<48x48xf32> to vector<48x48xbf16>
    %68 = arith.truncf %52 : vector<48x8xf32> to vector<48x8xbf16>
    %cst_38 = arith.constant dense<0.000000e+00> : vector<48x8xf32>
    %69 = tpu.matmul %67, %68, %cst_38 {dimension_numbers = #tpu.dot_dimension_numbers<[1], [0], [0], [1], [0, 0, 1, 1], [], []>} : vector<48x48xbf16>, vector<48x8xbf16>, vector<48x8xf32> -> vector<48x8xf32>
    %70 = arith.truncf %69 : vector<48x8xf32> to vector<48x8xbf16>
    %c12 = arith.constant 12 : index
    %c0_39 = arith.constant 0 : index
    %c0_40 = arith.constant 0 : index
    %71 = vector.load %arg4[%c12, %c0_39, %c0_40] : memref<32x32x8xbf16, #tpu.memory_space<vmem>>, vector<1x32x8xbf16>
    %72 = vector.shape_cast %71 : vector<1x32x8xbf16> to vector<32x8xbf16>
    %cst_41 = arith.constant dense<0.000000e+00> : vector<48x32xf32>
    %73 = tpu.matmul %70, %72, %cst_41 {dimension_numbers = #tpu.dot_dimension_numbers<[1], [1], [0], [0], [0, 0, 1, 0], [], []>} : vector<48x8xbf16>, vector<32x8xbf16>, vector<48x32xf32> -> vector<48x32xf32>
    %c1_42 = arith.constant 1 : index
    %c0_43 = arith.constant 0 : index
    %c0_44 = arith.constant 0 : index
    %74 = vector.load %arg4[%c1_42, %c0_43, %c0_44] : memref<32x32x8xbf16, #tpu.memory_space<vmem>>, vector<1x32x8xbf16>
    %75 = vector.shape_cast %74 : vector<1x32x8xbf16> to vector<32x8xbf16>
    %cst_45 = arith.constant dense<0.000000e+00> : vector<48x8xf32>
    %76 = tpu.matmul %31, %75, %cst_45 {dimension_numbers = #tpu.dot_dimension_numbers<[1], [0], [0], [1], [0, 0, 1, 1], [], []>} : vector<48x32xbf16>, vector<32x8xbf16>, vector<48x8xf32> -> vector<48x8xf32>
    %c1_46 = arith.constant 1 : index
    %c0_47 = arith.constant 0 : index
    %c0_48 = arith.constant 0 : index
    %77 = vector.load %arg5[%c1_46, %c0_47, %c0_48] : memref<24x1x8xf32, #tpu.memory_space<vmem>>, vector<1x1x8xf32>
    %78 = vector.shape_cast %77 : vector<1x1x8xf32> to vector<1x8xf32>
    %79 = vector.broadcast %78 : vector<1x8xf32> to vector<48x8xf32>
    %80 = arith.addf %76, %79 : vector<48x8xf32>
    %c5 = arith.constant 5 : index
    %c0_49 = arith.constant 0 : index
    %c0_50 = arith.constant 0 : index
    %81 = vector.load %arg4[%c5, %c0_49, %c0_50] : memref<32x32x8xbf16, #tpu.memory_space<vmem>>, vector<1x32x8xbf16>
    %82 = vector.shape_cast %81 : vector<1x32x8xbf16> to vector<32x8xbf16>
    %cst_51 = arith.constant dense<0.000000e+00> : vector<48x8xf32>
    %83 = tpu.matmul %31, %82, %cst_51 {dimension_numbers = #tpu.dot_dimension_numbers<[1], [0], [0], [1], [0, 0, 1, 1], [], []>} : vector<48x32xbf16>, vector<32x8xbf16>, vector<48x8xf32> -> vector<48x8xf32>
    %c5_52 = arith.constant 5 : index
    %c0_53 = arith.constant 0 : index
    %c0_54 = arith.constant 0 : index
    %84 = vector.load %arg5[%c5_52, %c0_53, %c0_54] : memref<24x1x8xf32, #tpu.memory_space<vmem>>, vector<1x1x8xf32>
    %85 = vector.shape_cast %84 : vector<1x1x8xf32> to vector<1x8xf32>
    %86 = vector.broadcast %85 : vector<1x8xf32> to vector<48x8xf32>
    %87 = arith.addf %83, %86 : vector<48x8xf32>
    %c9 = arith.constant 9 : index
    %c0_55 = arith.constant 0 : index
    %c0_56 = arith.constant 0 : index
    %88 = vector.load %arg4[%c9, %c0_55, %c0_56] : memref<32x32x8xbf16, #tpu.memory_space<vmem>>, vector<1x32x8xbf16>
    %89 = vector.shape_cast %88 : vector<1x32x8xbf16> to vector<32x8xbf16>
    %cst_57 = arith.constant dense<0.000000e+00> : vector<48x8xf32>
    %90 = tpu.matmul %31, %89, %cst_57 {dimension_numbers = #tpu.dot_dimension_numbers<[1], [0], [0], [1], [0, 0, 1, 1], [], []>} : vector<48x32xbf16>, vector<32x8xbf16>, vector<48x8xf32> -> vector<48x8xf32>
    %c9_58 = arith.constant 9 : index
    %c0_59 = arith.constant 0 : index
    %c0_60 = arith.constant 0 : index
    %91 = vector.load %arg5[%c9_58, %c0_59, %c0_60] : memref<24x1x8xf32, #tpu.memory_space<vmem>>, vector<1x1x8xf32>
    %92 = vector.shape_cast %91 : vector<1x1x8xf32> to vector<1x8xf32>
    %93 = vector.broadcast %92 : vector<1x8xf32> to vector<48x8xf32>
    %94 = arith.addf %90, %93 : vector<48x8xf32>
    %95 = arith.truncf %80 : vector<48x8xf32> to vector<48x8xbf16>
    %96 = arith.truncf %87 : vector<48x8xf32> to vector<48x8xbf16>
    %cst_61 = arith.constant dense<0.000000e+00> : vector<48x48xf32>
    %97 = tpu.matmul %95, %96, %cst_61 {dimension_numbers = #tpu.dot_dimension_numbers<[1], [1], [0], [0], [0, 0, 1, 0], [], []>} : vector<48x8xbf16>, vector<48x8xbf16>, vector<48x48xf32> -> vector<48x48xf32>
    %98 = arith.addf %97, %6 : vector<48x48xf32>
    %cst_62 = arith.constant dense<0xFF800000> : vector<48xf32>
    %99 = vector.multi_reduction <maximumf>, %98, %cst_62 [1] : vector<48x48xf32> to vector<48xf32>
    %100 = vector.shape_cast %99 : vector<48xf32> to vector<48x1xf32>
    %101 = vector.broadcast %100 : vector<48x1xf32> to vector<48x48xf32>
    %102 = arith.subf %98, %101 : vector<48x48xf32>
    %103 = math.exp %102 : vector<48x48xf32>
    %cst_63 = arith.constant dense<0.000000e+00> : vector<48xf32>
    %104 = vector.multi_reduction <add>, %103, %cst_63 [1] : vector<48x48xf32> to vector<48xf32>
    %105 = vector.shape_cast %104 : vector<48xf32> to vector<48x1xf32>
    %106 = tpu.reciprocal %105 {approx = true} : vector<48x1xf32> -> vector<48x1xf32>
    %107 = vector.broadcast %106 : vector<48x1xf32> to vector<48x48xf32>
    %108 = arith.mulf %103, %107 : vector<48x48xf32>
    %109 = arith.truncf %108 : vector<48x48xf32> to vector<48x48xbf16>
    %110 = arith.truncf %94 : vector<48x8xf32> to vector<48x8xbf16>
    %cst_64 = arith.constant dense<0.000000e+00> : vector<48x8xf32>
    %111 = tpu.matmul %109, %110, %cst_64 {dimension_numbers = #tpu.dot_dimension_numbers<[1], [0], [0], [1], [0, 0, 1, 1], [], []>} : vector<48x48xbf16>, vector<48x8xbf16>, vector<48x8xf32> -> vector<48x8xf32>
    %112 = arith.truncf %111 : vector<48x8xf32> to vector<48x8xbf16>
    %c13 = arith.constant 13 : index
    %c0_65 = arith.constant 0 : index
    %c0_66 = arith.constant 0 : index
    %113 = vector.load %arg4[%c13, %c0_65, %c0_66] : memref<32x32x8xbf16, #tpu.memory_space<vmem>>, vector<1x32x8xbf16>
    %114 = vector.shape_cast %113 : vector<1x32x8xbf16> to vector<32x8xbf16>
    %cst_67 = arith.constant dense<0.000000e+00> : vector<48x32xf32>
    %115 = tpu.matmul %112, %114, %cst_67 {dimension_numbers = #tpu.dot_dimension_numbers<[1], [1], [0], [0], [0, 0, 1, 0], [], []>} : vector<48x8xbf16>, vector<32x8xbf16>, vector<48x32xf32> -> vector<48x32xf32>
    %116 = arith.addf %73, %115 : vector<48x32xf32>
    %c2 = arith.constant 2 : index
    %c0_68 = arith.constant 0 : index
    %c0_69 = arith.constant 0 : index
    %117 = vector.load %arg4[%c2, %c0_68, %c0_69] : memref<32x32x8xbf16, #tpu.memory_space<vmem>>, vector<1x32x8xbf16>
    %118 = vector.shape_cast %117 : vector<1x32x8xbf16> to vector<32x8xbf16>
    %cst_70 = arith.constant dense<0.000000e+00> : vector<48x8xf32>
    %119 = tpu.matmul %31, %118, %cst_70 {dimension_numbers = #tpu.dot_dimension_numbers<[1], [0], [0], [1], [0, 0, 1, 1], [], []>} : vector<48x32xbf16>, vector<32x8xbf16>, vector<48x8xf32> -> vector<48x8xf32>
    %c2_71 = arith.constant 2 : index
    %c0_72 = arith.constant 0 : index
    %c0_73 = arith.constant 0 : index
    %120 = vector.load %arg5[%c2_71, %c0_72, %c0_73] : memref<24x1x8xf32, #tpu.memory_space<vmem>>, vector<1x1x8xf32>
    %121 = vector.shape_cast %120 : vector<1x1x8xf32> to vector<1x8xf32>
    %122 = vector.broadcast %121 : vector<1x8xf32> to vector<48x8xf32>
    %123 = arith.addf %119, %122 : vector<48x8xf32>
    %c6 = arith.constant 6 : index
    %c0_74 = arith.constant 0 : index
    %c0_75 = arith.constant 0 : index
    %124 = vector.load %arg4[%c6, %c0_74, %c0_75] : memref<32x32x8xbf16, #tpu.memory_space<vmem>>, vector<1x32x8xbf16>
    %125 = vector.shape_cast %124 : vector<1x32x8xbf16> to vector<32x8xbf16>
    %cst_76 = arith.constant dense<0.000000e+00> : vector<48x8xf32>
    %126 = tpu.matmul %31, %125, %cst_76 {dimension_numbers = #tpu.dot_dimension_numbers<[1], [0], [0], [1], [0, 0, 1, 1], [], []>} : vector<48x32xbf16>, vector<32x8xbf16>, vector<48x8xf32> -> vector<48x8xf32>
    %c6_77 = arith.constant 6 : index
    %c0_78 = arith.constant 0 : index
    %c0_79 = arith.constant 0 : index
    %127 = vector.load %arg5[%c6_77, %c0_78, %c0_79] : memref<24x1x8xf32, #tpu.memory_space<vmem>>, vector<1x1x8xf32>
    %128 = vector.shape_cast %127 : vector<1x1x8xf32> to vector<1x8xf32>
    %129 = vector.broadcast %128 : vector<1x8xf32> to vector<48x8xf32>
    %130 = arith.addf %126, %129 : vector<48x8xf32>
    %c10 = arith.constant 10 : index
    %c0_80 = arith.constant 0 : index
    %c0_81 = arith.constant 0 : index
    %131 = vector.load %arg4[%c10, %c0_80, %c0_81] : memref<32x32x8xbf16, #tpu.memory_space<vmem>>, vector<1x32x8xbf16>
    %132 = vector.shape_cast %131 : vector<1x32x8xbf16> to vector<32x8xbf16>
    %cst_82 = arith.constant dense<0.000000e+00> : vector<48x8xf32>
    %133 = tpu.matmul %31, %132, %cst_82 {dimension_numbers = #tpu.dot_dimension_numbers<[1], [0], [0], [1], [0, 0, 1, 1], [], []>} : vector<48x32xbf16>, vector<32x8xbf16>, vector<48x8xf32> -> vector<48x8xf32>
    %c10_83 = arith.constant 10 : index
    %c0_84 = arith.constant 0 : index
    %c0_85 = arith.constant 0 : index
    %134 = vector.load %arg5[%c10_83, %c0_84, %c0_85] : memref<24x1x8xf32, #tpu.memory_space<vmem>>, vector<1x1x8xf32>
    %135 = vector.shape_cast %134 : vector<1x1x8xf32> to vector<1x8xf32>
    %136 = vector.broadcast %135 : vector<1x8xf32> to vector<48x8xf32>
    %137 = arith.addf %133, %136 : vector<48x8xf32>
    %138 = arith.truncf %123 : vector<48x8xf32> to vector<48x8xbf16>
    %139 = arith.truncf %130 : vector<48x8xf32> to vector<48x8xbf16>
    %cst_86 = arith.constant dense<0.000000e+00> : vector<48x48xf32>
    %140 = tpu.matmul %138, %139, %cst_86 {dimension_numbers = #tpu.dot_dimension_numbers<[1], [1], [0], [0], [0, 0, 1, 0], [], []>} : vector<48x8xbf16>, vector<48x8xbf16>, vector<48x48xf32> -> vector<48x48xf32>
    %141 = arith.addf %140, %6 : vector<48x48xf32>
    %cst_87 = arith.constant dense<0xFF800000> : vector<48xf32>
    %142 = vector.multi_reduction <maximumf>, %141, %cst_87 [1] : vector<48x48xf32> to vector<48xf32>
    %143 = vector.shape_cast %142 : vector<48xf32> to vector<48x1xf32>
    %144 = vector.broadcast %143 : vector<48x1xf32> to vector<48x48xf32>
    %145 = arith.subf %141, %144 : vector<48x48xf32>
    %146 = math.exp %145 : vector<48x48xf32>
    %cst_88 = arith.constant dense<0.000000e+00> : vector<48xf32>
    %147 = vector.multi_reduction <add>, %146, %cst_88 [1] : vector<48x48xf32> to vector<48xf32>
    %148 = vector.shape_cast %147 : vector<48xf32> to vector<48x1xf32>
    %149 = tpu.reciprocal %148 {approx = true} : vector<48x1xf32> -> vector<48x1xf32>
    %150 = vector.broadcast %149 : vector<48x1xf32> to vector<48x48xf32>
    %151 = arith.mulf %146, %150 : vector<48x48xf32>
    %152 = arith.truncf %151 : vector<48x48xf32> to vector<48x48xbf16>
    %153 = arith.truncf %137 : vector<48x8xf32> to vector<48x8xbf16>
    %cst_89 = arith.constant dense<0.000000e+00> : vector<48x8xf32>
    %154 = tpu.matmul %152, %153, %cst_89 {dimension_numbers = #tpu.dot_dimension_numbers<[1], [0], [0], [1], [0, 0, 1, 1], [], []>} : vector<48x48xbf16>, vector<48x8xbf16>, vector<48x8xf32> -> vector<48x8xf32>
    %155 = arith.truncf %154 : vector<48x8xf32> to vector<48x8xbf16>
    %c14 = arith.constant 14 : index
    %c0_90 = arith.constant 0 : index
    %c0_91 = arith.constant 0 : index
    %156 = vector.load %arg4[%c14, %c0_90, %c0_91] : memref<32x32x8xbf16, #tpu.memory_space<vmem>>, vector<1x32x8xbf16>
    %157 = vector.shape_cast %156 : vector<1x32x8xbf16> to vector<32x8xbf16>
    %cst_92 = arith.constant dense<0.000000e+00> : vector<48x32xf32>
    %158 = tpu.matmul %155, %157, %cst_92 {dimension_numbers = #tpu.dot_dimension_numbers<[1], [1], [0], [0], [0, 0, 1, 0], [], []>} : vector<48x8xbf16>, vector<32x8xbf16>, vector<48x32xf32> -> vector<48x32xf32>
    %159 = arith.addf %116, %158 : vector<48x32xf32>
    %c3 = arith.constant 3 : index
    %c0_93 = arith.constant 0 : index
    %c0_94 = arith.constant 0 : index
    %160 = vector.load %arg4[%c3, %c0_93, %c0_94] : memref<32x32x8xbf16, #tpu.memory_space<vmem>>, vector<1x32x8xbf16>
    %161 = vector.shape_cast %160 : vector<1x32x8xbf16> to vector<32x8xbf16>
    %cst_95 = arith.constant dense<0.000000e+00> : vector<48x8xf32>
    %162 = tpu.matmul %31, %161, %cst_95 {dimension_numbers = #tpu.dot_dimension_numbers<[1], [0], [0], [1], [0, 0, 1, 1], [], []>} : vector<48x32xbf16>, vector<32x8xbf16>, vector<48x8xf32> -> vector<48x8xf32>
    %c3_96 = arith.constant 3 : index
    %c0_97 = arith.constant 0 : index
    %c0_98 = arith.constant 0 : index
    %163 = vector.load %arg5[%c3_96, %c0_97, %c0_98] : memref<24x1x8xf32, #tpu.memory_space<vmem>>, vector<1x1x8xf32>
    %164 = vector.shape_cast %163 : vector<1x1x8xf32> to vector<1x8xf32>
    %165 = vector.broadcast %164 : vector<1x8xf32> to vector<48x8xf32>
    %166 = arith.addf %162, %165 : vector<48x8xf32>
    %c7 = arith.constant 7 : index
    %c0_99 = arith.constant 0 : index
    %c0_100 = arith.constant 0 : index
    %167 = vector.load %arg4[%c7, %c0_99, %c0_100] : memref<32x32x8xbf16, #tpu.memory_space<vmem>>, vector<1x32x8xbf16>
    %168 = vector.shape_cast %167 : vector<1x32x8xbf16> to vector<32x8xbf16>
    %cst_101 = arith.constant dense<0.000000e+00> : vector<48x8xf32>
    %169 = tpu.matmul %31, %168, %cst_101 {dimension_numbers = #tpu.dot_dimension_numbers<[1], [0], [0], [1], [0, 0, 1, 1], [], []>} : vector<48x32xbf16>, vector<32x8xbf16>, vector<48x8xf32> -> vector<48x8xf32>
    %c7_102 = arith.constant 7 : index
    %c0_103 = arith.constant 0 : index
    %c0_104 = arith.constant 0 : index
    %170 = vector.load %arg5[%c7_102, %c0_103, %c0_104] : memref<24x1x8xf32, #tpu.memory_space<vmem>>, vector<1x1x8xf32>
    %171 = vector.shape_cast %170 : vector<1x1x8xf32> to vector<1x8xf32>
    %172 = vector.broadcast %171 : vector<1x8xf32> to vector<48x8xf32>
    %173 = arith.addf %169, %172 : vector<48x8xf32>
    %c11 = arith.constant 11 : index
    %c0_105 = arith.constant 0 : index
    %c0_106 = arith.constant 0 : index
    %174 = vector.load %arg4[%c11, %c0_105, %c0_106] : memref<32x32x8xbf16, #tpu.memory_space<vmem>>, vector<1x32x8xbf16>
    %175 = vector.shape_cast %174 : vector<1x32x8xbf16> to vector<32x8xbf16>
    %cst_107 = arith.constant dense<0.000000e+00> : vector<48x8xf32>
    %176 = tpu.matmul %31, %175, %cst_107 {dimension_numbers = #tpu.dot_dimension_numbers<[1], [0], [0], [1], [0, 0, 1, 1], [], []>} : vector<48x32xbf16>, vector<32x8xbf16>, vector<48x8xf32> -> vector<48x8xf32>
    %c11_108 = arith.constant 11 : index
    %c0_109 = arith.constant 0 : index
    %c0_110 = arith.constant 0 : index
    %177 = vector.load %arg5[%c11_108, %c0_109, %c0_110] : memref<24x1x8xf32, #tpu.memory_space<vmem>>, vector<1x1x8xf32>
    %178 = vector.shape_cast %177 : vector<1x1x8xf32> to vector<1x8xf32>
    %179 = vector.broadcast %178 : vector<1x8xf32> to vector<48x8xf32>
    %180 = arith.addf %176, %179 : vector<48x8xf32>
    %181 = arith.truncf %166 : vector<48x8xf32> to vector<48x8xbf16>
    %182 = arith.truncf %173 : vector<48x8xf32> to vector<48x8xbf16>
    %cst_111 = arith.constant dense<0.000000e+00> : vector<48x48xf32>
    %183 = tpu.matmul %181, %182, %cst_111 {dimension_numbers = #tpu.dot_dimension_numbers<[1], [1], [0], [0], [0, 0, 1, 0], [], []>} : vector<48x8xbf16>, vector<48x8xbf16>, vector<48x48xf32> -> vector<48x48xf32>
    %184 = arith.addf %183, %6 : vector<48x48xf32>
    %cst_112 = arith.constant dense<0xFF800000> : vector<48xf32>
    %185 = vector.multi_reduction <maximumf>, %184, %cst_112 [1] : vector<48x48xf32> to vector<48xf32>
    %186 = vector.shape_cast %185 : vector<48xf32> to vector<48x1xf32>
    %187 = vector.broadcast %186 : vector<48x1xf32> to vector<48x48xf32>
    %188 = arith.subf %184, %187 : vector<48x48xf32>
    %189 = math.exp %188 : vector<48x48xf32>
    %cst_113 = arith.constant dense<0.000000e+00> : vector<48xf32>
    %190 = vector.multi_reduction <add>, %189, %cst_113 [1] : vector<48x48xf32> to vector<48xf32>
    %191 = vector.shape_cast %190 : vector<48xf32> to vector<48x1xf32>
    %192 = tpu.reciprocal %191 {approx = true} : vector<48x1xf32> -> vector<48x1xf32>
    %193 = vector.broadcast %192 : vector<48x1xf32> to vector<48x48xf32>
    %194 = arith.mulf %189, %193 : vector<48x48xf32>
    %195 = arith.truncf %194 : vector<48x48xf32> to vector<48x48xbf16>
    %196 = arith.truncf %180 : vector<48x8xf32> to vector<48x8xbf16>
    %cst_114 = arith.constant dense<0.000000e+00> : vector<48x8xf32>
    %197 = tpu.matmul %195, %196, %cst_114 {dimension_numbers = #tpu.dot_dimension_numbers<[1], [0], [0], [1], [0, 0, 1, 1], [], []>} : vector<48x48xbf16>, vector<48x8xbf16>, vector<48x8xf32> -> vector<48x8xf32>
    %198 = arith.truncf %197 : vector<48x8xf32> to vector<48x8xbf16>
    %c15 = arith.constant 15 : index
    %c0_115 = arith.constant 0 : index
    %c0_116 = arith.constant 0 : index
    %199 = vector.load %arg4[%c15, %c0_115, %c0_116] : memref<32x32x8xbf16, #tpu.memory_space<vmem>>, vector<1x32x8xbf16>
    %200 = vector.shape_cast %199 : vector<1x32x8xbf16> to vector<32x8xbf16>
    %cst_117 = arith.constant dense<0.000000e+00> : vector<48x32xf32>
    %201 = tpu.matmul %198, %200, %cst_117 {dimension_numbers = #tpu.dot_dimension_numbers<[1], [1], [0], [0], [0, 0, 1, 0], [], []>} : vector<48x8xbf16>, vector<32x8xbf16>, vector<48x32xf32> -> vector<48x32xf32>
    %202 = arith.addf %159, %201 : vector<48x32xf32>
    %203 = arith.addf %5, %202 : vector<48x32xf32>
    %c4_118 = arith.constant 4 : index
    %c0_119 = arith.constant 0 : index
    %c0_120 = arith.constant 0 : index
    %204 = vector.load %arg7[%c4_118, %c0_119, %c0_120] : memref<14x1x32xf32, #tpu.memory_space<vmem>>, vector<1x1x32xf32>
    %205 = vector.shape_cast %204 : vector<1x1x32xf32> to vector<1x32xf32>
    %206 = vector.broadcast %205 : vector<1x32xf32> to vector<48x32xf32>
    %207 = arith.addf %203, %206 : vector<48x32xf32>
    %c2_121 = arith.constant 2 : index
    %c0_122 = arith.constant 0 : index
    %c0_123 = arith.constant 0 : index
    %208 = vector.load %arg7[%c2_121, %c0_122, %c0_123] : memref<14x1x32xf32, #tpu.memory_space<vmem>>, vector<1x1x32xf32>
    %209 = vector.shape_cast %208 : vector<1x1x32xf32> to vector<1x32xf32>
    %c3_124 = arith.constant 3 : index
    %c0_125 = arith.constant 0 : index
    %c0_126 = arith.constant 0 : index
    %210 = vector.load %arg7[%c3_124, %c0_125, %c0_126] : memref<14x1x32xf32, #tpu.memory_space<vmem>>, vector<1x1x32xf32>
    %211 = vector.shape_cast %210 : vector<1x1x32xf32> to vector<1x32xf32>
    %cst_127 = arith.constant dense<0.000000e+00> : vector<48xf32>
    %212 = vector.multi_reduction <add>, %207, %cst_127 [1] : vector<48x32xf32> to vector<48xf32>
    %213 = vector.shape_cast %212 : vector<48xf32> to vector<48x1xf32>
    %cst_128 = arith.constant 3.200000e+01 : f32
    %214 = vector.broadcast %cst_128 : f32 to vector<48x1xf32>
    %215 = arith.divf %213, %214 : vector<48x1xf32>
    %216 = vector.broadcast %215 : vector<48x1xf32> to vector<48x32xf32>
    %217 = arith.subf %207, %216 : vector<48x32xf32>
    %218 = arith.mulf %217, %217 : vector<48x32xf32>
    %cst_129 = arith.constant dense<0.000000e+00> : vector<48xf32>
    %219 = vector.multi_reduction <add>, %218, %cst_129 [1] : vector<48x32xf32> to vector<48xf32>
    %220 = vector.shape_cast %219 : vector<48xf32> to vector<48x1xf32>
    %cst_130 = arith.constant 3.200000e+01 : f32
    %221 = vector.broadcast %cst_130 : f32 to vector<48x1xf32>
    %222 = arith.divf %220, %221 : vector<48x1xf32>
    %cst_131 = arith.constant 9.99999997E-7 : f32
    %223 = vector.broadcast %cst_131 : f32 to vector<48x1xf32>
    %224 = arith.addf %222, %223 : vector<48x1xf32>
    %225 = math.rsqrt %224 : vector<48x1xf32>
    %226 = vector.broadcast %225 : vector<48x1xf32> to vector<48x32xf32>
    %227 = arith.mulf %217, %226 : vector<48x32xf32>
    %228 = vector.broadcast %209 : vector<1x32xf32> to vector<48x32xf32>
    %229 = arith.mulf %227, %228 : vector<48x32xf32>
    %230 = vector.broadcast %211 : vector<1x32xf32> to vector<48x32xf32>
    %231 = arith.addf %229, %230 : vector<48x32xf32>
    %232 = arith.truncf %231 : vector<48x32xf32> to vector<48x32xbf16>
    %c0_132 = arith.constant 0 : index
    %c0_133 = arith.constant 0 : index
    %c0_134 = arith.constant 0 : index
    %233 = vector.load %arg6[%c0_132, %c0_133, %c0_134] : memref<5x32x128xbf16, #tpu.memory_space<vmem>>, vector<1x32x128xbf16>
    %234 = vector.shape_cast %233 : vector<1x32x128xbf16> to vector<32x128xbf16>
    %cst_135 = arith.constant dense<0.000000e+00> : vector<48x128xf32>
    %235 = tpu.matmul %232, %234, %cst_135 {dimension_numbers = #tpu.dot_dimension_numbers<[1], [0], [0], [1], [0, 0, 1, 1], [], []>} : vector<48x32xbf16>, vector<32x128xbf16>, vector<48x128xf32> -> vector<48x128xf32>
    %c0_136 = arith.constant 0 : index
    %c0_137 = arith.constant 0 : index
    %c0_138 = arith.constant 0 : index
    %236 = vector.load %arg8[%c0_136, %c0_137, %c0_138] : memref<3x1x128xf32, #tpu.memory_space<vmem>>, vector<1x1x128xf32>
    %237 = vector.shape_cast %236 : vector<1x1x128xf32> to vector<1x128xf32>
    %238 = vector.broadcast %237 : vector<1x128xf32> to vector<48x128xf32>
    %239 = arith.addf %235, %238 : vector<48x128xf32>
    %cst_139 = arith.constant 5.000000e-01 : f32
    %240 = vector.broadcast %cst_139 : f32 to vector<48x128xf32>
    %241 = arith.mulf %240, %239 : vector<48x128xf32>
    %cst_140 = arith.constant 4.471500e-02 : f32
    %242 = vector.broadcast %cst_140 : f32 to vector<48x128xf32>
    %243 = arith.mulf %242, %239 : vector<48x128xf32>
    %244 = arith.mulf %243, %239 : vector<48x128xf32>
    %245 = arith.mulf %244, %239 : vector<48x128xf32>
    %246 = arith.addf %239, %245 : vector<48x128xf32>
    %cst_141 = arith.constant 0.797884583 : f32
    %247 = vector.broadcast %cst_141 : f32 to vector<48x128xf32>
    %248 = arith.mulf %247, %246 : vector<48x128xf32>
    %249 = math.tanh %248 : vector<48x128xf32>
    %cst_142 = arith.constant 1.000000e+00 : f32
    %250 = vector.broadcast %cst_142 : f32 to vector<48x128xf32>
    %251 = arith.addf %250, %249 : vector<48x128xf32>
    %252 = arith.mulf %241, %251 : vector<48x128xf32>
    %253 = arith.truncf %252 : vector<48x128xf32> to vector<48x128xbf16>
    %c1_143 = arith.constant 1 : index
    %c0_144 = arith.constant 0 : index
    %c0_145 = arith.constant 0 : index
    %254 = vector.load %arg6[%c1_143, %c0_144, %c0_145] : memref<5x32x128xbf16, #tpu.memory_space<vmem>>, vector<1x32x128xbf16>
    %255 = vector.shape_cast %254 : vector<1x32x128xbf16> to vector<32x128xbf16>
    %cst_146 = arith.constant dense<0.000000e+00> : vector<48x32xf32>
    %256 = tpu.matmul %253, %255, %cst_146 {dimension_numbers = #tpu.dot_dimension_numbers<[1], [1], [0], [0], [0, 0, 1, 0], [], []>} : vector<48x128xbf16>, vector<32x128xbf16>, vector<48x32xf32> -> vector<48x32xf32>
    %c5_147 = arith.constant 5 : index
    %c0_148 = arith.constant 0 : index
    %c0_149 = arith.constant 0 : index
    %257 = vector.load %arg7[%c5_147, %c0_148, %c0_149] : memref<14x1x32xf32, #tpu.memory_space<vmem>>, vector<1x1x32xf32>
    %258 = vector.shape_cast %257 : vector<1x1x32xf32> to vector<1x32xf32>
    %259 = vector.broadcast %258 : vector<1x32xf32> to vector<48x32xf32>
    %260 = arith.addf %256, %259 : vector<48x32xf32>
    %261 = arith.addf %207, %260 : vector<48x32xf32>
    %c6_150 = arith.constant 6 : index
    %c0_151 = arith.constant 0 : index
    %c0_152 = arith.constant 0 : index
    %262 = vector.load %arg7[%c6_150, %c0_151, %c0_152] : memref<14x1x32xf32, #tpu.memory_space<vmem>>, vector<1x1x32xf32>
    %263 = vector.shape_cast %262 : vector<1x1x32xf32> to vector<1x32xf32>
    %c7_153 = arith.constant 7 : index
    %c0_154 = arith.constant 0 : index
    %c0_155 = arith.constant 0 : index
    %264 = vector.load %arg7[%c7_153, %c0_154, %c0_155] : memref<14x1x32xf32, #tpu.memory_space<vmem>>, vector<1x1x32xf32>
    %265 = vector.shape_cast %264 : vector<1x1x32xf32> to vector<1x32xf32>
    %cst_156 = arith.constant dense<0.000000e+00> : vector<48xf32>
    %266 = vector.multi_reduction <add>, %261, %cst_156 [1] : vector<48x32xf32> to vector<48xf32>
    %267 = vector.shape_cast %266 : vector<48xf32> to vector<48x1xf32>
    %cst_157 = arith.constant 3.200000e+01 : f32
    %268 = vector.broadcast %cst_157 : f32 to vector<48x1xf32>
    %269 = arith.divf %267, %268 : vector<48x1xf32>
    %270 = vector.broadcast %269 : vector<48x1xf32> to vector<48x32xf32>
    %271 = arith.subf %261, %270 : vector<48x32xf32>
    %272 = arith.mulf %271, %271 : vector<48x32xf32>
    %cst_158 = arith.constant dense<0.000000e+00> : vector<48xf32>
    %273 = vector.multi_reduction <add>, %272, %cst_158 [1] : vector<48x32xf32> to vector<48xf32>
    %274 = vector.shape_cast %273 : vector<48xf32> to vector<48x1xf32>
    %cst_159 = arith.constant 3.200000e+01 : f32
    %275 = vector.broadcast %cst_159 : f32 to vector<48x1xf32>
    %276 = arith.divf %274, %275 : vector<48x1xf32>
    %cst_160 = arith.constant 9.99999997E-7 : f32
    %277 = vector.broadcast %cst_160 : f32 to vector<48x1xf32>
    %278 = arith.addf %276, %277 : vector<48x1xf32>
    %279 = math.rsqrt %278 : vector<48x1xf32>
    %280 = vector.broadcast %279 : vector<48x1xf32> to vector<48x32xf32>
    %281 = arith.mulf %271, %280 : vector<48x32xf32>
    %282 = vector.broadcast %263 : vector<1x32xf32> to vector<48x32xf32>
    %283 = arith.mulf %281, %282 : vector<48x32xf32>
    %284 = vector.broadcast %265 : vector<1x32xf32> to vector<48x32xf32>
    %285 = arith.addf %283, %284 : vector<48x32xf32>
    %286 = arith.truncf %285 : vector<48x32xf32> to vector<48x32xbf16>
    %c16 = arith.constant 16 : index
    %c0_161 = arith.constant 0 : index
    %c0_162 = arith.constant 0 : index
    %287 = vector.load %arg4[%c16, %c0_161, %c0_162] : memref<32x32x8xbf16, #tpu.memory_space<vmem>>, vector<1x32x8xbf16>
    %288 = vector.shape_cast %287 : vector<1x32x8xbf16> to vector<32x8xbf16>
    %cst_163 = arith.constant dense<0.000000e+00> : vector<48x8xf32>
    %289 = tpu.matmul %286, %288, %cst_163 {dimension_numbers = #tpu.dot_dimension_numbers<[1], [0], [0], [1], [0, 0, 1, 1], [], []>} : vector<48x32xbf16>, vector<32x8xbf16>, vector<48x8xf32> -> vector<48x8xf32>
    %c12_164 = arith.constant 12 : index
    %c0_165 = arith.constant 0 : index
    %c0_166 = arith.constant 0 : index
    %290 = vector.load %arg5[%c12_164, %c0_165, %c0_166] : memref<24x1x8xf32, #tpu.memory_space<vmem>>, vector<1x1x8xf32>
    %291 = vector.shape_cast %290 : vector<1x1x8xf32> to vector<1x8xf32>
    %292 = vector.broadcast %291 : vector<1x8xf32> to vector<48x8xf32>
    %293 = arith.addf %289, %292 : vector<48x8xf32>
    %c20 = arith.constant 20 : index
    %c0_167 = arith.constant 0 : index
    %c0_168 = arith.constant 0 : index
    %294 = vector.load %arg4[%c20, %c0_167, %c0_168] : memref<32x32x8xbf16, #tpu.memory_space<vmem>>, vector<1x32x8xbf16>
    %295 = vector.shape_cast %294 : vector<1x32x8xbf16> to vector<32x8xbf16>
    %cst_169 = arith.constant dense<0.000000e+00> : vector<48x8xf32>
    %296 = tpu.matmul %286, %295, %cst_169 {dimension_numbers = #tpu.dot_dimension_numbers<[1], [0], [0], [1], [0, 0, 1, 1], [], []>} : vector<48x32xbf16>, vector<32x8xbf16>, vector<48x8xf32> -> vector<48x8xf32>
    %c16_170 = arith.constant 16 : index
    %c0_171 = arith.constant 0 : index
    %c0_172 = arith.constant 0 : index
    %297 = vector.load %arg5[%c16_170, %c0_171, %c0_172] : memref<24x1x8xf32, #tpu.memory_space<vmem>>, vector<1x1x8xf32>
    %298 = vector.shape_cast %297 : vector<1x1x8xf32> to vector<1x8xf32>
    %299 = vector.broadcast %298 : vector<1x8xf32> to vector<48x8xf32>
    %300 = arith.addf %296, %299 : vector<48x8xf32>
    %c24 = arith.constant 24 : index
    %c0_173 = arith.constant 0 : index
    %c0_174 = arith.constant 0 : index
    %301 = vector.load %arg4[%c24, %c0_173, %c0_174] : memref<32x32x8xbf16, #tpu.memory_space<vmem>>, vector<1x32x8xbf16>
    %302 = vector.shape_cast %301 : vector<1x32x8xbf16> to vector<32x8xbf16>
    %cst_175 = arith.constant dense<0.000000e+00> : vector<48x8xf32>
    %303 = tpu.matmul %286, %302, %cst_175 {dimension_numbers = #tpu.dot_dimension_numbers<[1], [0], [0], [1], [0, 0, 1, 1], [], []>} : vector<48x32xbf16>, vector<32x8xbf16>, vector<48x8xf32> -> vector<48x8xf32>
    %c20_176 = arith.constant 20 : index
    %c0_177 = arith.constant 0 : index
    %c0_178 = arith.constant 0 : index
    %304 = vector.load %arg5[%c20_176, %c0_177, %c0_178] : memref<24x1x8xf32, #tpu.memory_space<vmem>>, vector<1x1x8xf32>
    %305 = vector.shape_cast %304 : vector<1x1x8xf32> to vector<1x8xf32>
    %306 = vector.broadcast %305 : vector<1x8xf32> to vector<48x8xf32>
    %307 = arith.addf %303, %306 : vector<48x8xf32>
    %308 = arith.truncf %293 : vector<48x8xf32> to vector<48x8xbf16>
    %309 = arith.truncf %300 : vector<48x8xf32> to vector<48x8xbf16>
    %cst_179 = arith.constant dense<0.000000e+00> : vector<48x48xf32>
    %310 = tpu.matmul %308, %309, %cst_179 {dimension_numbers = #tpu.dot_dimension_numbers<[1], [1], [0], [0], [0, 0, 1, 0], [], []>} : vector<48x8xbf16>, vector<48x8xbf16>, vector<48x48xf32> -> vector<48x48xf32>
    %311 = arith.addf %310, %6 : vector<48x48xf32>
    %cst_180 = arith.constant dense<0xFF800000> : vector<48xf32>
    %312 = vector.multi_reduction <maximumf>, %311, %cst_180 [1] : vector<48x48xf32> to vector<48xf32>
    %313 = vector.shape_cast %312 : vector<48xf32> to vector<48x1xf32>
    %314 = vector.broadcast %313 : vector<48x1xf32> to vector<48x48xf32>
    %315 = arith.subf %311, %314 : vector<48x48xf32>
    %316 = math.exp %315 : vector<48x48xf32>
    %cst_181 = arith.constant dense<0.000000e+00> : vector<48xf32>
    %317 = vector.multi_reduction <add>, %316, %cst_181 [1] : vector<48x48xf32> to vector<48xf32>
    %318 = vector.shape_cast %317 : vector<48xf32> to vector<48x1xf32>
    %319 = tpu.reciprocal %318 {approx = true} : vector<48x1xf32> -> vector<48x1xf32>
    %320 = vector.broadcast %319 : vector<48x1xf32> to vector<48x48xf32>
    %321 = arith.mulf %316, %320 : vector<48x48xf32>
    %322 = arith.truncf %321 : vector<48x48xf32> to vector<48x48xbf16>
    %323 = arith.truncf %307 : vector<48x8xf32> to vector<48x8xbf16>
    %cst_182 = arith.constant dense<0.000000e+00> : vector<48x8xf32>
    %324 = tpu.matmul %322, %323, %cst_182 {dimension_numbers = #tpu.dot_dimension_numbers<[1], [0], [0], [1], [0, 0, 1, 1], [], []>} : vector<48x48xbf16>, vector<48x8xbf16>, vector<48x8xf32> -> vector<48x8xf32>
    %325 = arith.truncf %324 : vector<48x8xf32> to vector<48x8xbf16>
    %c28 = arith.constant 28 : index
    %c0_183 = arith.constant 0 : index
    %c0_184 = arith.constant 0 : index
    %326 = vector.load %arg4[%c28, %c0_183, %c0_184] : memref<32x32x8xbf16, #tpu.memory_space<vmem>>, vector<1x32x8xbf16>
    %327 = vector.shape_cast %326 : vector<1x32x8xbf16> to vector<32x8xbf16>
    %cst_185 = arith.constant dense<0.000000e+00> : vector<48x32xf32>
    %328 = tpu.matmul %325, %327, %cst_185 {dimension_numbers = #tpu.dot_dimension_numbers<[1], [1], [0], [0], [0, 0, 1, 0], [], []>} : vector<48x8xbf16>, vector<32x8xbf16>, vector<48x32xf32> -> vector<48x32xf32>
    %c17 = arith.constant 17 : index
    %c0_186 = arith.constant 0 : index
    %c0_187 = arith.constant 0 : index
    %329 = vector.load %arg4[%c17, %c0_186, %c0_187] : memref<32x32x8xbf16, #tpu.memory_space<vmem>>, vector<1x32x8xbf16>
    %330 = vector.shape_cast %329 : vector<1x32x8xbf16> to vector<32x8xbf16>
    %cst_188 = arith.constant dense<0.000000e+00> : vector<48x8xf32>
    %331 = tpu.matmul %286, %330, %cst_188 {dimension_numbers = #tpu.dot_dimension_numbers<[1], [0], [0], [1], [0, 0, 1, 1], [], []>} : vector<48x32xbf16>, vector<32x8xbf16>, vector<48x8xf32> -> vector<48x8xf32>
    %c13_189 = arith.constant 13 : index
    %c0_190 = arith.constant 0 : index
    %c0_191 = arith.constant 0 : index
    %332 = vector.load %arg5[%c13_189, %c0_190, %c0_191] : memref<24x1x8xf32, #tpu.memory_space<vmem>>, vector<1x1x8xf32>
    %333 = vector.shape_cast %332 : vector<1x1x8xf32> to vector<1x8xf32>
    %334 = vector.broadcast %333 : vector<1x8xf32> to vector<48x8xf32>
    %335 = arith.addf %331, %334 : vector<48x8xf32>
    %c21 = arith.constant 21 : index
    %c0_192 = arith.constant 0 : index
    %c0_193 = arith.constant 0 : index
    %336 = vector.load %arg4[%c21, %c0_192, %c0_193] : memref<32x32x8xbf16, #tpu.memory_space<vmem>>, vector<1x32x8xbf16>
    %337 = vector.shape_cast %336 : vector<1x32x8xbf16> to vector<32x8xbf16>
    %cst_194 = arith.constant dense<0.000000e+00> : vector<48x8xf32>
    %338 = tpu.matmul %286, %337, %cst_194 {dimension_numbers = #tpu.dot_dimension_numbers<[1], [0], [0], [1], [0, 0, 1, 1], [], []>} : vector<48x32xbf16>, vector<32x8xbf16>, vector<48x8xf32> -> vector<48x8xf32>
    %c17_195 = arith.constant 17 : index
    %c0_196 = arith.constant 0 : index
    %c0_197 = arith.constant 0 : index
    %339 = vector.load %arg5[%c17_195, %c0_196, %c0_197] : memref<24x1x8xf32, #tpu.memory_space<vmem>>, vector<1x1x8xf32>
    %340 = vector.shape_cast %339 : vector<1x1x8xf32> to vector<1x8xf32>
    %341 = vector.broadcast %340 : vector<1x8xf32> to vector<48x8xf32>
    %342 = arith.addf %338, %341 : vector<48x8xf32>
    %c25 = arith.constant 25 : index
    %c0_198 = arith.constant 0 : index
    %c0_199 = arith.constant 0 : index
    %343 = vector.load %arg4[%c25, %c0_198, %c0_199] : memref<32x32x8xbf16, #tpu.memory_space<vmem>>, vector<1x32x8xbf16>
    %344 = vector.shape_cast %343 : vector<1x32x8xbf16> to vector<32x8xbf16>
    %cst_200 = arith.constant dense<0.000000e+00> : vector<48x8xf32>
    %345 = tpu.matmul %286, %344, %cst_200 {dimension_numbers = #tpu.dot_dimension_numbers<[1], [0], [0], [1], [0, 0, 1, 1], [], []>} : vector<48x32xbf16>, vector<32x8xbf16>, vector<48x8xf32> -> vector<48x8xf32>
    %c21_201 = arith.constant 21 : index
    %c0_202 = arith.constant 0 : index
    %c0_203 = arith.constant 0 : index
    %346 = vector.load %arg5[%c21_201, %c0_202, %c0_203] : memref<24x1x8xf32, #tpu.memory_space<vmem>>, vector<1x1x8xf32>
    %347 = vector.shape_cast %346 : vector<1x1x8xf32> to vector<1x8xf32>
    %348 = vector.broadcast %347 : vector<1x8xf32> to vector<48x8xf32>
    %349 = arith.addf %345, %348 : vector<48x8xf32>
    %350 = arith.truncf %335 : vector<48x8xf32> to vector<48x8xbf16>
    %351 = arith.truncf %342 : vector<48x8xf32> to vector<48x8xbf16>
    %cst_204 = arith.constant dense<0.000000e+00> : vector<48x48xf32>
    %352 = tpu.matmul %350, %351, %cst_204 {dimension_numbers = #tpu.dot_dimension_numbers<[1], [1], [0], [0], [0, 0, 1, 0], [], []>} : vector<48x8xbf16>, vector<48x8xbf16>, vector<48x48xf32> -> vector<48x48xf32>
    %353 = arith.addf %352, %6 : vector<48x48xf32>
    %cst_205 = arith.constant dense<0xFF800000> : vector<48xf32>
    %354 = vector.multi_reduction <maximumf>, %353, %cst_205 [1] : vector<48x48xf32> to vector<48xf32>
    %355 = vector.shape_cast %354 : vector<48xf32> to vector<48x1xf32>
    %356 = vector.broadcast %355 : vector<48x1xf32> to vector<48x48xf32>
    %357 = arith.subf %353, %356 : vector<48x48xf32>
    %358 = math.exp %357 : vector<48x48xf32>
    %cst_206 = arith.constant dense<0.000000e+00> : vector<48xf32>
    %359 = vector.multi_reduction <add>, %358, %cst_206 [1] : vector<48x48xf32> to vector<48xf32>
    %360 = vector.shape_cast %359 : vector<48xf32> to vector<48x1xf32>
    %361 = tpu.reciprocal %360 {approx = true} : vector<48x1xf32> -> vector<48x1xf32>
    %362 = vector.broadcast %361 : vector<48x1xf32> to vector<48x48xf32>
    %363 = arith.mulf %358, %362 : vector<48x48xf32>
    %364 = arith.truncf %363 : vector<48x48xf32> to vector<48x48xbf16>
    %365 = arith.truncf %349 : vector<48x8xf32> to vector<48x8xbf16>
    %cst_207 = arith.constant dense<0.000000e+00> : vector<48x8xf32>
    %366 = tpu.matmul %364, %365, %cst_207 {dimension_numbers = #tpu.dot_dimension_numbers<[1], [0], [0], [1], [0, 0, 1, 1], [], []>} : vector<48x48xbf16>, vector<48x8xbf16>, vector<48x8xf32> -> vector<48x8xf32>
    %367 = arith.truncf %366 : vector<48x8xf32> to vector<48x8xbf16>
    %c29 = arith.constant 29 : index
    %c0_208 = arith.constant 0 : index
    %c0_209 = arith.constant 0 : index
    %368 = vector.load %arg4[%c29, %c0_208, %c0_209] : memref<32x32x8xbf16, #tpu.memory_space<vmem>>, vector<1x32x8xbf16>
    %369 = vector.shape_cast %368 : vector<1x32x8xbf16> to vector<32x8xbf16>
    %cst_210 = arith.constant dense<0.000000e+00> : vector<48x32xf32>
    %370 = tpu.matmul %367, %369, %cst_210 {dimension_numbers = #tpu.dot_dimension_numbers<[1], [1], [0], [0], [0, 0, 1, 0], [], []>} : vector<48x8xbf16>, vector<32x8xbf16>, vector<48x32xf32> -> vector<48x32xf32>
    %371 = arith.addf %328, %370 : vector<48x32xf32>
    %c18 = arith.constant 18 : index
    %c0_211 = arith.constant 0 : index
    %c0_212 = arith.constant 0 : index
    %372 = vector.load %arg4[%c18, %c0_211, %c0_212] : memref<32x32x8xbf16, #tpu.memory_space<vmem>>, vector<1x32x8xbf16>
    %373 = vector.shape_cast %372 : vector<1x32x8xbf16> to vector<32x8xbf16>
    %cst_213 = arith.constant dense<0.000000e+00> : vector<48x8xf32>
    %374 = tpu.matmul %286, %373, %cst_213 {dimension_numbers = #tpu.dot_dimension_numbers<[1], [0], [0], [1], [0, 0, 1, 1], [], []>} : vector<48x32xbf16>, vector<32x8xbf16>, vector<48x8xf32> -> vector<48x8xf32>
    %c14_214 = arith.constant 14 : index
    %c0_215 = arith.constant 0 : index
    %c0_216 = arith.constant 0 : index
    %375 = vector.load %arg5[%c14_214, %c0_215, %c0_216] : memref<24x1x8xf32, #tpu.memory_space<vmem>>, vector<1x1x8xf32>
    %376 = vector.shape_cast %375 : vector<1x1x8xf32> to vector<1x8xf32>
    %377 = vector.broadcast %376 : vector<1x8xf32> to vector<48x8xf32>
    %378 = arith.addf %374, %377 : vector<48x8xf32>
    %c22 = arith.constant 22 : index
    %c0_217 = arith.constant 0 : index
    %c0_218 = arith.constant 0 : index
    %379 = vector.load %arg4[%c22, %c0_217, %c0_218] : memref<32x32x8xbf16, #tpu.memory_space<vmem>>, vector<1x32x8xbf16>
    %380 = vector.shape_cast %379 : vector<1x32x8xbf16> to vector<32x8xbf16>
    %cst_219 = arith.constant dense<0.000000e+00> : vector<48x8xf32>
    %381 = tpu.matmul %286, %380, %cst_219 {dimension_numbers = #tpu.dot_dimension_numbers<[1], [0], [0], [1], [0, 0, 1, 1], [], []>} : vector<48x32xbf16>, vector<32x8xbf16>, vector<48x8xf32> -> vector<48x8xf32>
    %c18_220 = arith.constant 18 : index
    %c0_221 = arith.constant 0 : index
    %c0_222 = arith.constant 0 : index
    %382 = vector.load %arg5[%c18_220, %c0_221, %c0_222] : memref<24x1x8xf32, #tpu.memory_space<vmem>>, vector<1x1x8xf32>
    %383 = vector.shape_cast %382 : vector<1x1x8xf32> to vector<1x8xf32>
    %384 = vector.broadcast %383 : vector<1x8xf32> to vector<48x8xf32>
    %385 = arith.addf %381, %384 : vector<48x8xf32>
    %c26 = arith.constant 26 : index
    %c0_223 = arith.constant 0 : index
    %c0_224 = arith.constant 0 : index
    %386 = vector.load %arg4[%c26, %c0_223, %c0_224] : memref<32x32x8xbf16, #tpu.memory_space<vmem>>, vector<1x32x8xbf16>
    %387 = vector.shape_cast %386 : vector<1x32x8xbf16> to vector<32x8xbf16>
    %cst_225 = arith.constant dense<0.000000e+00> : vector<48x8xf32>
    %388 = tpu.matmul %286, %387, %cst_225 {dimension_numbers = #tpu.dot_dimension_numbers<[1], [0], [0], [1], [0, 0, 1, 1], [], []>} : vector<48x32xbf16>, vector<32x8xbf16>, vector<48x8xf32> -> vector<48x8xf32>
    %c22_226 = arith.constant 22 : index
    %c0_227 = arith.constant 0 : index
    %c0_228 = arith.constant 0 : index
    %389 = vector.load %arg5[%c22_226, %c0_227, %c0_228] : memref<24x1x8xf32, #tpu.memory_space<vmem>>, vector<1x1x8xf32>
    %390 = vector.shape_cast %389 : vector<1x1x8xf32> to vector<1x8xf32>
    %391 = vector.broadcast %390 : vector<1x8xf32> to vector<48x8xf32>
    %392 = arith.addf %388, %391 : vector<48x8xf32>
    %393 = arith.truncf %378 : vector<48x8xf32> to vector<48x8xbf16>
    %394 = arith.truncf %385 : vector<48x8xf32> to vector<48x8xbf16>
    %cst_229 = arith.constant dense<0.000000e+00> : vector<48x48xf32>
    %395 = tpu.matmul %393, %394, %cst_229 {dimension_numbers = #tpu.dot_dimension_numbers<[1], [1], [0], [0], [0, 0, 1, 0], [], []>} : vector<48x8xbf16>, vector<48x8xbf16>, vector<48x48xf32> -> vector<48x48xf32>
    %396 = arith.addf %395, %6 : vector<48x48xf32>
    %cst_230 = arith.constant dense<0xFF800000> : vector<48xf32>
    %397 = vector.multi_reduction <maximumf>, %396, %cst_230 [1] : vector<48x48xf32> to vector<48xf32>
    %398 = vector.shape_cast %397 : vector<48xf32> to vector<48x1xf32>
    %399 = vector.broadcast %398 : vector<48x1xf32> to vector<48x48xf32>
    %400 = arith.subf %396, %399 : vector<48x48xf32>
    %401 = math.exp %400 : vector<48x48xf32>
    %cst_231 = arith.constant dense<0.000000e+00> : vector<48xf32>
    %402 = vector.multi_reduction <add>, %401, %cst_231 [1] : vector<48x48xf32> to vector<48xf32>
    %403 = vector.shape_cast %402 : vector<48xf32> to vector<48x1xf32>
    %404 = tpu.reciprocal %403 {approx = true} : vector<48x1xf32> -> vector<48x1xf32>
    %405 = vector.broadcast %404 : vector<48x1xf32> to vector<48x48xf32>
    %406 = arith.mulf %401, %405 : vector<48x48xf32>
    %407 = arith.truncf %406 : vector<48x48xf32> to vector<48x48xbf16>
    %408 = arith.truncf %392 : vector<48x8xf32> to vector<48x8xbf16>
    %cst_232 = arith.constant dense<0.000000e+00> : vector<48x8xf32>
    %409 = tpu.matmul %407, %408, %cst_232 {dimension_numbers = #tpu.dot_dimension_numbers<[1], [0], [0], [1], [0, 0, 1, 1], [], []>} : vector<48x48xbf16>, vector<48x8xbf16>, vector<48x8xf32> -> vector<48x8xf32>
    %410 = arith.truncf %409 : vector<48x8xf32> to vector<48x8xbf16>
    %c30 = arith.constant 30 : index
    %c0_233 = arith.constant 0 : index
    %c0_234 = arith.constant 0 : index
    %411 = vector.load %arg4[%c30, %c0_233, %c0_234] : memref<32x32x8xbf16, #tpu.memory_space<vmem>>, vector<1x32x8xbf16>
    %412 = vector.shape_cast %411 : vector<1x32x8xbf16> to vector<32x8xbf16>
    %cst_235 = arith.constant dense<0.000000e+00> : vector<48x32xf32>
    %413 = tpu.matmul %410, %412, %cst_235 {dimension_numbers = #tpu.dot_dimension_numbers<[1], [1], [0], [0], [0, 0, 1, 0], [], []>} : vector<48x8xbf16>, vector<32x8xbf16>, vector<48x32xf32> -> vector<48x32xf32>
    %414 = arith.addf %371, %413 : vector<48x32xf32>
    %c19 = arith.constant 19 : index
    %c0_236 = arith.constant 0 : index
    %c0_237 = arith.constant 0 : index
    %415 = vector.load %arg4[%c19, %c0_236, %c0_237] : memref<32x32x8xbf16, #tpu.memory_space<vmem>>, vector<1x32x8xbf16>
    %416 = vector.shape_cast %415 : vector<1x32x8xbf16> to vector<32x8xbf16>
    %cst_238 = arith.constant dense<0.000000e+00> : vector<48x8xf32>
    %417 = tpu.matmul %286, %416, %cst_238 {dimension_numbers = #tpu.dot_dimension_numbers<[1], [0], [0], [1], [0, 0, 1, 1], [], []>} : vector<48x32xbf16>, vector<32x8xbf16>, vector<48x8xf32> -> vector<48x8xf32>
    %c15_239 = arith.constant 15 : index
    %c0_240 = arith.constant 0 : index
    %c0_241 = arith.constant 0 : index
    %418 = vector.load %arg5[%c15_239, %c0_240, %c0_241] : memref<24x1x8xf32, #tpu.memory_space<vmem>>, vector<1x1x8xf32>
    %419 = vector.shape_cast %418 : vector<1x1x8xf32> to vector<1x8xf32>
    %420 = vector.broadcast %419 : vector<1x8xf32> to vector<48x8xf32>
    %421 = arith.addf %417, %420 : vector<48x8xf32>
    %c23 = arith.constant 23 : index
    %c0_242 = arith.constant 0 : index
    %c0_243 = arith.constant 0 : index
    %422 = vector.load %arg4[%c23, %c0_242, %c0_243] : memref<32x32x8xbf16, #tpu.memory_space<vmem>>, vector<1x32x8xbf16>
    %423 = vector.shape_cast %422 : vector<1x32x8xbf16> to vector<32x8xbf16>
    %cst_244 = arith.constant dense<0.000000e+00> : vector<48x8xf32>
    %424 = tpu.matmul %286, %423, %cst_244 {dimension_numbers = #tpu.dot_dimension_numbers<[1], [0], [0], [1], [0, 0, 1, 1], [], []>} : vector<48x32xbf16>, vector<32x8xbf16>, vector<48x8xf32> -> vector<48x8xf32>
    %c19_245 = arith.constant 19 : index
    %c0_246 = arith.constant 0 : index
    %c0_247 = arith.constant 0 : index
    %425 = vector.load %arg5[%c19_245, %c0_246, %c0_247] : memref<24x1x8xf32, #tpu.memory_space<vmem>>, vector<1x1x8xf32>
    %426 = vector.shape_cast %425 : vector<1x1x8xf32> to vector<1x8xf32>
    %427 = vector.broadcast %426 : vector<1x8xf32> to vector<48x8xf32>
    %428 = arith.addf %424, %427 : vector<48x8xf32>
    %c27 = arith.constant 27 : index
    %c0_248 = arith.constant 0 : index
    %c0_249 = arith.constant 0 : index
    %429 = vector.load %arg4[%c27, %c0_248, %c0_249] : memref<32x32x8xbf16, #tpu.memory_space<vmem>>, vector<1x32x8xbf16>
    %430 = vector.shape_cast %429 : vector<1x32x8xbf16> to vector<32x8xbf16>
    %cst_250 = arith.constant dense<0.000000e+00> : vector<48x8xf32>
    %431 = tpu.matmul %286, %430, %cst_250 {dimension_numbers = #tpu.dot_dimension_numbers<[1], [0], [0], [1], [0, 0, 1, 1], [], []>} : vector<48x32xbf16>, vector<32x8xbf16>, vector<48x8xf32> -> vector<48x8xf32>
    %c23_251 = arith.constant 23 : index
    %c0_252 = arith.constant 0 : index
    %c0_253 = arith.constant 0 : index
    %432 = vector.load %arg5[%c23_251, %c0_252, %c0_253] : memref<24x1x8xf32, #tpu.memory_space<vmem>>, vector<1x1x8xf32>
    %433 = vector.shape_cast %432 : vector<1x1x8xf32> to vector<1x8xf32>
    %434 = vector.broadcast %433 : vector<1x8xf32> to vector<48x8xf32>
    %435 = arith.addf %431, %434 : vector<48x8xf32>
    %436 = arith.truncf %421 : vector<48x8xf32> to vector<48x8xbf16>
    %437 = arith.truncf %428 : vector<48x8xf32> to vector<48x8xbf16>
    %cst_254 = arith.constant dense<0.000000e+00> : vector<48x48xf32>
    %438 = tpu.matmul %436, %437, %cst_254 {dimension_numbers = #tpu.dot_dimension_numbers<[1], [1], [0], [0], [0, 0, 1, 0], [], []>} : vector<48x8xbf16>, vector<48x8xbf16>, vector<48x48xf32> -> vector<48x48xf32>
    %439 = arith.addf %438, %6 : vector<48x48xf32>
    %cst_255 = arith.constant dense<0xFF800000> : vector<48xf32>
    %440 = vector.multi_reduction <maximumf>, %439, %cst_255 [1] : vector<48x48xf32> to vector<48xf32>
    %441 = vector.shape_cast %440 : vector<48xf32> to vector<48x1xf32>
    %442 = vector.broadcast %441 : vector<48x1xf32> to vector<48x48xf32>
    %443 = arith.subf %439, %442 : vector<48x48xf32>
    %444 = math.exp %443 : vector<48x48xf32>
    %cst_256 = arith.constant dense<0.000000e+00> : vector<48xf32>
    %445 = vector.multi_reduction <add>, %444, %cst_256 [1] : vector<48x48xf32> to vector<48xf32>
    %446 = vector.shape_cast %445 : vector<48xf32> to vector<48x1xf32>
    %447 = tpu.reciprocal %446 {approx = true} : vector<48x1xf32> -> vector<48x1xf32>
    %448 = vector.broadcast %447 : vector<48x1xf32> to vector<48x48xf32>
    %449 = arith.mulf %444, %448 : vector<48x48xf32>
    %450 = arith.truncf %449 : vector<48x48xf32> to vector<48x48xbf16>
    %451 = arith.truncf %435 : vector<48x8xf32> to vector<48x8xbf16>
    %cst_257 = arith.constant dense<0.000000e+00> : vector<48x8xf32>
    %452 = tpu.matmul %450, %451, %cst_257 {dimension_numbers = #tpu.dot_dimension_numbers<[1], [0], [0], [1], [0, 0, 1, 1], [], []>} : vector<48x48xbf16>, vector<48x8xbf16>, vector<48x8xf32> -> vector<48x8xf32>
    %453 = arith.truncf %452 : vector<48x8xf32> to vector<48x8xbf16>
    %c31 = arith.constant 31 : index
    %c0_258 = arith.constant 0 : index
    %c0_259 = arith.constant 0 : index
    %454 = vector.load %arg4[%c31, %c0_258, %c0_259] : memref<32x32x8xbf16, #tpu.memory_space<vmem>>, vector<1x32x8xbf16>
    %455 = vector.shape_cast %454 : vector<1x32x8xbf16> to vector<32x8xbf16>
    %cst_260 = arith.constant dense<0.000000e+00> : vector<48x32xf32>
    %456 = tpu.matmul %453, %455, %cst_260 {dimension_numbers = #tpu.dot_dimension_numbers<[1], [1], [0], [0], [0, 0, 1, 0], [], []>} : vector<48x8xbf16>, vector<32x8xbf16>, vector<48x32xf32> -> vector<48x32xf32>
    %457 = arith.addf %414, %456 : vector<48x32xf32>
    %458 = arith.addf %261, %457 : vector<48x32xf32>
    %c10_261 = arith.constant 10 : index
    %c0_262 = arith.constant 0 : index
    %c0_263 = arith.constant 0 : index
    %459 = vector.load %arg7[%c10_261, %c0_262, %c0_263] : memref<14x1x32xf32, #tpu.memory_space<vmem>>, vector<1x1x32xf32>
    %460 = vector.shape_cast %459 : vector<1x1x32xf32> to vector<1x32xf32>
    %461 = vector.broadcast %460 : vector<1x32xf32> to vector<48x32xf32>
    %462 = arith.addf %458, %461 : vector<48x32xf32>
    %c8_264 = arith.constant 8 : index
    %c0_265 = arith.constant 0 : index
    %c0_266 = arith.constant 0 : index
    %463 = vector.load %arg7[%c8_264, %c0_265, %c0_266] : memref<14x1x32xf32, #tpu.memory_space<vmem>>, vector<1x1x32xf32>
    %464 = vector.shape_cast %463 : vector<1x1x32xf32> to vector<1x32xf32>
    %c9_267 = arith.constant 9 : index
    %c0_268 = arith.constant 0 : index
    %c0_269 = arith.constant 0 : index
    %465 = vector.load %arg7[%c9_267, %c0_268, %c0_269] : memref<14x1x32xf32, #tpu.memory_space<vmem>>, vector<1x1x32xf32>
    %466 = vector.shape_cast %465 : vector<1x1x32xf32> to vector<1x32xf32>
    %cst_270 = arith.constant dense<0.000000e+00> : vector<48xf32>
    %467 = vector.multi_reduction <add>, %462, %cst_270 [1] : vector<48x32xf32> to vector<48xf32>
    %468 = vector.shape_cast %467 : vector<48xf32> to vector<48x1xf32>
    %cst_271 = arith.constant 3.200000e+01 : f32
    %469 = vector.broadcast %cst_271 : f32 to vector<48x1xf32>
    %470 = arith.divf %468, %469 : vector<48x1xf32>
    %471 = vector.broadcast %470 : vector<48x1xf32> to vector<48x32xf32>
    %472 = arith.subf %462, %471 : vector<48x32xf32>
    %473 = arith.mulf %472, %472 : vector<48x32xf32>
    %cst_272 = arith.constant dense<0.000000e+00> : vector<48xf32>
    %474 = vector.multi_reduction <add>, %473, %cst_272 [1] : vector<48x32xf32> to vector<48xf32>
    %475 = vector.shape_cast %474 : vector<48xf32> to vector<48x1xf32>
    %cst_273 = arith.constant 3.200000e+01 : f32
    %476 = vector.broadcast %cst_273 : f32 to vector<48x1xf32>
    %477 = arith.divf %475, %476 : vector<48x1xf32>
    %cst_274 = arith.constant 9.99999997E-7 : f32
    %478 = vector.broadcast %cst_274 : f32 to vector<48x1xf32>
    %479 = arith.addf %477, %478 : vector<48x1xf32>
    %480 = math.rsqrt %479 : vector<48x1xf32>
    %481 = vector.broadcast %480 : vector<48x1xf32> to vector<48x32xf32>
    %482 = arith.mulf %472, %481 : vector<48x32xf32>
    %483 = vector.broadcast %464 : vector<1x32xf32> to vector<48x32xf32>
    %484 = arith.mulf %482, %483 : vector<48x32xf32>
    %485 = vector.broadcast %466 : vector<1x32xf32> to vector<48x32xf32>
    %486 = arith.addf %484, %485 : vector<48x32xf32>
    %487 = arith.truncf %486 : vector<48x32xf32> to vector<48x32xbf16>
    %c2_275 = arith.constant 2 : index
    %c0_276 = arith.constant 0 : index
    %c0_277 = arith.constant 0 : index
    %488 = vector.load %arg6[%c2_275, %c0_276, %c0_277] : memref<5x32x128xbf16, #tpu.memory_space<vmem>>, vector<1x32x128xbf16>
    %489 = vector.shape_cast %488 : vector<1x32x128xbf16> to vector<32x128xbf16>
    %cst_278 = arith.constant dense<0.000000e+00> : vector<48x128xf32>
    %490 = tpu.matmul %487, %489, %cst_278 {dimension_numbers = #tpu.dot_dimension_numbers<[1], [0], [0], [1], [0, 0, 1, 1], [], []>} : vector<48x32xbf16>, vector<32x128xbf16>, vector<48x128xf32> -> vector<48x128xf32>
    %c1_279 = arith.constant 1 : index
    %c0_280 = arith.constant 0 : index
    %c0_281 = arith.constant 0 : index
    %491 = vector.load %arg8[%c1_279, %c0_280, %c0_281] : memref<3x1x128xf32, #tpu.memory_space<vmem>>, vector<1x1x128xf32>
    %492 = vector.shape_cast %491 : vector<1x1x128xf32> to vector<1x128xf32>
    %493 = vector.broadcast %492 : vector<1x128xf32> to vector<48x128xf32>
    %494 = arith.addf %490, %493 : vector<48x128xf32>
    %cst_282 = arith.constant 5.000000e-01 : f32
    %495 = vector.broadcast %cst_282 : f32 to vector<48x128xf32>
    %496 = arith.mulf %495, %494 : vector<48x128xf32>
    %cst_283 = arith.constant 4.471500e-02 : f32
    %497 = vector.broadcast %cst_283 : f32 to vector<48x128xf32>
    %498 = arith.mulf %497, %494 : vector<48x128xf32>
    %499 = arith.mulf %498, %494 : vector<48x128xf32>
    %500 = arith.mulf %499, %494 : vector<48x128xf32>
    %501 = arith.addf %494, %500 : vector<48x128xf32>
    %cst_284 = arith.constant 0.797884583 : f32
    %502 = vector.broadcast %cst_284 : f32 to vector<48x128xf32>
    %503 = arith.mulf %502, %501 : vector<48x128xf32>
    %504 = math.tanh %503 : vector<48x128xf32>
    %cst_285 = arith.constant 1.000000e+00 : f32
    %505 = vector.broadcast %cst_285 : f32 to vector<48x128xf32>
    %506 = arith.addf %505, %504 : vector<48x128xf32>
    %507 = arith.mulf %496, %506 : vector<48x128xf32>
    %508 = arith.truncf %507 : vector<48x128xf32> to vector<48x128xbf16>
    %c3_286 = arith.constant 3 : index
    %c0_287 = arith.constant 0 : index
    %c0_288 = arith.constant 0 : index
    %509 = vector.load %arg6[%c3_286, %c0_287, %c0_288] : memref<5x32x128xbf16, #tpu.memory_space<vmem>>, vector<1x32x128xbf16>
    %510 = vector.shape_cast %509 : vector<1x32x128xbf16> to vector<32x128xbf16>
    %cst_289 = arith.constant dense<0.000000e+00> : vector<48x32xf32>
    %511 = tpu.matmul %508, %510, %cst_289 {dimension_numbers = #tpu.dot_dimension_numbers<[1], [1], [0], [0], [0, 0, 1, 0], [], []>} : vector<48x128xbf16>, vector<32x128xbf16>, vector<48x32xf32> -> vector<48x32xf32>
    %c11_290 = arith.constant 11 : index
    %c0_291 = arith.constant 0 : index
    %c0_292 = arith.constant 0 : index
    %512 = vector.load %arg7[%c11_290, %c0_291, %c0_292] : memref<14x1x32xf32, #tpu.memory_space<vmem>>, vector<1x1x32xf32>
    %513 = vector.shape_cast %512 : vector<1x1x32xf32> to vector<1x32xf32>
    %514 = vector.broadcast %513 : vector<1x32xf32> to vector<48x32xf32>
    %515 = arith.addf %511, %514 : vector<48x32xf32>
    %516 = arith.addf %462, %515 : vector<48x32xf32>
    %517 = vector.extract_strided_slice %516 {offsets = [0, 0], sizes = [1, 32], strides = [1, 1]} : vector<48x32xf32> to vector<1x32xf32>
    %518 = vector.extract_strided_slice %516 {offsets = [24, 0], sizes = [1, 32], strides = [1, 1]} : vector<48x32xf32> to vector<1x32xf32>
    %519 = tpu.concatenate %517, %518 in 0 : vector<1x32xf32>, vector<1x32xf32> -> vector<2x32xf32>
    %c12_293 = arith.constant 12 : index
    %c0_294 = arith.constant 0 : index
    %c0_295 = arith.constant 0 : index
    %520 = vector.load %arg7[%c12_293, %c0_294, %c0_295] : memref<14x1x32xf32, #tpu.memory_space<vmem>>, vector<1x1x32xf32>
    %521 = vector.shape_cast %520 : vector<1x1x32xf32> to vector<1x32xf32>
    %c13_296 = arith.constant 13 : index
    %c0_297 = arith.constant 0 : index
    %c0_298 = arith.constant 0 : index
    %522 = vector.load %arg7[%c13_296, %c0_297, %c0_298] : memref<14x1x32xf32, #tpu.memory_space<vmem>>, vector<1x1x32xf32>
    %523 = vector.shape_cast %522 : vector<1x1x32xf32> to vector<1x32xf32>
    %cst_299 = arith.constant dense<0.000000e+00> : vector<2xf32>
    %524 = vector.multi_reduction <add>, %519, %cst_299 [1] : vector<2x32xf32> to vector<2xf32>
    %525 = vector.shape_cast %524 : vector<2xf32> to vector<2x1xf32>
    %cst_300 = arith.constant 3.200000e+01 : f32
    %526 = vector.broadcast %cst_300 : f32 to vector<2x1xf32>
    %527 = arith.divf %525, %526 : vector<2x1xf32>
    %528 = vector.broadcast %527 : vector<2x1xf32> to vector<2x32xf32>
    %529 = arith.subf %519, %528 : vector<2x32xf32>
    %530 = arith.mulf %529, %529 : vector<2x32xf32>
    %cst_301 = arith.constant dense<0.000000e+00> : vector<2xf32>
    %531 = vector.multi_reduction <add>, %530, %cst_301 [1] : vector<2x32xf32> to vector<2xf32>
    %532 = vector.shape_cast %531 : vector<2xf32> to vector<2x1xf32>
    %cst_302 = arith.constant 3.200000e+01 : f32
    %533 = vector.broadcast %cst_302 : f32 to vector<2x1xf32>
    %534 = arith.divf %532, %533 : vector<2x1xf32>
    %cst_303 = arith.constant 9.99999997E-7 : f32
    %535 = vector.broadcast %cst_303 : f32 to vector<2x1xf32>
    %536 = arith.addf %534, %535 : vector<2x1xf32>
    %537 = math.rsqrt %536 : vector<2x1xf32>
    %538 = vector.broadcast %537 : vector<2x1xf32> to vector<2x32xf32>
    %539 = arith.mulf %529, %538 : vector<2x32xf32>
    %540 = vector.broadcast %521 : vector<1x32xf32> to vector<2x32xf32>
    %541 = arith.mulf %539, %540 : vector<2x32xf32>
    %542 = vector.broadcast %523 : vector<1x32xf32> to vector<2x32xf32>
    %543 = arith.addf %541, %542 : vector<2x32xf32>
    %544 = arith.truncf %543 : vector<2x32xf32> to vector<2x32xbf16>
    %c4_304 = arith.constant 4 : index
    %c0_305 = arith.constant 0 : index
    %c0_306 = arith.constant 0 : index
    %545 = vector.load %arg6[%c4_304, %c0_305, %c0_306] : memref<5x32x128xbf16, #tpu.memory_space<vmem>>, vector<1x32x128xbf16>
    %546 = vector.shape_cast %545 : vector<1x32x128xbf16> to vector<32x128xbf16>
    %cst_307 = arith.constant dense<0.000000e+00> : vector<2x128xf32>
    %547 = tpu.matmul %544, %546, %cst_307 {dimension_numbers = #tpu.dot_dimension_numbers<[1], [0], [0], [1], [0, 0, 1, 1], [], []>} : vector<2x32xbf16>, vector<32x128xbf16>, vector<2x128xf32> -> vector<2x128xf32>
    %c2_308 = arith.constant 2 : index
    %c0_309 = arith.constant 0 : index
    %c0_310 = arith.constant 0 : index
    %548 = vector.load %arg8[%c2_308, %c0_309, %c0_310] : memref<3x1x128xf32, #tpu.memory_space<vmem>>, vector<1x1x128xf32>
    %549 = vector.shape_cast %548 : vector<1x1x128xf32> to vector<1x128xf32>
    %550 = vector.broadcast %549 : vector<1x128xf32> to vector<2x128xf32>
    %551 = arith.addf %547, %550 : vector<2x128xf32>
    %c0_311 = arith.constant 0 : index
    %c0_312 = arith.constant 0 : index
    %c0_313 = arith.constant 0 : index
    %552 = vector.load %arg9[%c0_311, %c0_312, %c0_313] : memref<1x2x128xf32, #tpu.memory_space<vmem>>, vector<1x2x128xf32>
    %553 = vector.shape_cast %552 : vector<1x2x128xf32> to vector<2x128xf32>
    %554 = vector.shape_cast %551 : vector<2x128xf32> to vector<1x2x128xf32>
    tpu.vector_store %arg9[%c0_311, %c0_312, %c0_313], %554 {strides = array<i32>} : memref<1x2x128xf32, #tpu.memory_space<vmem>>, vector<1x2x128xf32>,
    return
  }
  func.func @transform_0(%arg0: i32) -> (i32, i32) {
    %c0_i32 = arith.constant 0 : i32
    %c0_i32_0 = arith.constant 0 : i32
    return %arg0, %c0_i32 : i32, i32
  }
  func.func @transform_1(%arg0: i32) -> (i32, i32) {
    %c0_i32 = arith.constant 0 : i32
    %c0_i32_0 = arith.constant 0 : i32
    %c0_i32_1 = arith.constant 0 : i32
    return %c0_i32, %c0_i32_0 : i32, i32
  }
  func.func @transform_2(%arg0: i32) -> (i32, i32) {
    %c0_i32 = arith.constant 0 : i32
    %c0_i32_0 = arith.constant 0 : i32
    %c0_i32_1 = arith.constant 0 : i32
    return %c0_i32, %c0_i32_0 : i32, i32
  }
  func.func @transform_3(%arg0: i32) -> (i32, i32, i32) {
    %c0_i32 = arith.constant 0 : i32
    %c0_i32_0 = arith.constant 0 : i32
    %c0_i32_1 = arith.constant 0 : i32
    %c0_i32_2 = arith.constant 0 : i32
    return %c0_i32, %c0_i32_0, %c0_i32_1 : i32, i32, i32
  }
  func.func @transform_4(%arg0: i32) -> (i32, i32, i32) {
    %c0_i32 = arith.constant 0 : i32
    %c0_i32_0 = arith.constant 0 : i32
    %c0_i32_1 = arith.constant 0 : i32
    %c0_i32_2 = arith.constant 0 : i32
    return %c0_i32, %c0_i32_0, %c0_i32_1 : i32, i32, i32
  }
  func.func @transform_5(%arg0: i32) -> (i32, i32, i32) {
    %c0_i32 = arith.constant 0 : i32
    %c0_i32_0 = arith.constant 0 : i32
    %c0_i32_1 = arith.constant 0 : i32
    %c0_i32_2 = arith.constant 0 : i32
    return %c0_i32, %c0_i32_0, %c0_i32_1 : i32, i32, i32
  }
  func.func @transform_6(%arg0: i32) -> (i32, i32, i32) {
    %c0_i32 = arith.constant 0 : i32
    %c0_i32_0 = arith.constant 0 : i32
    %c0_i32_1 = arith.constant 0 : i32
    %c0_i32_2 = arith.constant 0 : i32
    return %c0_i32, %c0_i32_0, %c0_i32_1 : i32, i32, i32
  }
  func.func @transform_7(%arg0: i32) -> (i32, i32, i32) {
    %c0_i32 = arith.constant 0 : i32
    %c0_i32_0 = arith.constant 0 : i32
    %c0_i32_1 = arith.constant 0 : i32
    %c0_i32_2 = arith.constant 0 : i32
    return %c0_i32, %c0_i32_0, %c0_i32_1 : i32, i32, i32
  }
  func.func @transform_8(%arg0: i32) -> (i32, i32, i32) {
    %c0_i32 = arith.constant 0 : i32
    %c0_i32_0 = arith.constant 0 : i32
    %c0_i32_1 = arith.constant 0 : i32
    return %arg0, %c0_i32, %c0_i32_0 : i32, i32, i32
  }
}

</mosaic_0001>

<bundles_post_ra>
// kernel: forward.1
= control target key start
LH: loop header
LB: loop body
LE: loop exit
PB: predicated region body
PF: predicated region fallthrough
CT: control target
= control target key end

     0   :  { %v7698_v3 = vmov 0.0   ;;  %vm7699_vm0 = vmmov 0   ;;  %vm67_vm1 = vcmask 392192   ;;  %s9664_s0 = inlined_call_operand.vmem [shape: bf16[48,48], index: 0, kind: input, shape index: {}]   ;;  %s9665_s1 = inlined_call_operand.vmem [shape: f32[48,48], index: 1, kind: input, shape index: {}]   ;;  %s9666_s2 = inlined_call_operand.vmem [shape: f32[96,32], index: 2, kind: input, shape index: {}]   ;;  %s9667_s3 = inlined_call_operand.vmem [shape: bf16[32,32,8], index: 3, kind: input, shape index: {}]   ;;  %s9668_s4 = inlined_call_operand.vmem [shape: f32[24,1,8], index: 4, kind: input, shape index: {}]   ;;  %s9669_s5 = inlined_call_operand.vmem [shape: bf16[5,32,128], index: 5, kind: input, shape index: {}]   ;;  %s9670_s6 = inlined_call_operand.vmem [shape: f32[14,1,32], index: 6, kind: input, shape index: {}]   ;;  %s9671_s7 = inlined_call_operand.vmem [shape: f32[3,1,128], index: 7, kind: input, shape index: {}]   ;;  %s9672_s8 = inlined_call_operand.hbm [shape: f32[1,2,128], index: 8, kind: output, shape index: {}]  }
   0x1   :  { %v31_v0 = vld [vmem:[%s9666_s2] sm:$0xff]  ;;  %v32_v1 = vld [vmem:[%s9666_s2 + $0x8] sm:$0xff]  ;;  %v33_v2 = vld [vmem:[%s9666_s2 + $0x10] sm:$0xff]  ;;  %6416 = vmatprep.subr.bf16.mxu0 %v7698_v3  ;;  %6422 = vmatprep.mubr.msk.bf16.mxu0 %vm7699_vm0, %v7698_v3 }
   0x2   :  { %v37_v4 = vpack.c.bf16 %v32_v1, %v31_v0  ;;  %v34_v5 = vld [vmem:[%s9666_s2 + $0x18] sm:$0xff]  ;;  %6434 = vmatprep.subr.bf16.mxu1 %v7698_v3  ;;  %6438 = vmatprep.mubr.msk.bf16.mxu1 %vm7699_vm0, %v7698_v3  ;;  %v35_v7 = vld [vmem:[%s9666_s2 + $0x20] sm:$0xff]  ;;  %v36_v8 = vld [vmem:[%s9666_s2 + $0x28] sm:$0xff] }
   0x3   :  { %v38_v6 = vpack.c.bf16 %v34_v5, %v33_v2  ;;  %v39_v9 = vpack.c.bf16 %v36_v8, %v35_v7  ;;  %v7313_v10 = vld [vmem:[%s9664_s0] sm:$0xff]   ;;  %v7314_v11 = vld [vmem:[%s9664_s0 + $0x8] sm:$0xff]   ;;  %v7315_v12 = vld [vmem:[%s9664_s0 + $0x10] sm:$0xff]  }
   0x4   :  { %6417 = vmatpush3.bf16.msra.mxu0 %v37_v4 }
   0x5   :  { %6418 = vmatprep.subr.bf16.mxu0 %v7698_v3 }
   0x8   :  { %6419 = vmatpush3.bf16.msra.mxu0 %v38_v6 }
   0x9   :  { %6420 = vmatprep.subr.bf16.mxu0 %v7698_v3 }
   0xc   :  { %6421 = vmatpush3.bf16.msra.mxu0 %v39_v9 }
   0xd   :  { %6466 = vmatprep.subr.bf16.mxu0 %v7698_v3 }
   0xf   :  { %6423 = vmatmul.mubr.msk.bf16.vlgmr.msra.gmra.mrb[0].mxu0 %vm67_vm1, %v7313_v10 }
  0x10   :  { %6426 = vmatprep.mubr.msk.bf16.mxu0 %vm7699_vm0, %v7698_v3 }
  0x17   :  { %6427 = vmatmul.mubr.msk.bf16.gmra.mrb[4].mxu0 %vm67_vm1, %v7314_v11 }
  0x18   :  { %6430 = vmatprep.mubr.msk.bf16.mxu0 %vm7699_vm0, %v7698_v3 }
  0x1f   :  { %6431 = vmatmul.mubr.msk.bf16.gmra.mrb[8].mxu0 %vm67_vm1, %v7315_v12 }
  0x20   :  { %6470 = vmatprep.mubr.msk.bf16.mxu0 %vm7699_vm0, %v7698_v3 }
  0x21   :  { %13 = vsyncpa [#allocation3], 0  ;;  %v46_v13 = vld [vmem:[%s9666_s2 + $0x30] sm:$0xff]  ;;  %v47_v15 = vld [vmem:[%s9666_s2 + $0x38] sm:$0xff]  ;;  %vm143_vm2 = vcmask 261120   ;;  %vm509_vm3 = vcmask 64512  }
  0x22   :  { %v48_v22 = vld [vmem:[%s9666_s2 + $0x40] sm:$0xff]  ;;  %v49_v25 = vld [vmem:[%s9666_s2 + $0x48] sm:$0xff]  ;;  %v50_v32 = vld [vmem:[%s9666_s2 + $0x50] sm:$0xff]  ;;  %vm5563_vm4 = vcmask 1040384   ;;  %vm5569_vm5 = vcmask 254976  }
  0x23   :  { %v51_v35 = vld [vmem:[%s9666_s2 + $0x58] sm:$0xff]  ;;  %v7316_v10 = vld [vmem:[%s9667_s3] sm:$0xff]   ;;  %v7318_v12 = vld [vmem:[%s9667_s3 + $0x8] sm:$0xff]  }
  0x24   :  { %v7317_v11 = vld [vmem:[%s9667_s3 + $0x80] sm:$0xff]   ;;  %6435 = vmatpush3.bf16.msra.mxu1 %v7316_v10 }
  0x25   :  { %6467 = vmatpush3.bf16.msra.mxu0 %v7317_v11  ;;  %6436 = vmatprep.subr.bf16.mxu1 %v7698_v3 }
  0x26   :  { %6468 = vmatprep.subr.bf16.mxu0 %v7698_v3 }
  0x28   :  { %6437 = vmatpush3.bf16.msra.mxu1 %v7318_v12 }
  0x29   :  { %6450 = vmatprep.subr.bf16.mxu1 %v7698_v3 }
  0xe2   :  { %v111_v14 = vpop.f32.mrb[0].mxu0 }
  0xe3   :  { %v7797_v16 = vadd.f32 %v111_v14, %v46_v13  ;;  %v6424_v17 = vpop.f32.mrb[1].mxu0  ;;  %v7319_v13 = vld [vmem:[%s9667_s3 + $0x88] sm:$0xff]  }
  0xe4   :  { %v114_v18 = vpop.f32.mrb[2].mxu0  ;;  %6469 = vmatpush3.bf16.msra.mxu0 %v7319_v13 }
  0xe5   :  { %v7799_v19 = vadd.f32 %v114_v18, %v47_v15  ;;  %v6425_v20 = vpop.f32.mrb[3].mxu0  ;;  %v144_v21 = vsel %vm143_vm2, %v7797_v16, 0.0  ;;  %6500 = vmatprep.subr.bf16.mxu0 %v7698_v3 }
  0xe6   :  { %145 = vadd.xlane.f32.xlu0 %v144_v21 }
  0xe7   :  { %v147_v23 = vsel %vm143_vm2, %v7799_v19, 0.0 }
  0xea   :  { %148 = vadd.xlane.f32.xlu0 %v147_v23  ;;  %v119_v24 = vpop.f32.mrb[4].mxu0 }
  0xeb   :  { %v7811_v26 = vadd.f32 %v119_v24, %v48_v22  ;;  %v6428_v27 = vpop.f32.mrb[5].mxu0 }
  0xec   :  { %v122_v28 = vpop.f32.mrb[6].mxu0 }
  0xed   :  { %v7813_v29 = vadd.f32 %v122_v28, %v49_v25  ;;  %v6429_v30 = vpop.f32.mrb[7].mxu0  ;;  %v150_v31 = vsel %vm143_vm2, %v7811_v26, 0.0 }
  0xee   :  { %151 = vadd.xlane.f32.xlu1 %v150_v31 }
  0xef   :  { %v153_v33 = vsel %vm143_vm2, %v7813_v29, 0.0 }
  0xf2   :  { %154 = vadd.xlane.f32.xlu1 %v153_v33  ;;  %v127_v34 = vpop.f32.mrb[8].mxu0  ;;  %v5688_v33 = vld [vmem:[%s9670_s6] ss:$0 sm:$0xff] }
  0xf3   :  { %v7825_v36 = vadd.f32 %v127_v34, %v50_v32  ;;  %v6432_v37 = vpop.f32.mrb[9].mxu0 }
  0xf4   :  { %v130_v38 = vpop.f32.mrb[10].mxu0 }
  0xf5   :  { %v7827_v39 = vadd.f32 %v130_v38, %v51_v35  ;;  %v6433_v40 = vpop.f32.mrb[11].mxu0  ;;  %v156_v41 = vsel %vm143_vm2, %v7825_v36, 0.0 }
  0xf6   :  { %157 = vadd.xlane.f32.xlu0 %v156_v41 }
  0xf7   :  { %v159_v42 = vsel %vm143_vm2, %v7827_v39, 0.0 }
  0xf8   :  { %160 = vadd.xlane.f32.xlu1 %v159_v42 }
 0x173   :  { %v146_v43 = vpop.xlane.xlu0 %145 }
 0x174   :  { %v163_v44 = vmul.f32 0.03125, %v146_v43  ;;  %v5689_v43 = vld [vmem:[%s9670_s6 + $0x1] ss:$0 sm:$0xff] }
 0x176   :  { %v169_v45 = vsub.f32 %v7797_v16, %v163_v44 }
 0x177   :  { %v149_v46 = vpop.xlane.xlu0 %148 }
 0x178   :  { %v164_v47 = vmul.f32 0.03125, %v149_v46  ;;  %v175_v48 = vmul.f32 %v169_v45, %v169_v45 }
 0x17a   :  { %v7835_v49 = vsub.f32 %v7799_v19, %v164_v47  ;;  %v181_v50 = vsel %vm143_vm2, %v175_v48, 0.0 }
 0x17b   :  { %v152_v51 = vpop.xlane.xlu1 %151  ;;  %182 = vadd.xlane.f32.xlu0 %v181_v50 }
 0x17c   :  { %v165_v52 = vmul.f32 0.03125, %v152_v51  ;;  %v176_v53 = vmul.f32 %v7835_v49, %v7835_v49  ;;  %v7320_v51 = vld [vmem:[%s9667_s3 + $0x40] sm:$0xff]  }
 0x17e   :  { %v7841_v54 = vsub.f32 %v7811_v26, %v165_v52  ;;  %v184_v55 = vsel %vm143_vm2, %v176_v53, 0.0 }
 0x17f   :  { %v155_v56 = vpop.xlane.xlu1 %154  ;;  %185 = vadd.xlane.f32.xlu1 %v184_v55 }
 0x180   :  { %v166_v57 = vmul.f32 0.03125, %v155_v56  ;;  %v177_v58 = vmul.f32 %v7841_v54, %v7841_v54 }
 0x182   :  { %v7847_v59 = vsub.f32 %v7813_v29, %v166_v57  ;;  %v187_v60 = vsel %vm143_vm2, %v177_v58, 0.0 }
 0x183   :  { %188 = vadd.xlane.f32.xlu0 %v187_v60  ;;  %v158_v61 = vpop.xlane.xlu0 %157 }
 0x184   :  { %v167_v62 = vmul.f32 0.03125, %v158_v61  ;;  %v178_v63 = vmul.f32 %v7847_v59, %v7847_v59 }
 0x185   :  { %v161_v0 = vpop.xlane.xlu1 %160 }
 0x186   :  { %v7853_v1 = vsub.f32 %v7825_v36, %v167_v62  ;;  %v168_v2 = vmul.f32 0.03125, %v161_v0  ;;  %v190_v4 = vsel %vm143_vm2, %v178_v63, 0.0 }
 0x187   :  { %191 = vadd.xlane.f32.xlu1 %v190_v4 }
 0x188   :  { %v7857_v5 = vsub.f32 %v7827_v39, %v168_v2  ;;  %v179_v6 = vmul.f32 %v7853_v1, %v7853_v1 }
 0x18a   :  { %v193_v7 = vsel %vm143_vm2, %v179_v6, 0.0  ;;  %v180_v8 = vmul.f32 %v7857_v5, %v7857_v5 }
 0x18b   :  { %194 = vadd.xlane.f32.xlu0 %v193_v7 }
 0x18c   :  { %v196_v9 = vsel %vm143_vm2, %v180_v8, 0.0  ;;  %v5712_v8 = vld [vmem:[%s9668_s4 + $0x8] ss:$0 sm:$0xff] }
 0x18d   :  { %197 = vadd.xlane.f32.xlu1 %v196_v9 }
 0x208   :  { %v183_v14 = vpop.xlane.xlu0 %182 }
 0x209   :  { %v199_v15 = vmul.f32 0.03125, %v183_v14 }
 0x20b   :  { %v205_v17 = vadd.f32 1e-06, %v199_v15 }
 0x20c   :  { %v186_v18 = vpop.xlane.xlu1 %185 }
 0x20d   :  { %7390 = vrsqrt.f32 %v205_v17  ;;  %v200_v20 = vmul.f32 0.03125, %v186_v18 }
 0x20f   :  { %v206_v21 = vadd.f32 1e-06, %v200_v20 }
 0x210   :  { %v189_v22 = vpop.xlane.xlu0 %188 }
 0x211   :  { %7392 = vrsqrt.f32 %v206_v21  ;;  %v201_v23 = vmul.f32 0.03125, %v189_v22 }
 0x213   :  { %v207_v24 = vadd.f32 1e-06, %v201_v23 }
 0x214   :  { %v192_v25 = vpop.xlane.xlu1 %191 }
 0x215   :  { %7394 = vrsqrt.f32 %v207_v24  ;;  %v202_v27 = vmul.f32 0.03125, %v192_v25 }
 0x217   :  { %v7391_v28 = vpop.eup %7390  ;;  %v208_v30 = vadd.f32 1e-06, %v202_v27 }
 0x218   :  { %v217_v31 = vmul.f32 %v7391_v28, %v169_v45  ;;  %v195_v32 = vpop.xlane.xlu0 %194 }
 0x219   :  { %7396 = vrsqrt.f32 %v208_v30  ;;  %v203_v34 = vmul.f32 0.03125, %v195_v32 }
 0x21a   :  { %v198_v35 = vpop.xlane.xlu1 %197  ;;  %v229_v41 = vmul.f32 %v5688_v33, %v217_v31 }
 0x21b   :  { %v7393_v37 = vpop.eup %7392  ;;  %v209_v38 = vadd.f32 1e-06, %v203_v34  ;;  %v204_v40 = vmul.f32 0.03125, %v198_v35 }
 0x21c   :  { %v218_v42 = vmul.f32 %v7393_v37, %v7835_v49  ;;  %v241_v47 = vadd.f32 %v5689_v43, %v229_v41 }
 0x21d   :  { %7398 = vrsqrt.f32 %v209_v38  ;;  %v210_v44 = vadd.f32 1e-06, %v204_v40 }
 0x21e   :  { %v230_v45 = vmul.f32 %v5688_v33, %v218_v42 }
 0x21f   :  { %v7395_v46 = vpop.eup %7394  ;;  %7400 = vrsqrt.f32 %v210_v44 }
 0x220   :  { %v242_v48 = vadd.f32 %v5689_v43, %v230_v45  ;;  %v219_v50 = vmul.f32 %v7395_v46, %v7841_v54  ;;  %v7321_v54 = vld [vmem:[%s9667_s3 + $0x48] sm:$0xff]  }
 0x222   :  { %v7892_v52 = vpack.c.bf16 %v242_v48, %v241_v47  ;;  %v231_v53 = vmul.f32 %v5688_v33, %v219_v50 }
 0x223   :  { %v7397_v49 = vpop.eup %7396 }
 0x224   :  { %v220_v55 = vmul.f32 %v7397_v49, %v7847_v59  ;;  %6439 = vmatmul.mubr.msk.bf16.vlgmr.msra.gmra.mrb[0].mxu1 %vm143_vm2, %v7892_v52  ;;  %6471 = vmatmul.mubr.msk.bf16.vlgmr.msra.gmra.mrb[12].mxu0 %vm143_vm2, %v7892_v52  ;;  %v243_v58 = vadd.f32 %v5689_v43, %v231_v53 }
 0x225   :  { %6451 = vmatpush3.bf16.msra.mxu1 %v7320_v51  ;;  %6442 = vmatprep.mubr.msk.bf16.mxu1 %vm7699_vm0, %v7698_v3 }
 0x226   :  { %v232_v56 = vmul.f32 %v5688_v33, %v220_v55  ;;  %6474 = vmatprep.mubr.msk.bf16.mxu0 %vm7699_vm0, %v7698_v3  ;;  %6452 = vmatprep.subr.bf16.mxu1 %v7698_v3 }
 0x227   :  { %v7399_v57 = vpop.eup %7398 }
 0x228   :  { %v244_v59 = vadd.f32 %v5689_v43, %v232_v56  ;;  %v221_v60 = vmul.f32 %v7399_v57, %v7853_v1  ;;  %v5701_v57 = vld [vmem:[%s9668_s4 + $0x4] ss:$0 sm:$0xff] }
 0x229   :  { %v7401_v61 = vpop.eup %7400  ;;  %6453 = vmatpush3.bf16.msra.mxu1 %v7321_v54 }
 0x22a   :  { %v7908_v62 = vpack.c.bf16 %v244_v59, %v243_v58  ;;  %v222_v63 = vmul.f32 %v7401_v61, %v7857_v5  ;;  %6482 = vmatprep.subr.bf16.mxu1 %v7698_v3  ;;  %v233_v0 = vmul.f32 %v5688_v33, %v221_v60  ;;  %v5690_v5 = vld [vmem:[%s9668_s4] ss:$0 sm:$0xff] }
 0x22c   :  { %v234_v2 = vmul.f32 %v5688_v33, %v222_v63  ;;  %6443 = vmatmul.mubr.msk.bf16.gmra.mrb[4].mxu1 %vm143_vm2, %v7908_v62  ;;  %6475 = vmatmul.mubr.msk.bf16.gmra.mrb[16].mxu0 %vm143_vm2, %v7908_v62  ;;  %v245_v4 = vadd.f32 %v5689_v43, %v233_v0 }
 0x22d   :  { %6446 = vmatprep.mubr.msk.bf16.mxu1 %vm7699_vm0, %v7698_v3  ;;  %6478 = vmatprep.mubr.msk.bf16.mxu0 %vm7699_vm0, %v7698_v3 }
 0x22e   :  { %v246_v1 = vadd.f32 %v5689_v43, %v234_v2 }
 0x230   :  { %v7920_v6 = vpack.c.bf16 %v246_v1, %v245_v4 }
 0x234   :  { %6447 = vmatmul.mubr.msk.bf16.gmra.mrb[8].mxu1 %vm143_vm2, %v7920_v6  ;;  %6479 = vmatmul.mubr.msk.bf16.gmra.mrb[20].mxu0 %vm143_vm2, %v7920_v6 }
 0x235   :  { %6454 = vmatprep.mubr.msk.bf16.mxu1 %vm7699_vm0, %v7698_v3  ;;  %6506 = vmatprep.mubr.msk.bf16.mxu0 %vm7699_vm0, %v7698_v3 }
 0x23c   :  { %6455 = vmatmul.mubr.msk.bf16.vlgmr.msra.gmra.mrb[12].mxu1 %vm143_vm2, %v7892_v52 }
 0x23d   :  { %6458 = vmatprep.mubr.msk.bf16.mxu1 %vm7699_vm0, %v7698_v3 }
 0x244   :  { %6459 = vmatmul.mubr.msk.bf16.gmra.mrb[16].mxu1 %vm143_vm2, %v7908_v62 }
 0x245   :  { %6462 = vmatprep.mubr.msk.bf16.mxu1 %vm7699_vm0, %v7698_v3 }
 0x24c   :  { %6463 = vmatmul.mubr.msk.bf16.gmra.mrb[20].mxu1 %vm143_vm2, %v7920_v6 }
 0x24d   :  { %6488 = vmatprep.mubr.msk.bf16.mxu1 %vm7699_vm0, %v7698_v3 }
 0x2f7   :  { %v316_v7 = vpop.f32.mrb[0].mxu1  ;;  %v480_v9 = vpop.f32.mrb[12].mxu0 }
 0x2f8   :  { %v6440_v10 = vpop.f32.mrb[1].mxu1  ;;  %v6472_v11 = vpop.f32.mrb[13].mxu0  ;;  %v7948_v14 = vadd.f32 %v5690_v5, %v316_v7  ;;  %v481_v15 = vadd.f32 %v5712_v8, %v480_v9 }
 0x2f9   :  { %v319_v12 = vpop.f32.mrb[2].mxu1  ;;  %v483_v13 = vpop.f32.mrb[14].mxu0 }
 0x2fa   :  { %v7950_v17 = vadd.f32 %v5690_v5, %v319_v12  ;;  %v484_v18 = vadd.f32 %v5712_v8, %v483_v13  ;;  %v6441_v20 = vpop.f32.mrb[3].mxu1  ;;  %v6473_v21 = vpop.f32.mrb[15].mxu0 }
 0x2fc   :  { %v503_v22 = vpack.c.bf16 %v7950_v17, %v7948_v14  ;;  %v654_v23 = vpack.c.bf16 %v484_v18, %v481_v15  ;;  %v7324_v14 = vld [vmem:[%s9667_s3 + $0x90] sm:$0xff]   ;;  %v7325_v17 = vld [vmem:[%s9667_s3 + $0x98] sm:$0xff]  }
 0x2fe   :  { %6501 = vmatpush3.bf16.msra.mxu0 %v654_v23 }
 0x2ff   :  { %v324_v24 = vpop.f32.mrb[4].mxu1  ;;  %v488_v25 = vpop.f32.mrb[16].mxu0  ;;  %6502 = vmatprep.subr.bf16.mxu0 %v7698_v3 }
 0x300   :  { %v6444_v27 = vpop.f32.mrb[5].mxu1  ;;  %v6476_v28 = vpop.f32.mrb[17].mxu0  ;;  %v7955_v32 = vadd.f32 %v5690_v5, %v324_v24  ;;  %v489_v33 = vadd.f32 %v5712_v8, %v488_v25 }
 0x301   :  { %v327_v30 = vpop.f32.mrb[6].mxu1  ;;  %v491_v31 = vpop.f32.mrb[18].mxu0  ;;  %v7322_v27 = vld [vmem:[%s9667_s3 + $0x10] sm:$0xff]   ;;  %v7323_v28 = vld [vmem:[%s9667_s3 + $0x18] sm:$0xff]  }
 0x302   :  { %v7957_v34 = vadd.f32 %v5690_v5, %v327_v30  ;;  %v492_v35 = vadd.f32 %v5712_v8, %v491_v31  ;;  %v6445_v37 = vpop.f32.mrb[7].mxu1  ;;  %v6477_v38 = vpop.f32.mrb[19].mxu0  ;;  %v8032_v31 = vld [vmem:[%s9665_s1 + $0x8] sm:$0xff] }
 0x304   :  { %v504_v40 = vpack.c.bf16 %v7957_v34, %v7955_v32  ;;  %v655_v41 = vpack.c.bf16 %v492_v35, %v489_v33 }
 0x306   :  { %6503 = vmatpush3.bf16.msra.mxu0 %v655_v41  ;;  %v8047_v41 = vld [vmem:[%s9665_s1 + $0x10] sm:$0xff] }
 0x307   :  { %v332_v42 = vpop.f32.mrb[8].mxu1  ;;  %v496_v43 = vpop.f32.mrb[20].mxu0  ;;  %6504 = vmatprep.subr.bf16.mxu0 %v7698_v3 }
 0x308   :  { %v6448_v44 = vpop.f32.mrb[9].mxu1  ;;  %v6480_v45 = vpop.f32.mrb[21].mxu0  ;;  %v333_v48 = vadd.f32 %v5690_v5, %v332_v42  ;;  %v497_v50 = vadd.f32 %v5712_v8, %v496_v43  ;;  %v8052_v43 = vld [vmem:[%s9665_s1 + $0x18] sm:$0xff] }
 0x309   :  { %v335_v46 = vpop.f32.mrb[10].mxu1  ;;  %v499_v47 = vpop.f32.mrb[22].mxu0 }
 0x30a   :  { %v336_v51 = vadd.f32 %v5690_v5, %v335_v46  ;;  %v500_v49 = vadd.f32 %v5712_v8, %v499_v47  ;;  %v6449_v53 = vpop.f32.mrb[11].mxu1  ;;  %v6481_v55 = vpop.f32.mrb[23].mxu0 }
 0x30b   :  { %v8072_v55 = vld [vmem:[%s9665_s1 + $0x28] sm:$0xff] }
 0x30c   :  { %v505_v54 = vpack.c.bf16 %v336_v51, %v333_v48  ;;  %v656_v56 = vpack.c.bf16 %v500_v49, %v497_v50  ;;  %v8067_v49 = vld [vmem:[%s9665_s1 + $0x20] sm:$0xff] }
 0x30e   :  { %6505 = vmatpush3.bf16.msra.mxu0 %v656_v56 }
 0x30f   :  { %v398_v58 = vpop.f32.mrb[12].mxu1  ;;  %6534 = vmatprep.subr.bf16.mxu0 %v7698_v3 }
 0x310   :  { %v6456_v59 = vpop.f32.mrb[13].mxu1  ;;  %v399_v61 = vadd.f32 %v5701_v57, %v398_v58 }
 0x311   :  { %v401_v60 = vpop.f32.mrb[14].mxu1 }
 0x312   :  { %v402_v63 = vadd.f32 %v5701_v57, %v401_v60  ;;  %v6457_v0 = vpop.f32.mrb[15].mxu1 }
 0x314   :  { %v506_v2 = vpack.c.bf16 %v402_v63, %v399_v61  ;;  %v5733_v63 = vld [vmem:[%s9668_s4 + $0x1] ss:$0 sm:$0xff] }
 0x316   :  { %v520_v1 = vsel %vm509_vm3, %v506_v2, 0 }
 0x317   :  { %v406_v4 = vpop.f32.mrb[16].mxu1  ;;  %6483 = vmatpush3.bf16.xpose.msra.mxu1 %v520_v1 }
 0x318   :  { %v6460_v5 = vpop.f32.mrb[17].mxu1  ;;  %6484 = vmatprep.subr.bf16.mxu1 %v7698_v3  ;;  %v407_v8 = vadd.f32 %v5701_v57, %v406_v4 }
 0x319   :  { %v409_v7 = vpop.f32.mrb[18].mxu1 }
 0x31a   :  { %v410_v9 = vadd.f32 %v5701_v57, %v409_v7  ;;  %v6461_v10 = vpop.f32.mrb[19].mxu1 }
 0x31c   :  { %v507_v11 = vpack.c.bf16 %v410_v9, %v407_v8 }
 0x31e   :  { %v523_v12 = vsel %vm509_vm3, %v507_v11, 0 }
 0x31f   :  { %v414_v13 = vpop.f32.mrb[20].mxu1  ;;  %6485 = vmatpush3.bf16.xpose.msra.mxu1 %v523_v12 }
 0x320   :  { %v6464_v15 = vpop.f32.mrb[21].mxu1  ;;  %6486 = vmatprep.subr.bf16.mxu1 %v7698_v3  ;;  %v415_v20 = vadd.f32 %v5701_v57, %v414_v13 }
 0x321   :  { %v417_v18 = vpop.f32.mrb[22].mxu1 }
 0x322   :  { %v418_v21 = vadd.f32 %v5701_v57, %v417_v18  ;;  %v6465_v23 = vpop.f32.mrb[23].mxu1 }
 0x324   :  { %v508_v24 = vpack.c.bf16 %v418_v21, %v415_v20 }
 0x326   :  { %v526_v25 = vsel %vm509_vm3, %v508_v24, 0 }
 0x327   :  { %6487 = vmatpush3.bf16.xpose.msra.mxu1 %v526_v25 }
 0x328   :  { %6518 = vmatprep.subr.bf16.mxu1 %v7698_v3 }
 0x32e   :  { %6489 = vmatmul.mubr.msk.bf16.vlgmr.msra.gmra.mrb[24].mxu1 %vm509_vm3, %v503_v22  ;;  %v8027_v22 = vld [vmem:[%s9665_s1] sm:$0xff] }
 0x32f   :  { %6492 = vmatprep.mubr.msk.bf16.mxu1 %vm7699_vm0, %v7698_v3  ;;  %6519 = vmatpush3.bf16.msra.mxu1 %v7322_v27 }
 0x330   :  { %6520 = vmatprep.subr.bf16.mxu1 %v7698_v3 }
 0x333   :  { %6521 = vmatpush3.bf16.msra.mxu1 %v7323_v28 }
 0x334   :  { %6550 = vmatprep.subr.bf16.mxu1 %v7698_v3 }
 0x336   :  { %6493 = vmatmul.mubr.msk.bf16.gmra.mrb[28].mxu1 %vm509_vm3, %v504_v40 }
 0x337   :  { %6496 = vmatprep.mubr.msk.bf16.mxu1 %vm7699_vm0, %v7698_v3 }
 0x33e   :  { %6497 = vmatmul.mubr.msk.bf16.gmra.mrb[32].mxu1 %vm509_vm3, %v505_v54 }
 0x33f   :  { %6522 = vmatprep.mubr.msk.bf16.mxu1 %vm7699_vm0, %v7698_v3 }
 0x346   :  { %6523 = vmatmul.mubr.msk.bf16.vlgmr.msra.gmra.mrb[36].mxu1 %vm143_vm2, %v7892_v52 }
 0x347   :  { %6526 = vmatprep.mubr.msk.bf16.mxu1 %vm7699_vm0, %v7698_v3  ;;  %6551 = vmatpush3.bf16.msra.mxu1 %v7324_v14  ;;  %v5755_v14 = vld [vmem:[%s9668_s4 + $0x9] ss:$0 sm:$0xff] }
 0x348   :  { %6552 = vmatprep.subr.bf16.mxu1 %v7698_v3 }
 0x34b   :  { %6553 = vmatpush3.bf16.msra.mxu1 %v7325_v17 }
 0x34c   :  { %6584 = vmatprep.subr.bf16.mxu1 %v7698_v3 }
 0x34e   :  { %6527 = vmatmul.mubr.msk.bf16.gmra.mrb[40].mxu1 %vm143_vm2, %v7908_v62 }
 0x34f   :  { %6530 = vmatprep.mubr.msk.bf16.mxu1 %vm7699_vm0, %v7698_v3 }
 0x356   :  { %6531 = vmatmul.mubr.msk.bf16.gmra.mrb[44].mxu1 %vm143_vm2, %v7920_v6 }
 0x357   :  { %6554 = vmatprep.mubr.msk.bf16.mxu1 %vm7699_vm0, %v7698_v3 }
 0x35e   :  { %6555 = vmatmul.mubr.msk.bf16.vlgmr.msra.gmra.mrb[48].mxu1 %vm143_vm2, %v7892_v52 }
 0x35f   :  { %6558 = vmatprep.mubr.msk.bf16.mxu1 %vm7699_vm0, %v7698_v3 }
 0x366   :  { %6559 = vmatmul.mubr.msk.bf16.gmra.mrb[52].mxu1 %vm143_vm2, %v7908_v62 }
 0x367   :  { %6562 = vmatprep.mubr.msk.bf16.mxu1 %vm7699_vm0, %v7698_v3 }
 0x36e   :  { %6563 = vmatmul.mubr.msk.bf16.gmra.mrb[56].mxu1 %vm143_vm2, %v7920_v6 }
 0x36f   :  { %6590 = vmatprep.mubr.msk.bf16.mxu1 %vm7699_vm0, %v7698_v3 }
 0x401   :  { %v562_v30 = vpop.f32.mrb[24].mxu1 }
 0x402   :  { %v6490_v32 = vpop.f32.mrb[25].mxu1  ;;  %v8035_v33 = vadd.f32 %v562_v30, %v8027_v22 }
 0x403   :  { %v565_v34 = vpop.f32.mrb[26].mxu1 }
 0x404   :  { %v6491_v35 = vpop.f32.mrb[27].mxu1  ;;  %v585_v37 = vsel %vm67_vm1, %v8035_v33, -inf  ;;  %v8040_v38 = vadd.f32 %v565_v34, %v8032_v31 }
 0x405   :  { %586 = vmax.xlane.f32.xlu0 %v585_v37 }
 0x406   :  { %v588_v40 = vsel %vm67_vm1, %v8040_v38, -inf }
 0x407   :  { %589 = vmax.xlane.f32.xlu1 %v588_v40 }
 0x409   :  { %v570_v42 = vpop.f32.mrb[28].mxu1 }
 0x40a   :  { %v6494_v44 = vpop.f32.mrb[29].mxu1  ;;  %v8055_v45 = vadd.f32 %v570_v42, %v8047_v41 }
 0x40b   :  { %v573_v46 = vpop.f32.mrb[30].mxu1 }
 0x40c   :  { %v6495_v47 = vpop.f32.mrb[31].mxu1  ;;  %v591_v48 = vsel %vm67_vm1, %v8055_v45, -inf  ;;  %v8060_v50 = vadd.f32 %v573_v46, %v8052_v43 }
 0x40d   :  { %592 = vmax.xlane.f32.xlu0 %v591_v48 }
 0x40e   :  { %v594_v51 = vsel %vm67_vm1, %v8060_v50, -inf }
 0x40f   :  { %595 = vmax.xlane.f32.xlu1 %v594_v51 }
 0x411   :  { %v578_v53 = vpop.f32.mrb[32].mxu1 }
 0x412   :  { %v6498_v54 = vpop.f32.mrb[33].mxu1  ;;  %v8075_v56 = vadd.f32 %v578_v53, %v8067_v49 }
 0x413   :  { %v581_v57 = vpop.f32.mrb[34].mxu1 }
 0x414   :  { %v6499_v58 = vpop.f32.mrb[35].mxu1  ;;  %v597_v59 = vsel %vm67_vm1, %v8075_v56, -inf  ;;  %v8080_v60 = vadd.f32 %v581_v57, %v8072_v55 }
 0x415   :  { %598 = vmax.xlane.f32.xlu0 %v597_v59 }
 0x416   :  { %v600_v61 = vsel %vm67_vm1, %v8080_v60, -inf }
 0x417   :  { %601 = vmax.xlane.f32.xlu1 %v600_v61 }
 0x419   :  { %v790_v0 = vpop.f32.mrb[36].mxu1 }
 0x41a   :  { %v6524_v2 = vpop.f32.mrb[37].mxu1  ;;  %v8087_v4 = vadd.f32 %v5733_v63, %v790_v0 }
 0x41b   :  { %v793_v1 = vpop.f32.mrb[38].mxu1 }
 0x41c   :  { %v8089_v5 = vadd.f32 %v5733_v63, %v793_v1  ;;  %v6525_v7 = vpop.f32.mrb[39].mxu1 }
 0x41e   :  { %v977_v8 = vpack.c.bf16 %v8089_v5, %v8087_v4 }
 0x421   :  { %v798_v9 = vpop.f32.mrb[40].mxu1 }
 0x422   :  { %v6528_v10 = vpop.f32.mrb[41].mxu1  ;;  %v8093_v12 = vadd.f32 %v5733_v63, %v798_v9 }
 0x423   :  { %v801_v11 = vpop.f32.mrb[42].mxu1 }
 0x424   :  { %v8095_v13 = vadd.f32 %v5733_v63, %v801_v11  ;;  %v6529_v15 = vpop.f32.mrb[43].mxu1 }
 0x426   :  { %v978_v18 = vpack.c.bf16 %v8095_v13, %v8093_v12 }
 0x429   :  { %v806_v20 = vpop.f32.mrb[44].mxu1 }
 0x42a   :  { %v6532_v21 = vpop.f32.mrb[45].mxu1  ;;  %v8099_v24 = vadd.f32 %v5733_v63, %v806_v20 }
 0x42b   :  { %v809_v23 = vpop.f32.mrb[46].mxu1 }
 0x42c   :  { %v8101_v25 = vadd.f32 %v5733_v63, %v809_v23  ;;  %v6533_v27 = vpop.f32.mrb[47].mxu1 }
 0x42e   :  { %v979_v28 = vpack.c.bf16 %v8101_v25, %v8099_v24 }
 0x431   :  { %v954_v17 = vpop.f32.mrb[48].mxu1 }
 0x432   :  { %v6556_v30 = vpop.f32.mrb[49].mxu1  ;;  %v955_v34 = vadd.f32 %v5755_v14, %v954_v17 }
 0x433   :  { %v957_v32 = vpop.f32.mrb[50].mxu1 }
 0x434   :  { %v958_v35 = vadd.f32 %v5755_v14, %v957_v32  ;;  %v6557_v37 = vpop.f32.mrb[51].mxu1 }
 0x436   :  { %v1127_v40 = vpack.c.bf16 %v958_v35, %v955_v34 }
 0x438   :  { %6585 = vmatpush3.bf16.msra.mxu1 %v1127_v40 }
 0x439   :  { %v962_v42 = vpop.f32.mrb[52].mxu1  ;;  %6586 = vmatprep.subr.bf16.mxu1 %v7698_v3 }
 0x43a   :  { %v6560_v44 = vpop.f32.mrb[53].mxu1  ;;  %v963_v47 = vadd.f32 %v5755_v14, %v962_v42 }
 0x43b   :  { %v965_v46 = vpop.f32.mrb[54].mxu1 }
 0x43c   :  { %v966_v48 = vadd.f32 %v5755_v14, %v965_v46  ;;  %v6561_v51 = vpop.f32.mrb[55].mxu1 }
 0x43e   :  { %v1128_v53 = vpack.c.bf16 %v966_v48, %v963_v47 }
 0x440   :  { %6587 = vmatpush3.bf16.msra.mxu1 %v1128_v53 }
 0x441   :  { %v970_v54 = vpop.f32.mrb[56].mxu1  ;;  %6588 = vmatprep.subr.bf16.mxu1 %v7698_v3 }
 0x442   :  { %v6564_v57 = vpop.f32.mrb[57].mxu1  ;;  %v971_v59 = vadd.f32 %v5755_v14, %v970_v54 }
 0x443   :  { %v973_v58 = vpop.f32.mrb[58].mxu1 }
 0x444   :  { %v974_v61 = vadd.f32 %v5755_v14, %v973_v58  ;;  %v6565_v63 = vpop.f32.mrb[59].mxu1 }
 0x446   :  { %v1129_v0 = vpack.c.bf16 %v974_v61, %v971_v59 }
 0x448   :  { %6589 = vmatpush3.bf16.msra.mxu1 %v1129_v0  ;;  %v7326_v0 = vld [vmem:[%s9667_s3 + $0x50] sm:$0xff]  }
 0x449   :  { %6618 = vmatprep.subr.bf16.mxu1 %v7698_v3 }
 0x492   :  { %v587_v2 = vpop.xlane.xlu0 %586 }
 0x493   :  { %v603_v1 = vsub.f32 %v8035_v33, %v587_v2 }
 0x494   :  { %v590_v7 = vpop.xlane.xlu1 %589 }
 0x495   :  { %v609_v9 = vmul.f32 1.442695, %v603_v1  ;;  %v604_v10 = vsub.f32 %v8040_v38, %v590_v7 }
 0x497   :  { %7402 = vpow2.f32 %v609_v9  ;;  %v611_v11 = vmul.f32 1.442695, %v604_v10  ;;  %v7327_v10 = vld [vmem:[%s9667_s3 + $0x58] sm:$0xff]  }
 0x499   :  { %7404 = vpow2.f32 %v611_v11 }
 0x49a   :  { %v593_v15 = vpop.xlane.xlu0 %592 }
 0x49b   :  { %v605_v20 = vsub.f32 %v8055_v45, %v593_v15 }
 0x49c   :  { %v596_v21 = vpop.xlane.xlu1 %595 }
 0x49d   :  { %v613_v23 = vmul.f32 1.442695, %v605_v20  ;;  %v606_v27 = vsub.f32 %v8060_v50, %v596_v21 }
 0x49f   :  { %7406 = vpow2.f32 %v613_v23  ;;  %v615_v14 = vmul.f32 1.442695, %v606_v27 }
 0x4a1   :  { %v7403_v17 = vpop.eup %7402  ;;  %7408 = vpow2.f32 %v615_v14 }
 0x4a2   :  { %v599_v30 = vpop.xlane.xlu0 %598  ;;  %v621_v33 = vsel %vm67_vm1, %v7403_v17, 0.0 }
 0x4a3   :  { %v7405_v32 = vpop.eup %7404  ;;  %v607_v38 = vsub.f32 %v8075_v56, %v599_v30  ;;  %622 = vadd.xlane.f32.xlu0 %v621_v33 }
 0x4a4   :  { %v602_v34 = vpop.xlane.xlu1 %601  ;;  %v624_v35 = vsel %vm67_vm1, %v7405_v32, 0.0 }
 0x4a5   :  { %v617_v37 = vmul.f32 1.442695, %v607_v38  ;;  %v608_v45 = vsub.f32 %v8080_v60, %v602_v34  ;;  %625 = vadd.xlane.f32.xlu1 %v624_v35 }
 0x4a7   :  { %7410 = vpow2.f32 %v617_v37  ;;  %v619_v50 = vmul.f32 1.442695, %v608_v45 }
 0x4a9   :  { %v7407_v40 = vpop.eup %7406  ;;  %7412 = vpow2.f32 %v619_v50 }
 0x4aa   :  { %v627_v42 = vsel %vm67_vm1, %v7407_v40, 0.0 }
 0x4ab   :  { %v7409_v44 = vpop.eup %7408  ;;  %628 = vadd.xlane.f32.xlu0 %v627_v42 }
 0x4ac   :  { %v630_v46 = vsel %vm67_vm1, %v7409_v44, 0.0 }
 0x4ad   :  { %631 = vadd.xlane.f32.xlu1 %v630_v46 }
 0x4b1   :  { %v7411_v56 = vpop.eup %7410 }
 0x4b2   :  { %v633_v47 = vsel %vm67_vm1, %v7411_v56, 0.0 }
 0x4b3   :  { %v7413_v48 = vpop.eup %7412  ;;  %634 = vadd.xlane.f32.xlu0 %v633_v47 }
 0x4b4   :  { %v636_v51 = vsel %vm67_vm1, %v7413_v48, 0.0 }
 0x4b5   :  { %637 = vadd.xlane.f32.xlu1 %v636_v51  ;;  %v5744_v51 = vld [vmem:[%s9668_s4 + $0x5] ss:$0 sm:$0xff] }
 0x530   :  { %v623_v60 = vpop.xlane.xlu0 %622 }
 0x531   :  { %7414 = vrcp.f32 %v623_v60 }
 0x532   :  { %v626_v53 = vpop.xlane.xlu1 %625 }
 0x533   :  { %7416 = vrcp.f32 %v626_v53 }
 0x538   :  { %v629_v54 = vpop.xlane.xlu0 %628 }
 0x539   :  { %7418 = vrcp.f32 %v629_v54 }
 0x53a   :  { %v632_v57 = vpop.xlane.xlu1 %631 }
 0x53b   :  { %v7415_v58 = vpop.eup %7414  ;;  %7420 = vrcp.f32 %v632_v57 }
 0x53c   :  { %v645_v61 = vmul.f32 %v7415_v58, %v7403_v17 }
 0x53d   :  { %v7417_v59 = vpop.eup %7416 }
 0x53e   :  { %v646_v63 = vmul.f32 %v7417_v59, %v7405_v32 }
 0x540   :  { %v651_v2 = vpack.c.bf16 %v646_v63, %v645_v61  ;;  %v635_v1 = vpop.xlane.xlu0 %634 }
 0x541   :  { %7422 = vrcp.f32 %v635_v1 }
 0x542   :  { %v638_v7 = vpop.xlane.xlu1 %637  ;;  %6507 = vmatmul.mubr.msk.bf16.vlgmr.msra.gmra.mrb[24].mxu0 %vm67_vm1, %v651_v2 }
 0x543   :  { %v7419_v9 = vpop.eup %7418  ;;  %7424 = vrcp.f32 %v638_v7  ;;  %6535 = vmatpush3.bf16.msra.mxu0 %v7326_v0  ;;  %6510 = vmatprep.mubr.msk.bf16.mxu0 %vm7699_vm0, %v7698_v3 }
 0x544   :  { %6536 = vmatprep.subr.bf16.mxu0 %v7698_v3  ;;  %v647_v15 = vmul.f32 %v7419_v9, %v7407_v40 }
 0x545   :  { %v7421_v11 = vpop.eup %7420 }
 0x546   :  { %v648_v20 = vmul.f32 %v7421_v11, %v7409_v44 }
 0x547   :  { %6537 = vmatpush3.bf16.msra.mxu0 %v7327_v10 }
 0x548   :  { %v652_v21 = vpack.c.bf16 %v648_v20, %v647_v15  ;;  %6566 = vmatprep.subr.bf16.mxu0 %v7698_v3 }
 0x54a   :  { %6511 = vmatmul.mubr.msk.bf16.gmra.mrb[28].mxu0 %vm67_vm1, %v652_v21 }
 0x54b   :  { %v7423_v23 = vpop.eup %7422  ;;  %6514 = vmatprep.mubr.msk.bf16.mxu0 %vm7699_vm0, %v7698_v3 }
 0x54c   :  { %v649_v14 = vmul.f32 %v7423_v23, %v7411_v56 }
 0x54d   :  { %v7425_v27 = vpop.eup %7424 }
 0x54e   :  { %v650_v17 = vmul.f32 %v7425_v27, %v7413_v48 }
 0x550   :  { %v653_v30 = vpack.c.bf16 %v650_v17, %v649_v14 }
 0x552   :  { %6515 = vmatmul.mubr.msk.bf16.gmra.mrb[32].mxu0 %vm67_vm1, %v653_v30 }
 0x553   :  { %6538 = vmatprep.mubr.msk.bf16.mxu0 %vm7699_vm0, %v7698_v3 }
 0x55a   :  { %6539 = vmatmul.mubr.msk.bf16.vlgmr.msra.gmra.mrb[36].mxu0 %vm143_vm2, %v7892_v52 }
 0x55b   :  { %6542 = vmatprep.mubr.msk.bf16.mxu0 %vm7699_vm0, %v7698_v3 }
 0x562   :  { %6543 = vmatmul.mubr.msk.bf16.gmra.mrb[40].mxu0 %vm143_vm2, %v7908_v62 }
 0x563   :  { %6546 = vmatprep.mubr.msk.bf16.mxu0 %vm7699_vm0, %v7698_v3 }
 0x56a   :  { %6547 = vmatmul.mubr.msk.bf16.gmra.mrb[44].mxu0 %vm143_vm2, %v7920_v6 }
 0x56b   :  { %6572 = vmatprep.mubr.msk.bf16.mxu0 %vm7699_vm0, %v7698_v3 }
 0x615   :  { %v8152_v33 = vpop.f32.mrb[24].mxu0 }
 0x616   :  { %v6508_v32 = vpop.f32.mrb[25].mxu0 }
 0x617   :  { %v8154_v38 = vpop.f32.mrb[26].mxu0 }
 0x618   :  { %v723_v34 = vpack.c.bf16 %v8154_v38, %v8152_v33  ;;  %v6509_v35 = vpop.f32.mrb[27].mxu0 }
 0x61d   :  { %v8158_v37 = vpop.f32.mrb[28].mxu0 }
 0x61e   :  { %v6512_v45 = vpop.f32.mrb[29].mxu0 }
 0x61f   :  { %v8160_v50 = vpop.f32.mrb[30].mxu0 }
 0x620   :  { %v724_v40 = vpack.c.bf16 %v8160_v50, %v8158_v37  ;;  %v6513_v42 = vpop.f32.mrb[31].mxu0  ;;  %v7334_v37 = vld [vmem:[%s9667_s3 + $0x20] sm:$0xff]  }
 0x625   :  { %v8164_v44 = vpop.f32.mrb[32].mxu0 }
 0x626   :  { %v6516_v46 = vpop.f32.mrb[33].mxu0 }
 0x627   :  { %v8166_v56 = vpop.f32.mrb[34].mxu0 }
 0x628   :  { %v725_v47 = vpack.c.bf16 %v8166_v56, %v8164_v44  ;;  %v6517_v48 = vpop.f32.mrb[35].mxu0  ;;  %v7335_v44 = vld [vmem:[%s9667_s3 + $0x28] sm:$0xff]  }
 0x62d   :  { %v872_v60 = vpop.f32.mrb[36].mxu0 }
 0x62e   :  { %v6540_v53 = vpop.f32.mrb[37].mxu0  ;;  %v873_v57 = vadd.f32 %v5744_v51, %v872_v60 }
 0x62f   :  { %v875_v54 = vpop.f32.mrb[38].mxu0 }
 0x630   :  { %v876_v58 = vadd.f32 %v5744_v51, %v875_v54  ;;  %v6541_v59 = vpop.f32.mrb[39].mxu0 }
 0x632   :  { %v980_v61 = vpack.c.bf16 %v876_v58, %v873_v57 }
 0x634   :  { %v993_v63 = vsel %vm509_vm3, %v980_v61, 0 }
 0x635   :  { %v880_v0 = vpop.f32.mrb[40].mxu0  ;;  %6567 = vmatpush3.bf16.xpose.msra.mxu0 %v993_v63 }
 0x636   :  { %v6544_v2 = vpop.f32.mrb[41].mxu0  ;;  %6568 = vmatprep.subr.bf16.mxu0 %v7698_v3  ;;  %v881_v7 = vadd.f32 %v5744_v51, %v880_v0 }
 0x637   :  { %v883_v1 = vpop.f32.mrb[42].mxu0 }
 0x638   :  { %v884_v9 = vadd.f32 %v5744_v51, %v883_v1  ;;  %v6545_v10 = vpop.f32.mrb[43].mxu0 }
 0x63a   :  { %v981_v11 = vpack.c.bf16 %v884_v9, %v881_v7 }
 0x63c   :  { %v996_v15 = vsel %vm509_vm3, %v981_v11, 0 }
 0x63d   :  { %v888_v20 = vpop.f32.mrb[44].mxu0  ;;  %6569 = vmatpush3.bf16.xpose.msra.mxu0 %v996_v15 }
 0x63e   :  { %v6548_v21 = vpop.f32.mrb[45].mxu0  ;;  %6570 = vmatprep.subr.bf16.mxu0 %v7698_v3  ;;  %v889_v27 = vadd.f32 %v5744_v51, %v888_v20 }
 0x63f   :  { %v891_v23 = vpop.f32.mrb[46].mxu0 }
 0x640   :  { %v892_v14 = vadd.f32 %v5744_v51, %v891_v23  ;;  %v6549_v17 = vpop.f32.mrb[47].mxu0 }
 0x642   :  { %v982_v30 = vpack.c.bf16 %v892_v14, %v889_v27 }
 0x644   :  { %v999_v32 = vsel %vm509_vm3, %v982_v30, 0 }
 0x645   :  { %6571 = vmatpush3.bf16.xpose.msra.mxu0 %v999_v32 }
 0x646   :  { %6602 = vmatprep.subr.bf16.mxu0 %v7698_v3 }
 0x64c   :  { %6573 = vmatmul.mubr.msk.bf16.vlgmr.msra.gmra.mrb[48].mxu0 %vm509_vm3, %v977_v8 }
 0x64d   :  { %6576 = vmatprep.mubr.msk.bf16.mxu0 %vm7699_vm0, %v7698_v3 }
 0x654   :  { %6577 = vmatmul.mubr.msk.bf16.gmra.mrb[52].mxu0 %vm509_vm3, %v978_v18 }
 0x655   :  { %6580 = vmatprep.mubr.msk.bf16.mxu0 %vm7699_vm0, %v7698_v3 }
 0x65c   :  { %6581 = vmatmul.mubr.msk.bf16.gmra.mrb[56].mxu0 %vm509_vm3, %v979_v28 }
 0x65d   :  { %6606 = vmatprep.mubr.msk.bf16.mxu0 %vm7699_vm0, %v7698_v3 }
 0x71f   :  { %v1035_v4 = vpop.f32.mrb[48].mxu0 }
 0x720   :  { %v6574_v5 = vpop.f32.mrb[49].mxu0  ;;  %v1036_v8 = vadd.f32 %v1035_v4, %v8027_v22 }
 0x721   :  { %v1038_v35 = vpop.f32.mrb[50].mxu0 }
 0x722   :  { %v6575_v45 = vpop.f32.mrb[51].mxu0  ;;  %v1058_v12 = vsel %vm67_vm1, %v1036_v8, -inf  ;;  %v1039_v13 = vadd.f32 %v1038_v35, %v8032_v31 }
 0x723   :  { %1059 = vmax.xlane.f32.xlu0 %v1058_v12 }
 0x724   :  { %v1061_v18 = vsel %vm67_vm1, %v1039_v13, -inf }
 0x725   :  { %1062 = vmax.xlane.f32.xlu1 %v1061_v18 }
 0x727   :  { %v1043_v24 = vpop.f32.mrb[52].mxu0 }
 0x728   :  { %v6578_v25 = vpop.f32.mrb[53].mxu0  ;;  %v1044_v28 = vadd.f32 %v1043_v24, %v8047_v41 }
 0x729   :  { %v1046_v42 = vpop.f32.mrb[54].mxu0  ;;  %v7332_v25 = vld [vmem:[%s9667_s3 + $0xd0] sm:$0xff]  }
 0x72a   :  { %v6579_v46 = vpop.f32.mrb[55].mxu0  ;;  %v1064_v48 = vsel %vm67_vm1, %v1044_v28, -inf  ;;  %v1047_v22 = vadd.f32 %v1046_v42, %v8052_v43  ;;  %v7333_v42 = vld [vmem:[%s9667_s3 + $0xd8] sm:$0xff]  }
 0x72b   :  { %1065 = vmax.xlane.f32.xlu0 %v1064_v48  ;;  %v1227_v46 = vsel %vm509_vm3, %v7333_v42, 0 }
 0x72c   :  { %v1067_v51 = vsel %vm67_vm1, %v1047_v22, -inf }
 0x72d   :  { %1068 = vmax.xlane.f32.xlu1 %v1067_v51 }
 0x72f   :  { %v1051_v60 = vpop.f32.mrb[56].mxu0 }
 0x730   :  { %v6582_v31 = vpop.f32.mrb[57].mxu0  ;;  %v1052_v53 = vadd.f32 %v1051_v60, %v8067_v49 }
 0x731   :  { %v1054_v54 = vpop.f32.mrb[58].mxu0 }
 0x732   :  { %v6583_v57 = vpop.f32.mrb[59].mxu0  ;;  %v1070_v58 = vsel %vm67_vm1, %v1052_v53, -inf  ;;  %v1055_v41 = vadd.f32 %v1054_v54, %v8072_v55 }
 0x733   :  { %1071 = vmax.xlane.f32.xlu0 %v1070_v58 }
 0x734   :  { %v1073_v59 = vsel %vm67_vm1, %v1055_v41, -inf }
 0x735   :  { %1074 = vmax.xlane.f32.xlu1 %v1073_v59 }
 0x7b0   :  { %v1060_v61 = vpop.xlane.xlu0 %1059 }
 0x7b1   :  { %v1076_v43 = vsub.f32 %v1036_v8, %v1060_v61 }
 0x7b2   :  { %v1063_v63 = vpop.xlane.xlu1 %1062 }
 0x7b3   :  { %v1082_v0 = vmul.f32 1.442695, %v1076_v43  ;;  %v1077_v2 = vsub.f32 %v1039_v13, %v1063_v63 }
 0x7b5   :  { %7426 = vpow2.f32 %v1082_v0  ;;  %v1084_v1 = vmul.f32 1.442695, %v1077_v2  ;;  %v7329_v0 = vld [vmem:[%s9667_s3 + $0xc8] sm:$0xff]  }
 0x7b7   :  { %7428 = vpow2.f32 %v1084_v1 }
 0x7b8   :  { %v1066_v7 = vpop.xlane.xlu0 %1065 }
 0x7b9   :  { %v1078_v49 = vsub.f32 %v1044_v28, %v1066_v7  ;;  %v1224_v28 = vsel %vm509_vm3, %v7332_v25, 0 }
 0x7ba   :  { %v1069_v9 = vpop.xlane.xlu1 %1068  ;;  %6603 = vmatpush3.bf16.xpose.msra.mxu0 %v1224_v28 }
 0x7bb   :  { %v1086_v10 = vmul.f32 1.442695, %v1078_v49  ;;  %v1079_v11 = vsub.f32 %v1047_v22, %v1069_v9  ;;  %6604 = vmatprep.subr.bf16.mxu0 %v7698_v3  ;;  %v1309_v9 = vsel %vm509_vm3, %v7329_v0, 0 }
 0x7bd   :  { %7430 = vpow2.f32 %v1086_v10  ;;  %v1088_v15 = vmul.f32 1.442695, %v1079_v11 }
 0x7bf   :  { %v7427_v55 = vpop.eup %7426  ;;  %7432 = vpow2.f32 %v1088_v15 }
 0x7c0   :  { %v1072_v20 = vpop.xlane.xlu0 %1071  ;;  %v1094_v21 = vsel %vm67_vm1, %v7427_v55, 0.0 }
 0x7c1   :  { %v7429_v23 = vpop.eup %7428  ;;  %v1080_v27 = vsub.f32 %v1052_v53, %v1072_v20  ;;  %1095 = vadd.xlane.f32.xlu0 %v1094_v21  ;;  %v7328_v53 = vld [vmem:[%s9667_s3 + $0xc0] sm:$0xff]  }
 0x7c2   :  { %v1075_v14 = vpop.xlane.xlu1 %1074  ;;  %v1097_v17 = vsel %vm67_vm1, %v7429_v23, 0.0  ;;  %6605 = vmatpush3.bf16.xpose.msra.mxu0 %v1227_v46  ;;  %v1306_v61 = vsel %vm509_vm3, %v7328_v53, 0  ;;  %v7330_v21 = vld [vmem:[%s9667_s3 + $0x60] sm:$0xff]  }
 0x7c3   :  { %v1090_v30 = vmul.f32 1.442695, %v1080_v27  ;;  %v1081_v32 = vsub.f32 %v1055_v41, %v1075_v14  ;;  %1098 = vadd.xlane.f32.xlu1 %v1097_v17  ;;  %6634 = vmatprep.subr.bf16.mxu0 %v7698_v3 }
 0x7c5   :  { %7434 = vpow2.f32 %v1090_v30  ;;  %v1092_v4 = vmul.f32 1.442695, %v1081_v32 }
 0x7c7   :  { %v7431_v5 = vpop.eup %7430  ;;  %7436 = vpow2.f32 %v1092_v4 }
 0x7c8   :  { %v1100_v8 = vsel %vm67_vm1, %v7431_v5, 0.0 }
 0x7c9   :  { %v7433_v35 = vpop.eup %7432  ;;  %1101 = vadd.xlane.f32.xlu0 %v1100_v8 }
 0x7ca   :  { %v1103_v45 = vsel %vm67_vm1, %v7433_v35, 0.0 }
 0x7cb   :  { %1104 = vadd.xlane.f32.xlu1 %v1103_v45 }
 0x7cf   :  { %v7435_v12 = vpop.eup %7434 }
 0x7d0   :  { %v1106_v13 = vsel %vm67_vm1, %v7435_v12, 0.0 }
 0x7d1   :  { %v7437_v18 = vpop.eup %7436  ;;  %1107 = vadd.xlane.f32.xlu0 %v1106_v13  ;;  %v7336_v13 = vld [vmem:[%s9667_s3 + $0xa0] sm:$0xff]  }
 0x7d2   :  { %v1109_v24 = vsel %vm67_vm1, %v7437_v18, 0.0 }
 0x7d3   :  { %1110 = vadd.xlane.f32.xlu1 %v1109_v24  ;;  %v7337_v24 = vld [vmem:[%s9667_s3 + $0xa8] sm:$0xff]  }
 0x84e   :  { %v1096_v48 = vpop.xlane.xlu0 %1095 }
 0x84f   :  { %7438 = vrcp.f32 %v1096_v48 }
 0x850   :  { %v1099_v22 = vpop.xlane.xlu1 %1098 }
 0x851   :  { %7440 = vrcp.f32 %v1099_v22 }
 0x856   :  { %v1102_v51 = vpop.xlane.xlu0 %1101 }
 0x857   :  { %7442 = vrcp.f32 %v1102_v51 }
 0x858   :  { %v1105_v60 = vpop.xlane.xlu1 %1104 }
 0x859   :  { %v7439_v31 = vpop.eup %7438  ;;  %7444 = vrcp.f32 %v1105_v60 }
 0x85a   :  { %v1118_v57 = vmul.f32 %v7439_v31, %v7427_v55  ;;  %v5797_v31 = vld [vmem:[%s9668_s4 + $0x6] ss:$0 sm:$0xff] }
 0x85b   :  { %v7441_v54 = vpop.eup %7440 }
 0x85c   :  { %v1119_v58 = vmul.f32 %v7441_v54, %v7429_v23  ;;  %v7331_v23 = vld [vmem:[%s9667_s3 + $0x68] sm:$0xff]  }
 0x85e   :  { %v1124_v41 = vpack.c.bf16 %v1119_v58, %v1118_v57  ;;  %v1108_v59 = vpop.xlane.xlu0 %1107 }
 0x85f   :  { %7446 = vrcp.f32 %v1108_v59 }
 0x860   :  { %6591 = vmatmul.mubr.msk.bf16.vlgmr.msra.gmra.mrb[60].mxu1 %vm67_vm1, %v1124_v41  ;;  %v1111_v43 = vpop.xlane.xlu1 %1110 }
 0x861   :  { %v7443_v63 = vpop.eup %7442  ;;  %7448 = vrcp.f32 %v1111_v43  ;;  %6594 = vmatprep.mubr.msk.bf16.mxu1 %vm7699_vm0, %v7698_v3  ;;  %6619 = vmatpush3.bf16.xpose.msra.mxu1 %v1306_v61 }
 0x862   :  { %6620 = vmatprep.subr.bf16.mxu1 %v7698_v3  ;;  %v1120_v1 = vmul.f32 %v7443_v63, %v7431_v5 }
 0x863   :  { %v7445_v2 = vpop.eup %7444 }
 0x864   :  { %v1121_v7 = vmul.f32 %v7445_v2, %v7433_v35 }
 0x866   :  { %v1125_v49 = vpack.c.bf16 %v1121_v7, %v1120_v1 }
 0x868   :  { %6595 = vmatmul.mubr.msk.bf16.gmra.mrb[64].mxu1 %vm67_vm1, %v1125_v49 }
 0x869   :  { %v7447_v10 = vpop.eup %7446  ;;  %6598 = vmatprep.mubr.msk.bf16.mxu1 %vm7699_vm0, %v7698_v3  ;;  %6621 = vmatpush3.bf16.xpose.msra.mxu1 %v1309_v9 }
 0x86a   :  { %6650 = vmatprep.subr.bf16.mxu1 %v7698_v3  ;;  %v1122_v15 = vmul.f32 %v7447_v10, %v7435_v12 }
 0x86b   :  { %v7449_v11 = vpop.eup %7448 }
 0x86c   :  { %v1123_v55 = vmul.f32 %v7449_v11, %v7437_v18 }
 0x86e   :  { %v1126_v20 = vpack.c.bf16 %v1123_v55, %v1122_v15 }
 0x870   :  { %6599 = vmatmul.mubr.msk.bf16.gmra.mrb[68].mxu1 %vm67_vm1, %v1126_v20 }
 0x871   :  { %6622 = vmatprep.mubr.msk.bf16.mxu1 %vm7699_vm0, %v7698_v3 }
 0x878   :  { %6623 = vmatmul.mubr.msk.bf16.vlgmr.msra.gmra.mrb[72].mxu1 %vm509_vm3, %v723_v34 }
 0x879   :  { %6626 = vmatprep.mubr.msk.bf16.mxu1 %vm7699_vm0, %v7698_v3  ;;  %6651 = vmatpush3.bf16.msra.mxu1 %v7330_v21 }
 0x87a   :  { %6652 = vmatprep.subr.bf16.mxu1 %v7698_v3 }
 0x87d   :  { %6653 = vmatpush3.bf16.msra.mxu1 %v7331_v23 }
 0x87e   :  { %6682 = vmatprep.subr.bf16.mxu1 %v7698_v3 }
 0x880   :  { %6627 = vmatmul.mubr.msk.bf16.gmra.mrb[76].mxu1 %vm509_vm3, %v724_v40 }
 0x881   :  { %6630 = vmatprep.mubr.msk.bf16.mxu1 %vm7699_vm0, %v7698_v3 }
 0x888   :  { %6631 = vmatmul.mubr.msk.bf16.gmra.mrb[80].mxu1 %vm509_vm3, %v725_v47 }
 0x889   :  { %6654 = vmatprep.mubr.msk.bf16.mxu1 %vm7699_vm0, %v7698_v3 }
 0x890   :  { %6655 = vmatmul.mubr.msk.bf16.vlgmr.msra.gmra.mrb[84].mxu1 %vm143_vm2, %v7892_v52 }
 0x891   :  { %6658 = vmatprep.mubr.msk.bf16.mxu1 %vm7699_vm0, %v7698_v3 }
 0x898   :  { %6659 = vmatmul.mubr.msk.bf16.gmra.mrb[88].mxu1 %vm143_vm2, %v7908_v62 }
 0x899   :  { %6662 = vmatprep.mubr.msk.bf16.mxu1 %vm7699_vm0, %v7698_v3 }
 0x8a0   :  { %6663 = vmatmul.mubr.msk.bf16.gmra.mrb[92].mxu1 %vm143_vm2, %v7920_v6 }
 0x8a1   :  { %6688 = vmatprep.mubr.msk.bf16.mxu1 %vm7699_vm0, %v7698_v3 }
 0x933   :  { %v1173_v33 = vpop.f32.mrb[60].mxu1 }
 0x934   :  { %v6592_v38 = vpop.f32.mrb[61].mxu1 }
 0x935   :  { %v1176_v34 = vpop.f32.mrb[62].mxu1 }
 0x936   :  { %v1196_v50 = vpack.c.bf16 %v1176_v34, %v1173_v33  ;;  %v6593_v40 = vpop.f32.mrb[63].mxu1 }
 0x938   :  { %6607 = vmatmul.mubr.msk.bf16.vlgmr.msra.gmra.mrb[60].mxu0 %vm509_vm3, %v1196_v50 }
 0x939   :  { %6635 = vmatpush3.bf16.msra.mxu0 %v7334_v37  ;;  %6610 = vmatprep.mubr.msk.bf16.mxu0 %vm7699_vm0, %v7698_v3 }
 0x93a   :  { %6636 = vmatprep.subr.bf16.mxu0 %v7698_v3 }
 0x93b   :  { %v1181_v56 = vpop.f32.mrb[64].mxu1 }
 0x93c   :  { %v6596_v47 = vpop.f32.mrb[65].mxu1 }
 0x93d   :  { %v1184_v27 = vpop.f32.mrb[66].mxu1  ;;  %6637 = vmatpush3.bf16.msra.mxu0 %v7335_v44 }
 0x93e   :  { %v1197_v14 = vpack.c.bf16 %v1184_v27, %v1181_v56  ;;  %v6597_v17 = vpop.f32.mrb[67].mxu1  ;;  %6666 = vmatprep.subr.bf16.mxu0 %v7698_v3 }
 0x940   :  { %6611 = vmatmul.mubr.msk.bf16.gmra.mrb[64].mxu0 %vm509_vm3, %v1197_v14 }
 0x941   :  { %6614 = vmatprep.mubr.msk.bf16.mxu0 %vm7699_vm0, %v7698_v3 }
 0x943   :  { %v1189_v30 = vpop.f32.mrb[68].mxu1 }
 0x944   :  { %v6600_v32 = vpop.f32.mrb[69].mxu1 }
 0x945   :  { %v1192_v4 = vpop.f32.mrb[70].mxu1 }
 0x946   :  { %v1198_v5 = vpack.c.bf16 %v1192_v4, %v1189_v30  ;;  %v6601_v8 = vpop.f32.mrb[71].mxu1 }
 0x948   :  { %6615 = vmatmul.mubr.msk.bf16.gmra.mrb[68].mxu0 %vm509_vm3, %v1198_v5 }
 0x949   :  { %6638 = vmatprep.mubr.msk.bf16.mxu0 %vm7699_vm0, %v7698_v3 }
 0x94b   :  { %v8299_v35 = vpop.f32.mrb[72].mxu1 }
 0x94c   :  { %v6624_v45 = vpop.f32.mrb[73].mxu1 }
 0x94d   :  { %v8301_v12 = vpop.f32.mrb[74].mxu1 }
 0x94e   :  { %v6625_v18 = vpop.f32.mrb[75].mxu1 }
 0x950   :  { %6639 = vmatmul.mubr.msk.bf16.vlgmr.msra.gmra.mrb[72].mxu0 %vm143_vm2, %v7892_v52 }
 0x951   :  { %6642 = vmatprep.mubr.msk.bf16.mxu0 %vm7699_vm0, %v7698_v3  ;;  %6667 = vmatpush3.bf16.msra.mxu0 %v7336_v13 }
 0x952   :  { %6668 = vmatprep.subr.bf16.mxu0 %v7698_v3 }
 0x953   :  { %v1353_v25 = vpop.f32.mrb[76].mxu1 }
 0x954   :  { %v6628_v28 = vpop.f32.mrb[77].mxu1 }
 0x955   :  { %v1356_v42 = vpop.f32.mrb[78].mxu1  ;;  %6669 = vmatpush3.bf16.msra.mxu0 %v7337_v24 }
 0x956   :  { %v6629_v46 = vpop.f32.mrb[79].mxu1  ;;  %6700 = vmatprep.subr.bf16.mxu0 %v7698_v3 }
 0x958   :  { %6643 = vmatmul.mubr.msk.bf16.gmra.mrb[76].mxu0 %vm143_vm2, %v7908_v62 }
 0x959   :  { %6646 = vmatprep.mubr.msk.bf16.mxu0 %vm7699_vm0, %v7698_v3 }
 0x95b   :  { %v1361_v48 = vpop.f32.mrb[80].mxu1 }
 0x95c   :  { %v6632_v22 = vpop.f32.mrb[81].mxu1 }
 0x95d   :  { %v1364_v51 = vpop.f32.mrb[82].mxu1 }
 0x95e   :  { %v6633_v60 = vpop.f32.mrb[83].mxu1 }
 0x960   :  { %6647 = vmatmul.mubr.msk.bf16.gmra.mrb[80].mxu0 %vm143_vm2, %v7920_v6 }
 0x961   :  { %6670 = vmatprep.mubr.msk.bf16.mxu0 %vm7699_vm0, %v7698_v3 }
 0x963   :  { %v1509_v53 = vpop.f32.mrb[84].mxu1 }
 0x964   :  { %v6656_v54 = vpop.f32.mrb[85].mxu1  ;;  %v1510_v58 = vadd.f32 %v5797_v31, %v1509_v53 }
 0x965   :  { %v1512_v57 = vpop.f32.mrb[86].mxu1 }
 0x966   :  { %v1513_v41 = vadd.f32 %v5797_v31, %v1512_v57  ;;  %v6657_v59 = vpop.f32.mrb[87].mxu1 }
 0x968   :  { %v1617_v61 = vpack.c.bf16 %v1513_v41, %v1510_v58  ;;  %6671 = vmatmul.mubr.msk.bf16.vlgmr.msra.gmra.mrb[84].mxu0 %vm143_vm2, %v7892_v52 }
 0x969   :  { %6674 = vmatprep.mubr.msk.bf16.mxu0 %vm7699_vm0, %v7698_v3 }
 0x96a   :  { %v1630_v43 = vsel %vm509_vm3, %v1617_v61, 0 }
 0x96b   :  { %v1517_v63 = vpop.f32.mrb[88].mxu1  ;;  %6683 = vmatpush3.bf16.xpose.msra.mxu1 %v1630_v43 }
 0x96c   :  { %v6660_v0 = vpop.f32.mrb[89].mxu1  ;;  %6684 = vmatprep.subr.bf16.mxu1 %v7698_v3  ;;  %v1518_v1 = vadd.f32 %v5797_v31, %v1517_v63 }
 0x96d   :  { %v1520_v2 = vpop.f32.mrb[90].mxu1 }
 0x96e   :  { %v1521_v7 = vadd.f32 %v5797_v31, %v1520_v2  ;;  %v6661_v49 = vpop.f32.mrb[91].mxu1  ;;  %v5808_v2 = vld [vmem:[%s9668_s4 + $0xa] ss:$0 sm:$0xff] }
 0x970   :  { %v1618_v9 = vpack.c.bf16 %v1521_v7, %v1518_v1  ;;  %6675 = vmatmul.mubr.msk.bf16.gmra.mrb[88].mxu0 %vm143_vm2, %v7908_v62 }
 0x971   :  { %6678 = vmatprep.mubr.msk.bf16.mxu0 %vm7699_vm0, %v7698_v3 }
 0x972   :  { %v1633_v10 = vsel %vm509_vm3, %v1618_v9, 0 }
 0x973   :  { %v1525_v11 = vpop.f32.mrb[92].mxu1  ;;  %6685 = vmatpush3.bf16.xpose.msra.mxu1 %v1633_v10 }
 0x974   :  { %v6664_v15 = vpop.f32.mrb[93].mxu1  ;;  %6686 = vmatprep.subr.bf16.mxu1 %v7698_v3  ;;  %v1526_v20 = vadd.f32 %v5797_v31, %v1525_v11 }
 0x975   :  { %v1528_v55 = vpop.f32.mrb[94].mxu1 }
 0x976   :  { %v1529_v21 = vadd.f32 %v5797_v31, %v1528_v55  ;;  %v6665_v23 = vpop.f32.mrb[95].mxu1 }
 0x978   :  { %v1619_v33 = vpack.c.bf16 %v1529_v21, %v1526_v20  ;;  %6679 = vmatmul.mubr.msk.bf16.gmra.mrb[92].mxu0 %vm143_vm2, %v7920_v6 }
 0x979   :  { %6706 = vmatprep.mubr.msk.bf16.mxu0 %vm7699_vm0, %v7698_v3 }
 0x97a   :  { %v1636_v38 = vsel %vm509_vm3, %v1619_v33, 0 }
 0x97b   :  { %6687 = vmatpush3.bf16.xpose.msra.mxu1 %v1636_v38 }
 0x97c   :  { %6718 = vmatprep.subr.bf16.mxu1 %v7698_v3 }
 0xa0b   :  { %v1263_v34 = vpop.f32.mrb[60].mxu0 }
 0xa0c   :  { %v6608_v37 = vpop.f32.mrb[61].mxu0  ;;  %v8345_v50 = vadd.f32 %v8299_v35, %v1263_v34 }
 0xa0d   :  { %v1266_v40 = vpop.f32.mrb[62].mxu0 }
 0xa0e   :  { %v6609_v44 = vpop.f32.mrb[63].mxu0  ;;  %v8348_v56 = vadd.f32 %v8301_v12, %v1266_v40  ;;  %v5786_v12 = vld [vmem:[%s9668_s4 + $0x2] ss:$0 sm:$0xff] }
 0xa13   :  { %v1271_v47 = vpop.f32.mrb[64].mxu0 }
 0xa14   :  { %v8350_v27 = vadd.f32 %v1353_v25, %v1271_v47  ;;  %v6612_v14 = vpop.f32.mrb[65].mxu0 }
 0xa15   :  { %v1274_v17 = vpop.f32.mrb[66].mxu0 }
 0xa16   :  { %v8352_v30 = vadd.f32 %v1356_v42, %v1274_v17  ;;  %v6613_v32 = vpop.f32.mrb[67].mxu0 }
 0xa1b   :  { %v1279_v4 = vpop.f32.mrb[68].mxu0 }
 0xa1c   :  { %v8354_v5 = vadd.f32 %v1361_v48, %v1279_v4  ;;  %v6616_v8 = vpop.f32.mrb[69].mxu0 }
 0xa1d   :  { %v1282_v45 = vpop.f32.mrb[70].mxu0  ;;  %v8379_v8 = vld [vmem:[%s9665_s1] sm:$0xff] }
 0xa1e   :  { %v8356_v35 = vadd.f32 %v1364_v51, %v1282_v45  ;;  %v6617_v13 = vpop.f32.mrb[71].mxu0 }
 0xa23   :  { %v1427_v18 = vpop.f32.mrb[72].mxu0 }
 0xa24   :  { %v6640_v24 = vpop.f32.mrb[73].mxu0  ;;  %v1428_v28 = vadd.f32 %v5786_v12, %v1427_v18  ;;  %v8385_v18 = vld [vmem:[%s9665_s1 + $0x8] sm:$0xff] }
 0xa25   :  { %v1430_v25 = vpop.f32.mrb[74].mxu0 }
 0xa26   :  { %v1431_v46 = vadd.f32 %v5786_v12, %v1430_v25  ;;  %v6641_v42 = vpop.f32.mrb[75].mxu0 }
 0xa28   :  { %v1614_v22 = vpack.c.bf16 %v1431_v46, %v1428_v28 }
 0xa2a   :  { %6689 = vmatmul.mubr.msk.bf16.vlgmr.msra.gmra.mrb[96].mxu1 %vm509_vm3, %v1614_v22  ;;  %v8393_v22 = vld [vmem:[%s9665_s1 + $0x10] sm:$0xff] }
 0xa2b   :  { %v1435_v48 = vpop.f32.mrb[76].mxu0  ;;  %6692 = vmatprep.mubr.msk.bf16.mxu1 %vm7699_vm0, %v7698_v3 }
 0xa2c   :  { %v6644_v51 = vpop.f32.mrb[77].mxu0  ;;  %v1436_v31 = vadd.f32 %v5786_v12, %v1435_v48 }
 0xa2d   :  { %v1438_v60 = vpop.f32.mrb[78].mxu0 }
 0xa2e   :  { %v1439_v53 = vadd.f32 %v5786_v12, %v1438_v60  ;;  %v6645_v54 = vpop.f32.mrb[79].mxu0 }
 0xa30   :  { %v1615_v57 = vpack.c.bf16 %v1439_v53, %v1436_v31  ;;  %v8399_v31 = vld [vmem:[%s9665_s1 + $0x18] sm:$0xff] }
 0xa32   :  { %6693 = vmatmul.mubr.msk.bf16.gmra.mrb[100].mxu1 %vm509_vm3, %v1615_v57 }
 0xa33   :  { %v1443_v58 = vpop.f32.mrb[80].mxu0  ;;  %6696 = vmatprep.mubr.msk.bf16.mxu1 %vm7699_vm0, %v7698_v3 }
 0xa34   :  { %v6648_v41 = vpop.f32.mrb[81].mxu0  ;;  %v1444_v61 = vadd.f32 %v5786_v12, %v1443_v58 }
 0xa35   :  { %v1446_v59 = vpop.f32.mrb[82].mxu0 }
 0xa36   :  { %v1447_v43 = vadd.f32 %v5786_v12, %v1446_v59  ;;  %v6649_v63 = vpop.f32.mrb[83].mxu0  ;;  %v8407_v59 = vld [vmem:[%s9665_s1 + $0x20] sm:$0xff] }
 0xa38   :  { %v1616_v0 = vpack.c.bf16 %v1447_v43, %v1444_v61 }
 0xa3a   :  { %6697 = vmatmul.mubr.msk.bf16.gmra.mrb[104].mxu1 %vm509_vm3, %v1616_v0  ;;  %v8413_v0 = vld [vmem:[%s9665_s1 + $0x28] sm:$0xff] }
 0xa3b   :  { %v1591_v1 = vpop.f32.mrb[84].mxu0  ;;  %6722 = vmatprep.mubr.msk.bf16.mxu1 %vm7699_vm0, %v7698_v3 }
 0xa3c   :  { %v6672_v7 = vpop.f32.mrb[85].mxu0  ;;  %v1592_v9 = vadd.f32 %v5808_v2, %v1591_v1 }
 0xa3d   :  { %v1594_v49 = vpop.f32.mrb[86].mxu0 }
 0xa3e   :  { %v1595_v10 = vadd.f32 %v5808_v2, %v1594_v49  ;;  %v6673_v11 = vpop.f32.mrb[87].mxu0 }
 0xa40   :  { %v1764_v15 = vpack.c.bf16 %v1595_v10, %v1592_v9 }
 0xa42   :  { %6701 = vmatpush3.bf16.msra.mxu0 %v1764_v15 }
 0xa43   :  { %v1599_v55 = vpop.f32.mrb[88].mxu0  ;;  %6702 = vmatprep.subr.bf16.mxu0 %v7698_v3 }
 0xa44   :  { %v6676_v20 = vpop.f32.mrb[89].mxu0  ;;  %v1600_v23 = vadd.f32 %v5808_v2, %v1599_v55 }
 0xa45   :  { %v1602_v21 = vpop.f32.mrb[90].mxu0 }
 0xa46   :  { %v1603_v33 = vadd.f32 %v5808_v2, %v1602_v21  ;;  %v6677_v38 = vpop.f32.mrb[91].mxu0 }
 0xa48   :  { %v1765_v34 = vpack.c.bf16 %v1603_v33, %v1600_v23 }
 0xa4a   :  { %6703 = vmatpush3.bf16.msra.mxu0 %v1765_v34 }
 0xa4b   :  { %v1607_v37 = vpop.f32.mrb[92].mxu0  ;;  %6704 = vmatprep.subr.bf16.mxu0 %v7698_v3 }
 0xa4c   :  { %v6680_v40 = vpop.f32.mrb[93].mxu0  ;;  %v1608_v47 = vadd.f32 %v5808_v2, %v1607_v37 }
 0xa4d   :  { %v1610_v44 = vpop.f32.mrb[94].mxu0 }
 0xa4e   :  { %v1611_v14 = vadd.f32 %v5808_v2, %v1610_v44  ;;  %v6681_v17 = vpop.f32.mrb[95].mxu0 }
 0xa50   :  { %v1766_v32 = vpack.c.bf16 %v1611_v14, %v1608_v47 }
 0xa52   :  { %6705 = vmatpush3.bf16.msra.mxu0 %v1766_v32 }
 0xa53   :  { %6734 = vmatprep.subr.bf16.mxu0 %v7698_v3 }
 0xafd   :  { %v1672_v4 = vpop.f32.mrb[96].mxu1 }
 0xafe   :  { %v1673_v45 = vadd.f32 %v8379_v8, %v1672_v4  ;;  %v6690_v13 = vpop.f32.mrb[97].mxu1 }
 0xaff   :  { %v1675_v12 = vpop.f32.mrb[98].mxu1 }
 0xb00   :  { %v1676_v24 = vadd.f32 %v8385_v18, %v1675_v12  ;;  %v6691_v25 = vpop.f32.mrb[99].mxu1  ;;  %v1695_v28 = vsel %vm67_vm1, %v1673_v45, -inf }
 0xb01   :  { %1696 = vmax.xlane.f32.xlu0 %v1695_v28 }
 0xb02   :  { %v1698_v46 = vsel %vm67_vm1, %v1676_v24, -inf }
 0xb03   :  { %1699 = vmax.xlane.f32.xlu1 %v1698_v46 }
 0xb05   :  { %v1680_v42 = vpop.f32.mrb[100].mxu1 }
 0xb06   :  { %v1681_v48 = vadd.f32 %v8393_v22, %v1680_v42  ;;  %v6694_v51 = vpop.f32.mrb[101].mxu1 }
 0xb07   :  { %v1683_v60 = vpop.f32.mrb[102].mxu1 }
 0xb08   :  { %v1684_v53 = vadd.f32 %v8399_v31, %v1683_v60  ;;  %v6695_v54 = vpop.f32.mrb[103].mxu1  ;;  %v1701_v57 = vsel %vm67_vm1, %v1681_v48, -inf }
 0xb09   :  { %1702 = vmax.xlane.f32.xlu0 %v1701_v57  ;;  %v7343_v57 = vld [vmem:[%s9667_s3 + $0xe8] sm:$0xff]  }
 0xb0a   :  { %v1704_v58 = vsel %vm67_vm1, %v1684_v53, -inf }
 0xb0b   :  { %1705 = vmax.xlane.f32.xlu1 %v1704_v58  ;;  %v1864_v58 = vsel %vm509_vm3, %v7343_v57, 0 }
 0xb0d   :  { %v1688_v41 = vpop.f32.mrb[104].mxu1 }
 0xb0e   :  { %v1689_v61 = vadd.f32 %v8407_v59, %v1688_v41  ;;  %v6698_v43 = vpop.f32.mrb[105].mxu1 }
 0xb0f   :  { %v1691_v63 = vpop.f32.mrb[106].mxu1 }
 0xb10   :  { %v1692_v2 = vadd.f32 %v8413_v0, %v1691_v63  ;;  %v6699_v1 = vpop.f32.mrb[107].mxu1  ;;  %v1707_v7 = vsel %vm67_vm1, %v1689_v61, -inf }
 0xb11   :  { %1708 = vmax.xlane.f32.xlu0 %v1707_v7 }
 0xb12   :  { %v1710_v49 = vsel %vm67_vm1, %v1692_v2, -inf }
 0xb13   :  { %1711 = vmax.xlane.f32.xlu1 %v1710_v49 }
 0xb8e   :  { %v1697_v9 = vpop.xlane.xlu0 %1696 }
 0xb8f   :  { %v1713_v10 = vsub.f32 %v1673_v45, %v1697_v9  ;;  %v7338_v9 = vld [vmem:[%s9667_s3 + $0x30] sm:$0xff]  }
 0xb90   :  { %v1700_v11 = vpop.xlane.xlu1 %1699 }
 0xb91   :  { %v1719_v15 = vmul.f32 1.442695, %v1713_v10  ;;  %v1714_v55 = vsub.f32 %v1676_v24, %v1700_v11 }
 0xb93   :  { %7450 = vpow2.f32 %v1719_v15  ;;  %v1721_v20 = vmul.f32 1.442695, %v1714_v55 }
 0xb95   :  { %7452 = vpow2.f32 %v1721_v20  ;;  %v7339_v20 = vld [vmem:[%s9667_s3 + $0x38] sm:$0xff]  }
 0xb96   :  { %v1703_v21 = vpop.xlane.xlu0 %1702 }
 0xb97   :  { %v1715_v23 = vsub.f32 %v1681_v48, %v1703_v21 }
 0xb98   :  { %v1706_v33 = vpop.xlane.xlu1 %1705 }
 0xb99   :  { %v1723_v38 = vmul.f32 1.442695, %v1715_v23  ;;  %v1716_v34 = vsub.f32 %v1684_v53, %v1706_v33  ;;  %v7342_v53 = vld [vmem:[%s9667_s3 + $0xe0] sm:$0xff]  }
 0xb9a   :  { %v1861_v54 = vsel %vm509_vm3, %v7342_v53, 0 }
 0xb9b   :  { %7454 = vpow2.f32 %v1723_v38  ;;  %v1725_v37 = vmul.f32 1.442695, %v1716_v34  ;;  %6719 = vmatpush3.bf16.xpose.msra.mxu1 %v1861_v54 }
 0xb9c   :  { %6720 = vmatprep.subr.bf16.mxu1 %v7698_v3 }
 0xb9d   :  { %v7451_v40 = vpop.eup %7450  ;;  %7456 = vpow2.f32 %v1725_v37 }
 0xb9e   :  { %v1709_v44 = vpop.xlane.xlu0 %1708  ;;  %v1731_v47 = vsel %vm67_vm1, %v7451_v40, 0.0 }
 0xb9f   :  { %v7453_v14 = vpop.eup %7452  ;;  %v1717_v17 = vsub.f32 %v1689_v61, %v1709_v44  ;;  %1732 = vadd.xlane.f32.xlu0 %v1731_v47 }
 0xba0   :  { %v1712_v32 = vpop.xlane.xlu1 %1711  ;;  %v1734_v4 = vsel %vm67_vm1, %v7453_v14, 0.0 }
 0xba1   :  { %v1727_v45 = vmul.f32 1.442695, %v1717_v17  ;;  %v1718_v13 = vsub.f32 %v1692_v2, %v1712_v32  ;;  %1735 = vadd.xlane.f32.xlu1 %v1734_v4  ;;  %v7341_v17 = vld [vmem:[%s9667_s3 + $0xb8] sm:$0xff]  }
 0xba3   :  { %7458 = vpow2.f32 %v1727_v45  ;;  %v1729_v12 = vmul.f32 1.442695, %v1718_v13  ;;  %6721 = vmatpush3.bf16.xpose.msra.mxu1 %v1864_v58  ;;  %v7344_v13 = vld [vmem:[%s9667_s3 + $0x70] sm:$0xff]  }
 0xba4   :  { %6750 = vmatprep.subr.bf16.mxu1 %v7698_v3 }
 0xba5   :  { %v7455_v24 = vpop.eup %7454  ;;  %7460 = vpow2.f32 %v1729_v12 }
 0xba6   :  { %v1737_v25 = vsel %vm67_vm1, %v7455_v24, 0.0 }
 0xba7   :  { %v7457_v28 = vpop.eup %7456  ;;  %1738 = vadd.xlane.f32.xlu0 %v1737_v25  ;;  %v7345_v25 = vld [vmem:[%s9667_s3 + $0x78] sm:$0xff]  }
 0xba8   :  { %v1740_v46 = vsel %vm67_vm1, %v7457_v28, 0.0 }
 0xba9   :  { %1741 = vadd.xlane.f32.xlu1 %v1740_v46 }
 0xbad   :  { %v7459_v42 = vpop.eup %7458 }
 0xbae   :  { %v1743_v48 = vsel %vm67_vm1, %v7459_v42, 0.0 }
 0xbaf   :  { %v7461_v51 = vpop.eup %7460  ;;  %1744 = vadd.xlane.f32.xlu0 %v1743_v48 }
 0xbb0   :  { %v1746_v60 = vsel %vm67_vm1, %v7461_v51, 0.0 }
 0xbb1   :  { %1747 = vadd.xlane.f32.xlu1 %v1746_v60 }
 0xc2c   :  { %v1733_v41 = vpop.xlane.xlu0 %1732 }
 0xc2d   :  { %7462 = vrcp.f32 %v1733_v41  ;;  %v5834_v41 = vld [vmem:[%s9668_s4 + $0x3] ss:$0 sm:$0xff] }
 0xc2e   :  { %v1736_v61 = vpop.xlane.xlu1 %1735 }
 0xc2f   :  { %7464 = vrcp.f32 %v1736_v61 }
 0xc34   :  { %v1739_v43 = vpop.xlane.xlu0 %1738 }
 0xc35   :  { %7466 = vrcp.f32 %v1739_v43 }
 0xc36   :  { %v1742_v63 = vpop.xlane.xlu1 %1741 }
 0xc37   :  { %v7463_v2 = vpop.eup %7462  ;;  %7468 = vrcp.f32 %v1742_v63 }
 0xc38   :  { %v1755_v7 = vmul.f32 %v7463_v2, %v7451_v40 }
 0xc39   :  { %v7465_v1 = vpop.eup %7464 }
 0xc3a   :  { %v1756_v49 = vmul.f32 %v7465_v1, %v7453_v14  ;;  %v7340_v14 = vld [vmem:[%s9667_s3 + $0xb0] sm:$0xff]  }
 0xc3c   :  { %v1761_v10 = vpack.c.bf16 %v1756_v49, %v1755_v7  ;;  %v1745_v11 = vpop.xlane.xlu0 %1744 }
 0xc3d   :  { %7470 = vrcp.f32 %v1745_v11 }
 0xc3e   :  { %v1748_v15 = vpop.xlane.xlu1 %1747  ;;  %6707 = vmatmul.mubr.msk.bf16.vlgmr.msra.gmra.mrb[96].mxu0 %vm67_vm1, %v1761_v10 }
 0xc3f   :  { %v7467_v55 = vpop.eup %7466  ;;  %7472 = vrcp.f32 %v1748_v15  ;;  %6710 = vmatprep.mubr.msk.bf16.mxu0 %vm7699_vm0, %v7698_v3  ;;  %6735 = vmatpush3.bf16.msra.mxu0 %v7338_v9 }
 0xc40   :  { %6736 = vmatprep.subr.bf16.mxu0 %v7698_v3  ;;  %v1757_v23 = vmul.f32 %v7467_v55, %v7455_v24 }
 0xc41   :  { %v7469_v21 = vpop.eup %7468 }
 0xc42   :  { %v1758_v33 = vmul.f32 %v7469_v21, %v7457_v28 }
 0xc43   :  { %6737 = vmatpush3.bf16.msra.mxu0 %v7339_v20 }
 0xc44   :  { %v1762_v38 = vpack.c.bf16 %v1758_v33, %v1757_v23  ;;  %6766 = vmatprep.subr.bf16.mxu0 %v7698_v3 }
 0xc46   :  { %6711 = vmatmul.mubr.msk.bf16.gmra.mrb[100].mxu0 %vm67_vm1, %v1762_v38 }
 0xc47   :  { %v7471_v34 = vpop.eup %7470  ;;  %6714 = vmatprep.mubr.msk.bf16.mxu0 %vm7699_vm0, %v7698_v3 }
 0xc48   :  { %v1759_v40 = vmul.f32 %v7471_v34, %v7459_v42 }
 0xc49   :  { %v7473_v37 = vpop.eup %7472 }
 0xc4a   :  { %v1760_v44 = vmul.f32 %v7473_v37, %v7461_v51 }
 0xc4c   :  { %v1763_v47 = vpack.c.bf16 %v1760_v44, %v1759_v40 }
 0xc4e   :  { %6715 = vmatmul.mubr.msk.bf16.gmra.mrb[104].mxu0 %vm67_vm1, %v1763_v47 }
 0xc4f   :  { %6738 = vmatprep.mubr.msk.bf16.mxu0 %vm7699_vm0, %v7698_v3 }
 0xc56   :  { %6739 = vmatmul.mubr.msk.bf16.vlgmr.msra.gmra.mrb[108].mxu0 %vm143_vm2, %v7892_v52 }
 0xc57   :  { %6742 = vmatprep.mubr.msk.bf16.mxu0 %vm7699_vm0, %v7698_v3  ;;  %6767 = vmatpush3.bf16.msra.mxu0 %v7340_v14 }
 0xc58   :  { %6768 = vmatprep.subr.bf16.mxu0 %v7698_v3 }
 0xc5b   :  { %6769 = vmatpush3.bf16.msra.mxu0 %v7341_v17 }
 0xc5c   :  { %6800 = vmatprep.subr.bf16.mxu0 %v7698_v3 }
 0xc5e   :  { %6743 = vmatmul.mubr.msk.bf16.gmra.mrb[112].mxu0 %vm143_vm2, %v7908_v62 }
 0xc5f   :  { %6746 = vmatprep.mubr.msk.bf16.mxu0 %vm7699_vm0, %v7698_v3 }
 0xc66   :  { %6747 = vmatmul.mubr.msk.bf16.gmra.mrb[116].mxu0 %vm143_vm2, %v7920_v6 }
 0xc67   :  { %6770 = vmatprep.mubr.msk.bf16.mxu0 %vm7699_vm0, %v7698_v3 }
 0xc6e   :  { %6771 = vmatmul.mubr.msk.bf16.vlgmr.msra.gmra.mrb[120].mxu0 %vm143_vm2, %v7892_v52 }
 0xc6f   :  { %6774 = vmatprep.mubr.msk.bf16.mxu0 %vm7699_vm0, %v7698_v3 }
 0xc76   :  { %6775 = vmatmul.mubr.msk.bf16.gmra.mrb[124].mxu0 %vm143_vm2, %v7908_v62 }
 0xc77   :  { %6778 = vmatprep.mubr.msk.bf16.mxu0 %vm7699_vm0, %v7698_v3 }
 0xc7e   :  { %6779 = vmatmul.mubr.msk.bf16.gmra.mrb[128].mxu0 %vm143_vm2, %v7920_v6 }
 0xc7f   :  { %6806 = vmatprep.mubr.msk.bf16.mxu0 %vm7699_vm0, %v7698_v3 }
 0xd11   :  { %v1810_v32 = vpop.f32.mrb[96].mxu0 }
 0xd12   :  { %v6708_v4 = vpop.f32.mrb[97].mxu0 }
 0xd13   :  { %v1813_v45 = vpop.f32.mrb[98].mxu0 }
 0xd14   :  { %v1833_v12 = vpack.c.bf16 %v1813_v45, %v1810_v32  ;;  %v6709_v24 = vpop.f32.mrb[99].mxu0 }
 0xd16   :  { %6723 = vmatmul.mubr.msk.bf16.vlgmr.msra.gmra.mrb[108].mxu1 %vm509_vm3, %v1833_v12 }
 0xd17   :  { %6751 = vmatpush3.bf16.msra.mxu1 %v7344_v13  ;;  %6726 = vmatprep.mubr.msk.bf16.mxu1 %vm7699_vm0, %v7698_v3 }
 0xd18   :  { %6752 = vmatprep.subr.bf16.mxu1 %v7698_v3 }
 0xd19   :  { %v1818_v28 = vpop.f32.mrb[100].mxu0 }
 0xd1a   :  { %v6712_v46 = vpop.f32.mrb[101].mxu0 }
 0xd1b   :  { %v1821_v42 = vpop.f32.mrb[102].mxu0  ;;  %6753 = vmatpush3.bf16.msra.mxu1 %v7345_v25 }
 0xd1c   :  { %v1834_v48 = vpack.c.bf16 %v1821_v42, %v1818_v28  ;;  %v6713_v51 = vpop.f32.mrb[103].mxu0  ;;  %6782 = vmatprep.subr.bf16.mxu1 %v7698_v3 }
 0xd1e   :  { %6727 = vmatmul.mubr.msk.bf16.gmra.mrb[112].mxu1 %vm509_vm3, %v1834_v48 }
 0xd1f   :  { %6730 = vmatprep.mubr.msk.bf16.mxu1 %vm7699_vm0, %v7698_v3 }
 0xd21   :  { %v1826_v60 = vpop.f32.mrb[104].mxu0 }
 0xd22   :  { %v6716_v53 = vpop.f32.mrb[105].mxu0 }
 0xd23   :  { %v1829_v54 = vpop.f32.mrb[106].mxu0 }
 0xd24   :  { %v1835_v57 = vpack.c.bf16 %v1829_v54, %v1826_v60  ;;  %v6717_v58 = vpop.f32.mrb[107].mxu0 }
 0xd26   :  { %6731 = vmatmul.mubr.msk.bf16.gmra.mrb[116].mxu1 %vm509_vm3, %v1835_v57 }
 0xd27   :  { %6754 = vmatprep.mubr.msk.bf16.mxu1 %vm7699_vm0, %v7698_v3 }
 0xd29   :  { %v1988_v61 = vpop.f32.mrb[108].mxu0 }
 0xd2a   :  { %v6740_v43 = vpop.f32.mrb[109].mxu0  ;;  %v8503_v2 = vadd.f32 %v5834_v41, %v1988_v61 }
 0xd2b   :  { %v1991_v63 = vpop.f32.mrb[110].mxu0 }
 0xd2c   :  { %v8505_v1 = vadd.f32 %v5834_v41, %v1991_v63  ;;  %v6741_v7 = vpop.f32.mrb[111].mxu0 }
 0xd2e   :  { %v2175_v49 = vpack.c.bf16 %v8505_v1, %v8503_v2  ;;  %6755 = vmatmul.mubr.msk.bf16.vlgmr.msra.gmra.mrb[120].mxu1 %vm143_vm2, %v7892_v52 }
 0xd2f   :  { %6758 = vmatprep.mubr.msk.bf16.mxu1 %vm7699_vm0, %v7698_v3 }
 0xd31   :  { %v1996_v9 = vpop.f32.mrb[112].mxu0 }
 0xd32   :  { %v6744_v10 = vpop.f32.mrb[113].mxu0  ;;  %v8513_v15 = vadd.f32 %v5834_v41, %v1996_v9 }
 0xd33   :  { %v1999_v11 = vpop.f32.mrb[114].mxu0 }
 0xd34   :  { %v8515_v55 = vadd.f32 %v5834_v41, %v1999_v11  ;;  %v6745_v20 = vpop.f32.mrb[115].mxu0 }
 0xd36   :  { %v2176_v21 = vpack.c.bf16 %v8515_v55, %v8513_v15  ;;  %6759 = vmatmul.mubr.msk.bf16.gmra.mrb[124].mxu1 %vm143_vm2, %v7908_v62  ;;  %v5856_v62 = vld [vmem:[%s9668_s4 + $0xb] ss:$0 sm:$0xff] }
 0xd37   :  { %6762 = vmatprep.mubr.msk.bf16.mxu1 %vm7699_vm0, %v7698_v3 }
 0xd39   :  { %v2004_v52 = vpop.f32.mrb[116].mxu0 }
 0xd3a   :  { %v6748_v23 = vpop.f32.mrb[117].mxu0  ;;  %v8523_v38 = vadd.f32 %v5834_v41, %v2004_v52 }
 0xd3b   :  { %v2007_v33 = vpop.f32.mrb[118].mxu0 }
 0xd3c   :  { %v8525_v34 = vadd.f32 %v5834_v41, %v2007_v33  ;;  %v6749_v37 = vpop.f32.mrb[119].mxu0 }
 0xd3e   :  { %v2177_v40 = vpack.c.bf16 %v8525_v34, %v8523_v38  ;;  %6763 = vmatmul.mubr.msk.bf16.gmra.mrb[128].mxu1 %vm143_vm2, %v7920_v6 }
 0xd3f   :  { %6788 = vmatprep.mubr.msk.bf16.mxu1 %vm7699_vm0, %v7698_v3 }
 0xd41   :  { %v2152_v44 = vpop.f32.mrb[120].mxu0 }
 0xd42   :  { %v6772_v47 = vpop.f32.mrb[121].mxu0  ;;  %v2153_v17 = vadd.f32 %v5856_v62, %v2152_v44 }
 0xd43   :  { %v2155_v14 = vpop.f32.mrb[122].mxu0 }
 0xd44   :  { %v2156_v32 = vadd.f32 %v5856_v62, %v2155_v14  ;;  %v6773_v4 = vpop.f32.mrb[123].mxu0 }
 0xd46   :  { %v2325_v45 = vpack.c.bf16 %v2156_v32, %v2153_v17 }
 0xd48   :  { %6801 = vmatpush3.bf16.msra.mxu0 %v2325_v45 }
 0xd49   :  { %v2160_v13 = vpop.f32.mrb[124].mxu0  ;;  %6802 = vmatprep.subr.bf16.mxu0 %v7698_v3 }
 0xd4a   :  { %v6776_v12 = vpop.f32.mrb[125].mxu0  ;;  %v2161_v24 = vadd.f32 %v5856_v62, %v2160_v13 }
 0xd4b   :  { %v2163_v6 = vpop.f32.mrb[126].mxu0 }
 0xd4c   :  { %v2164_v25 = vadd.f32 %v5856_v62, %v2163_v6  ;;  %v6777_v28 = vpop.f32.mrb[127].mxu0 }
 0xd4e   :  { %v2326_v46 = vpack.c.bf16 %v2164_v25, %v2161_v24 }
 0xd50   :  { %6803 = vmatpush3.bf16.msra.mxu0 %v2326_v46 }
 0xd51   :  { %v2168_v42 = vpop.f32.mrb[128].mxu0  ;;  %6804 = vmatprep.subr.bf16.mxu0 %v7698_v3 }
 0xd52   :  { %v6780_v48 = vpop.f32.mrb[129].mxu0  ;;  %v2169_v60 = vadd.f32 %v5856_v62, %v2168_v42 }
 0xd53   :  { %v2171_v51 = vpop.f32.mrb[130].mxu0 }
 0xd54   :  { %v2172_v53 = vadd.f32 %v5856_v62, %v2171_v51  ;;  %v6781_v54 = vpop.f32.mrb[131].mxu0 }
 0xd56   :  { %v2327_v57 = vpack.c.bf16 %v2172_v53, %v2169_v60 }
 0xd58   :  { %6805 = vmatpush3.bf16.msra.mxu0 %v2327_v57 }
 0xd59   :  { %6818 = vmatprep.subr.bf16.mxu0 %v7698_v3 }
 0xde9   :  { %v1900_v58 = vpop.f32.mrb[108].mxu1 }
 0xdea   :  { %v8540_v41 = vadd.f32 %v1900_v58, %v8345_v50  ;;  %v6724_v61 = vpop.f32.mrb[109].mxu1 }
 0xdeb   :  { %v1903_v43 = vpop.f32.mrb[110].mxu1 }
 0xdec   :  { %v8543_v63 = vadd.f32 %v1903_v43, %v8348_v56  ;;  %v6725_v7 = vpop.f32.mrb[111].mxu1 }
 0xdf1   :  { %v1908_v9 = vpop.f32.mrb[112].mxu1 }
 0xdf2   :  { %v8546_v10 = vadd.f32 %v1908_v9, %v8350_v27  ;;  %v6728_v11 = vpop.f32.mrb[113].mxu1  ;;  %v5845_v27 = vld [vmem:[%s9668_s4 + $0x7] ss:$0 sm:$0xff] }
 0xdf3   :  { %v1911_v20 = vpop.f32.mrb[114].mxu1 }
 0xdf4   :  { %v8549_v52 = vadd.f32 %v1911_v20, %v8352_v30  ;;  %v6729_v23 = vpop.f32.mrb[115].mxu1 }
 0xdf9   :  { %v1916_v33 = vpop.f32.mrb[116].mxu1 }
 0xdfa   :  { %v8552_v50 = vadd.f32 %v1916_v33, %v8354_v5  ;;  %v6732_v37 = vpop.f32.mrb[117].mxu1 }
 0xdfb   :  { %v1919_v62 = vpop.f32.mrb[118].mxu1 }
 0xdfc   :  { %v8555_v56 = vadd.f32 %v1919_v62, %v8356_v35  ;;  %v6733_v44 = vpop.f32.mrb[119].mxu1 }
 0xe01   :  { %v2070_v47 = vpop.f32.mrb[120].mxu1 }
 0xe02   :  { %v6756_v14 = vpop.f32.mrb[121].mxu1  ;;  %v2071_v30 = vadd.f32 %v5845_v27, %v2070_v47 }
 0xe03   :  { %v2073_v17 = vpop.f32.mrb[122].mxu1 }
 0xe04   :  { %v2074_v32 = vadd.f32 %v5845_v27, %v2073_v17  ;;  %v6757_v4 = vpop.f32.mrb[123].mxu1 }
 0xe06   :  { %v2178_v45 = vpack.c.bf16 %v2074_v32, %v2071_v30 }
 0xe08   :  { %v2191_v5 = vsel %vm509_vm3, %v2178_v45, 0 }
 0xe09   :  { %v2078_v13 = vpop.f32.mrb[124].mxu1  ;;  %6783 = vmatpush3.bf16.xpose.msra.mxu1 %v2191_v5 }
 0xe0a   :  { %v6760_v12 = vpop.f32.mrb[125].mxu1  ;;  %6784 = vmatprep.subr.bf16.mxu1 %v7698_v3  ;;  %v2079_v6 = vadd.f32 %v5845_v27, %v2078_v13 }
 0xe0b   :  { %v2081_v35 = vpop.f32.mrb[126].mxu1 }
 0xe0c   :  { %v2082_v24 = vadd.f32 %v5845_v27, %v2081_v35  ;;  %v6761_v25 = vpop.f32.mrb[127].mxu1 }
 0xe0e   :  { %v2179_v28 = vpack.c.bf16 %v2082_v24, %v2079_v6 }
 0xe10   :  { %v2194_v46 = vsel %vm509_vm3, %v2179_v28, 0 }
 0xe11   :  { %v2086_v42 = vpop.f32.mrb[128].mxu1  ;;  %6785 = vmatpush3.bf16.xpose.msra.mxu1 %v2194_v46 }
 0xe12   :  { %v6764_v48 = vpop.f32.mrb[129].mxu1  ;;  %6786 = vmatprep.subr.bf16.mxu1 %v7698_v3  ;;  %v2087_v60 = vadd.f32 %v5845_v27, %v2086_v42 }
 0xe13   :  { %v2089_v51 = vpop.f32.mrb[130].mxu1 }
 0xe14   :  { %v2090_v53 = vadd.f32 %v5845_v27, %v2089_v51  ;;  %v6765_v54 = vpop.f32.mrb[131].mxu1 }
 0xe16   :  { %v2180_v57 = vpack.c.bf16 %v2090_v53, %v2087_v60 }
 0xe18   :  { %v2197_v58 = vsel %vm509_vm3, %v2180_v57, 0 }
 0xe19   :  { %6787 = vmatpush3.bf16.xpose.msra.mxu1 %v2197_v58 }
 0xe1a   :  { %7306 = vmatprep.subr.bf16.mxu1 %v7698_v3 }
 0xe20   :  { %6789 = vmatmul.mubr.msk.bf16.vlgmr.msra.gmra.mrb[132].mxu1 %vm509_vm3, %v2175_v49 }
 0xe21   :  { %6792 = vmatprep.mubr.msk.bf16.mxu1 %vm7699_vm0, %v7698_v3 }
 0xe28   :  { %6793 = vmatmul.mubr.msk.bf16.gmra.mrb[136].mxu1 %vm509_vm3, %v2176_v21 }
 0xe29   :  { %6796 = vmatprep.mubr.msk.bf16.mxu1 %vm7699_vm0, %v7698_v3 }
 0xe30   :  { %6797 = vmatmul.mubr.msk.bf16.gmra.mrb[140].mxu1 %vm509_vm3, %v2177_v40 }
 0xe31   :  { %6826 = vmatprep.mubr.msk.bf16.mxu1 %vm7699_vm0, %v7698_v3 }
 0xef3   :  { %v2233_v2 = vpop.f32.mrb[132].mxu1 }
 0xef4   :  { %v2234_v1 = vadd.f32 %v8379_v8, %v2233_v2  ;;  %v6790_v49 = vpop.f32.mrb[133].mxu1 }
 0xef5   :  { %v2236_v61 = vpop.f32.mrb[134].mxu1 }
 0xef6   :  { %v2237_v15 = vadd.f32 %v8385_v18, %v2236_v61  ;;  %v6791_v55 = vpop.f32.mrb[135].mxu1  ;;  %v2256_v21 = vsel %vm67_vm1, %v2234_v1, -inf  ;;  %v7346_v61 = vld [vmem:[%s9667_s3 + $0xf0] sm:$0xff]  }
 0xef7   :  { %2257 = vmax.xlane.f32.xlu0 %v2256_v21  ;;  %v7347_v55 = vld [vmem:[%s9667_s3 + $0xf8] sm:$0xff]  }
 0xef8   :  { %v2259_v43 = vsel %vm67_vm1, %v2237_v15, -inf  ;;  %v2425_v21 = vsel %vm509_vm3, %v7347_v55, 0 }
 0xef9   :  { %2260 = vmax.xlane.f32.xlu1 %v2259_v43 }
 0xefb   :  { %v2241_v38 = vpop.f32.mrb[136].mxu1 }
 0xefc   :  { %v2242_v34 = vadd.f32 %v8393_v22, %v2241_v38  ;;  %v6794_v40 = vpop.f32.mrb[137].mxu1 }
 0xefd   :  { %v2244_v7 = vpop.f32.mrb[138].mxu1 }
 0xefe   :  { %v2245_v9 = vadd.f32 %v8399_v31, %v2244_v7  ;;  %v6795_v11 = vpop.f32.mrb[139].mxu1  ;;  %v2262_v8 = vsel %vm67_vm1, %v2242_v34, -inf }
 0xeff   :  { %2263 = vmax.xlane.f32.xlu0 %v2262_v8 }
 0xf00   :  { %v2265_v18 = vsel %vm67_vm1, %v2245_v9, -inf }
 0xf01   :  { %2266 = vmax.xlane.f32.xlu1 %v2265_v18 }
 0xf03   :  { %v2249_v20 = vpop.f32.mrb[140].mxu1 }
 0xf04   :  { %v2250_v23 = vadd.f32 %v8407_v59, %v2249_v20  ;;  %v6798_v33 = vpop.f32.mrb[141].mxu1 }
 0xf05   :  { %v2252_v37 = vpop.f32.mrb[142].mxu1 }
 0xf06   :  { %v2253_v62 = vadd.f32 %v8413_v0, %v2252_v37  ;;  %v6799_v44 = vpop.f32.mrb[143].mxu1  ;;  %v2268_v22 = vsel %vm67_vm1, %v2250_v23, -inf }
 0xf07   :  { %2269 = vmax.xlane.f32.xlu0 %v2268_v22 }
 0xf08   :  { %v2271_v31 = vsel %vm67_vm1, %v2253_v62, -inf }
 0xf09   :  { %2272 = vmax.xlane.f32.xlu1 %v2271_v31 }
 0xf84   :  { %v2258_v27 = vpop.xlane.xlu0 %2257 }
 0xf85   :  { %v2274_v47 = vsub.f32 %v2234_v1, %v2258_v27 }
 0xf86   :  { %v2261_v14 = vpop.xlane.xlu1 %2260 }
 0xf87   :  { %v2280_v17 = vmul.f32 1.442695, %v2274_v47  ;;  %v2275_v30 = vsub.f32 %v2237_v15, %v2261_v14  ;;  %v2422_v15 = vsel %vm509_vm3, %v7346_v61, 0 }
 0xf88   :  { %7308 = vmatpush3.bf16.xpose.msra.mxu1 %v2422_v15 }
 0xf89   :  { %7474 = vpow2.f32 %v2280_v17  ;;  %v2282_v32 = vmul.f32 1.442695, %v2275_v30  ;;  %7307 = vmatprep.subr.bf16.mxu1 %v7698_v3 }
 0xf8b   :  { %7476 = vpow2.f32 %v2282_v32 }
 0xf8c   :  { %v2264_v59 = vpop.xlane.xlu0 %2263 }
 0xf8d   :  { %v2276_v4 = vsub.f32 %v2242_v34, %v2264_v59 }
 0xf8e   :  { %v2267_v45 = vpop.xlane.xlu1 %2266 }
 0xf8f   :  { %v2284_v5 = vmul.f32 1.442695, %v2276_v4  ;;  %v2277_v0 = vsub.f32 %v2245_v9, %v2267_v45 }
 0xf90   :  { %7309 = vmatpush3.bf16.xpose.msra.mxu1 %v2425_v21 }
 0xf91   :  { %7478 = vpow2.f32 %v2284_v5  ;;  %v2286_v13 = vmul.f32 1.442695, %v2277_v0  ;;  %6850 = vmatprep.subr.bf16.mxu1 %v7698_v3 }
 0xf93   :  { %v7475_v12 = vpop.eup %7474  ;;  %7480 = vpow2.f32 %v2286_v13 }
 0xf94   :  { %v2270_v35 = vpop.xlane.xlu0 %2269  ;;  %v2292_v6 = vsel %vm67_vm1, %v7475_v12, 0.0 }
 0xf95   :  { %v7477_v24 = vpop.eup %7476  ;;  %v2278_v25 = vsub.f32 %v2250_v23, %v2270_v35  ;;  %2293 = vadd.xlane.f32.xlu0 %v2292_v6 }
 0xf96   :  { %v2273_v28 = vpop.xlane.xlu1 %2272  ;;  %v2295_v46 = vsel %vm67_vm1, %v7477_v24, 0.0 }
 0xf97   :  { %v2288_v42 = vmul.f32 1.442695, %v2278_v25  ;;  %v2279_v48 = vsub.f32 %v2253_v62, %v2273_v28  ;;  %2296 = vadd.xlane.f32.xlu1 %v2295_v46 }
 0xf99   :  { %7482 = vpow2.f32 %v2288_v42  ;;  %v2290_v51 = vmul.f32 1.442695, %v2279_v48 }
 0xf9b   :  { %v7479_v60 = vpop.eup %7478  ;;  %7484 = vpow2.f32 %v2290_v51 }
 0xf9c   :  { %v2298_v53 = vsel %vm67_vm1, %v7479_v60, 0.0 }
 0xf9d   :  { %v7481_v54 = vpop.eup %7480  ;;  %2299 = vadd.xlane.f32.xlu0 %v2298_v53 }
 0xf9e   :  { %v2301_v57 = vsel %vm67_vm1, %v7481_v54, 0.0 }
 0xf9f   :  { %2302 = vadd.xlane.f32.xlu1 %v2301_v57 }
 0xfa3   :  { %v7483_v58 = vpop.eup %7482 }
 0xfa4   :  { %v2304_v2 = vsel %vm67_vm1, %v7483_v58, 0.0 }
 0xfa5   :  { %v7485_v1 = vpop.eup %7484  ;;  %2305 = vadd.xlane.f32.xlu0 %v2304_v2 }
 0xfa6   :  { %v2307_v49 = vsel %vm67_vm1, %v7485_v1, 0.0 }
 0xfa7   :  { %2308 = vadd.xlane.f32.xlu1 %v2307_v49 }
0x1022   :  { %v2294_v43 = vpop.xlane.xlu0 %2293 }
0x1023   :  { %7486 = vrcp.f32 %v2294_v43 }
0x1024   :  { %v2297_v38 = vpop.xlane.xlu1 %2296 }
0x1025   :  { %7488 = vrcp.f32 %v2297_v38 }
0x102a   :  { %v2300_v34 = vpop.xlane.xlu0 %2299 }
0x102b   :  { %7490 = vrcp.f32 %v2300_v34 }
0x102c   :  { %v2303_v40 = vpop.xlane.xlu1 %2302 }
0x102d   :  { %v7487_v7 = vpop.eup %7486  ;;  %7492 = vrcp.f32 %v2303_v40 }
0x102e   :  { %v2316_v11 = vmul.f32 %v7487_v7, %v7475_v12 }
0x102f   :  { %v7489_v9 = vpop.eup %7488 }
0x1030   :  { %v2317_v8 = vmul.f32 %v7489_v9, %v7477_v24 }
0x1032   :  { %v2322_v18 = vpack.c.bf16 %v2317_v8, %v2316_v11  ;;  %v2306_v20 = vpop.xlane.xlu0 %2305 }
0x1033   :  { %7494 = vrcp.f32 %v2306_v20 }
0x1034   :  { %v2309_v23 = vpop.xlane.xlu1 %2308  ;;  %6807 = vmatmul.mubr.msk.bf16.vlgmr.msra.gmra.mrb[132].mxu0 %vm67_vm1, %v2322_v18 }
0x1035   :  { %v7491_v33 = vpop.eup %7490  ;;  %7496 = vrcp.f32 %v2309_v23  ;;  %6810 = vmatprep.mubr.msk.bf16.mxu0 %vm7699_vm0, %v7698_v3  ;;  %6819 = vmatpush3.bf16.xpose.msra.mxu0 %v2422_v15 }
0x1036   :  { %6820 = vmatprep.subr.bf16.mxu0 %v7698_v3  ;;  %v2318_v62 = vmul.f32 %v7491_v33, %v7479_v60  ;;  %v5878_v60 = vld [vmem:[%s9670_s6 + $0x4] ss:$0 sm:$0xff] }
0x1037   :  { %v7493_v37 = vpop.eup %7492 }
0x1038   :  { %v2319_v44 = vmul.f32 %v7493_v37, %v7481_v54 }
0x103a   :  { %v2323_v22 = vpack.c.bf16 %v2319_v44, %v2318_v62 }
0x103c   :  { %6811 = vmatmul.mubr.msk.bf16.gmra.mrb[136].mxu0 %vm67_vm1, %v2323_v22 }
0x103d   :  { %v7495_v31 = vpop.eup %7494  ;;  %6814 = vmatprep.mubr.msk.bf16.mxu0 %vm7699_vm0, %v7698_v3  ;;  %6821 = vmatpush3.bf16.xpose.msra.mxu0 %v2425_v21 }
0x103e   :  { %6834 = vmatprep.subr.bf16.mxu0 %v7698_v3  ;;  %v2320_v47 = vmul.f32 %v7495_v31, %v7483_v58 }
0x103f   :  { %v7497_v27 = vpop.eup %7496 }
0x1040   :  { %v2321_v14 = vmul.f32 %v7497_v27, %v7485_v1 }
0x1042   :  { %v2324_v17 = vpack.c.bf16 %v2321_v14, %v2320_v47 }
0x1044   :  { %6815 = vmatmul.mubr.msk.bf16.gmra.mrb[140].mxu0 %vm67_vm1, %v2324_v17 }
0x1045   :  { %6822 = vmatprep.mubr.msk.bf16.mxu0 %vm7699_vm0, %v7698_v3 }
0x1107   :  { %v2371_v30 = vpop.f32.mrb[132].mxu0 }
0x1108   :  { %v6808_v32 = vpop.f32.mrb[133].mxu0 }
0x1109   :  { %v2374_v59 = vpop.f32.mrb[134].mxu0 }
0x110a   :  { %v2394_v4 = vpack.c.bf16 %v2374_v59, %v2371_v30  ;;  %v6809_v45 = vpop.f32.mrb[135].mxu0 }
0x110c   :  { %6823 = vmatmul.mubr.msk.bf16.vlgmr.msra.gmra.mrb[144].mxu0 %vm509_vm3, %v2394_v4 }
0x110d   :  { %6838 = vmatprep.mubr.msk.bf16.mxu0 %vm7699_vm0, %v7698_v3 }
0x110f   :  { %v2379_v5 = vpop.f32.mrb[136].mxu0 }
0x1110   :  { %v6812_v0 = vpop.f32.mrb[137].mxu0 }
0x1111   :  { %v2382_v13 = vpop.f32.mrb[138].mxu0 }
0x1112   :  { %v2395_v12 = vpack.c.bf16 %v2382_v13, %v2379_v5  ;;  %v6813_v35 = vpop.f32.mrb[139].mxu0 }
0x1114   :  { %6827 = vmatmul.mubr.msk.bf16.vlgmr.msra.gmra.mrb[144].mxu1 %vm509_vm3, %v2395_v12 }
0x1115   :  { %6830 = vmatprep.mubr.msk.bf16.mxu1 %vm7699_vm0, %v7698_v3 }
0x1117   :  { %v2387_v6 = vpop.f32.mrb[140].mxu0 }
0x1118   :  { %v6816_v24 = vpop.f32.mrb[141].mxu0 }
0x1119   :  { %v2390_v25 = vpop.f32.mrb[142].mxu0 }
0x111a   :  { %v2396_v28 = vpack.c.bf16 %v2390_v25, %v2387_v6  ;;  %v6817_v46 = vpop.f32.mrb[143].mxu0 }
0x111c   :  { %6831 = vmatmul.mubr.msk.bf16.gmra.mrb[148].mxu1 %vm509_vm3, %v2396_v28 }
0x111d   :  { %6854 = vmatprep.mubr.msk.bf16.mxu1 %vm7699_vm0, %v7698_v3 }
0x11df   :  { %v2461_v42 = vpop.f32.mrb[144].mxu0 }
0x11e0   :  { %v2484_v48 = vadd.f32 %v2461_v42, %v8540_v41  ;;  %v6824_v51 = vpop.f32.mrb[145].mxu0 }
0x11e1   :  { %v2464_v53 = vpop.f32.mrb[146].mxu0 }
0x11e2   :  { %v2490_v54 = vadd.f32 %v2484_v48, %v7797_v16  ;;  %v2485_v57 = vadd.f32 %v2464_v53, %v8543_v63  ;;  %v6825_v58 = vpop.f32.mrb[147].mxu0  ;;  %v7348_v53 = vld [vmem:[%s9669_s5] sm:$0xff]  }
0x11e3   :  { %6835 = vmatpush3.bf16.msra.mxu0 %v7348_v53 }
0x11e4   :  { %v8638_v2 = vadd.f32 %v5878_v60, %v2490_v54  ;;  %v2491_v1 = vadd.f32 %v2485_v57, %v7799_v19  ;;  %6836 = vmatprep.subr.bf16.mxu0 %v7698_v3  ;;  %v7349_v54 = vld [vmem:[%s9669_s5 + $0x8] sm:$0xff]  }
0x11e6   :  { %v8641_v49 = vadd.f32 %v5878_v60, %v2491_v1  ;;  %v2514_v41 = vsel %vm143_vm2, %v8638_v2, 0.0 }
0x11e7   :  { %v2469_v61 = vpop.f32.mrb[144].mxu1  ;;  %2515 = vadd.xlane.f32.xlu0 %v2514_v41  ;;  %6837 = vmatpush3.bf16.msra.mxu0 %v7349_v54 }
0x11e8   :  { %v2486_v15 = vadd.f32 %v2469_v61, %v8546_v10  ;;  %v6828_v55 = vpop.f32.mrb[145].mxu1  ;;  %v2517_v16 = vsel %vm143_vm2, %v8641_v49, 0.0  ;;  %6866 = vmatprep.subr.bf16.mxu0 %v7698_v3 }
0x11e9   :  { %v2472_v21 = vpop.f32.mrb[146].mxu1  ;;  %2518 = vadd.xlane.f32.xlu1 %v2517_v16 }
0x11ea   :  { %v2492_v63 = vadd.f32 %v2486_v15, %v7811_v26  ;;  %v2487_v43 = vadd.f32 %v2472_v21, %v8549_v52  ;;  %v6829_v19 = vpop.f32.mrb[147].mxu1 }
0x11ec   :  { %v8650_v38 = vadd.f32 %v5878_v60, %v2492_v63  ;;  %v2493_v34 = vadd.f32 %v2487_v43, %v7813_v29 }
0x11ee   :  { %v8653_v40 = vadd.f32 %v5878_v60, %v2493_v34  ;;  %v2520_v10 = vsel %vm143_vm2, %v8650_v38, 0.0 }
0x11ef   :  { %v2477_v7 = vpop.f32.mrb[148].mxu1  ;;  %2521 = vadd.xlane.f32.xlu0 %v2520_v10  ;;  %v5881_v10 = vld [vmem:[%s9670_s6 + $0x2] ss:$0 sm:$0xff] }
0x11f0   :  { %v2488_v9 = vadd.f32 %v2477_v7, %v8552_v50  ;;  %v6832_v11 = vpop.f32.mrb[149].mxu1  ;;  %v2523_v26 = vsel %vm143_vm2, %v8653_v40, 0.0 }
0x11f1   :  { %v2480_v8 = vpop.f32.mrb[150].mxu1  ;;  %2524 = vadd.xlane.f32.xlu1 %v2523_v26 }
0x11f2   :  { %v2494_v52 = vadd.f32 %v2488_v9, %v7825_v36  ;;  %v2489_v18 = vadd.f32 %v2480_v8, %v8555_v56  ;;  %v6833_v29 = vpop.f32.mrb[151].mxu1 }
0x11f4   :  { %v8662_v20 = vadd.f32 %v5878_v60, %v2494_v52  ;;  %v2495_v23 = vadd.f32 %v2489_v18, %v7827_v39 }
0x11f6   :  { %v8665_v33 = vadd.f32 %v5878_v60, %v2495_v23  ;;  %v2526_v50 = vsel %vm143_vm2, %v8662_v20, 0.0 }
0x11f7   :  { %2527 = vadd.xlane.f32.xlu0 %v2526_v50  ;;  %v5882_v50 = vld [vmem:[%s9670_s6 + $0x3] ss:$0 sm:$0xff] }
0x11f8   :  { %v2529_v37 = vsel %vm143_vm2, %v8665_v33, 0.0 }
0x11f9   :  { %2530 = vadd.xlane.f32.xlu1 %v2529_v37 }
0x1274   :  { %v2516_v62 = vpop.xlane.xlu0 %2515 }
0x1275   :  { %v2532_v44 = vmul.f32 0.03125, %v2516_v62 }
0x1276   :  { %v2519_v36 = vpop.xlane.xlu1 %2518 }
0x1277   :  { %v2538_v56 = vsub.f32 %v8638_v2, %v2532_v44  ;;  %v2533_v22 = vmul.f32 0.03125, %v2519_v36 }
0x1279   :  { %v2539_v31 = vsub.f32 %v8641_v49, %v2533_v22  ;;  %v2544_v27 = vmul.f32 %v2538_v56, %v2538_v56 }
0x127b   :  { %v2550_v39 = vsel %vm143_vm2, %v2544_v27, 0.0  ;;  %v2545_v47 = vmul.f32 %v2539_v31, %v2539_v31 }
0x127c   :  { %2551 = vadd.xlane.f32.xlu0 %v2550_v39  ;;  %v2522_v14 = vpop.xlane.xlu0 %2521 }
0x127d   :  { %v2534_v17 = vmul.f32 0.03125, %v2522_v14  ;;  %v2553_v30 = vsel %vm143_vm2, %v2545_v47, 0.0 }
0x127e   :  { %2554 = vadd.xlane.f32.xlu1 %v2553_v30  ;;  %v2525_v32 = vpop.xlane.xlu1 %2524 }
0x127f   :  { %v2540_v59 = vsub.f32 %v8650_v38, %v2534_v17  ;;  %v2535_v4 = vmul.f32 0.03125, %v2525_v32 }
0x1281   :  { %v8677_v45 = vsub.f32 %v8653_v40, %v2535_v4  ;;  %v2546_v5 = vmul.f32 %v2540_v59, %v2540_v59 }
0x1283   :  { %v2556_v0 = vsel %vm143_vm2, %v2546_v5, 0.0  ;;  %v2547_v13 = vmul.f32 %v8677_v45, %v8677_v45 }
0x1284   :  { %2557 = vadd.xlane.f32.xlu0 %v2556_v0  ;;  %v2528_v12 = vpop.xlane.xlu0 %2527 }
0x1285   :  { %v2536_v35 = vmul.f32 0.03125, %v2528_v12  ;;  %v2559_v6 = vsel %vm143_vm2, %v2547_v13, 0.0 }
0x1286   :  { %2560 = vadd.xlane.f32.xlu1 %v2559_v6  ;;  %v2531_v24 = vpop.xlane.xlu1 %2530 }
0x1287   :  { %v2542_v25 = vsub.f32 %v8662_v20, %v2536_v35  ;;  %v2537_v28 = vmul.f32 0.03125, %v2531_v24  ;;  %v7350_v24 = vld [vmem:[%s9669_s5 + $0x10] sm:$0xff]  }
0x1288   :  { %6851 = vmatpush3.bf16.xpose.msra.mxu1 %v7350_v24 }
0x1289   :  { %v2543_v46 = vsub.f32 %v8665_v33, %v2537_v28  ;;  %v2548_v42 = vmul.f32 %v2542_v25, %v2542_v25  ;;  %6852 = vmatprep.subr.bf16.mxu1 %v7698_v3  ;;  %v5883_v28 = vld [vmem:[%s9671_s7] ss:$0 sm:$0xff] }
0x128b   :  { %v2562_v48 = vsel %vm143_vm2, %v2548_v42, 0.0  ;;  %v2549_v51 = vmul.f32 %v2543_v46, %v2543_v46 }
0x128c   :  { %2563 = vadd.xlane.f32.xlu0 %v2562_v48 }
0x128d   :  { %v2565_v60 = vsel %vm143_vm2, %v2549_v51, 0.0 }
0x128e   :  { %2566 = vadd.xlane.f32.xlu1 %v2565_v60 }
0x1309   :  { %v2552_v57 = vpop.xlane.xlu0 %2551 }
0x130a   :  { %v2568_v58 = vmul.f32 0.03125, %v2552_v57 }
0x130b   :  { %v2555_v1 = vpop.xlane.xlu1 %2554 }
0x130c   :  { %v2574_v41 = vadd.f32 1e-06, %v2568_v58  ;;  %v2569_v61 = vmul.f32 0.03125, %v2555_v1 }
0x130e   :  { %7498 = vrsqrt.f32 %v2574_v41  ;;  %v2575_v15 = vadd.f32 1e-06, %v2569_v61 }
0x1310   :  { %7500 = vrsqrt.f32 %v2575_v15 }
0x1311   :  { %v2558_v55 = vpop.xlane.xlu0 %2557 }
0x1312   :  { %v2570_v16 = vmul.f32 0.03125, %v2558_v55 }
0x1313   :  { %v2561_v21 = vpop.xlane.xlu1 %2560 }
0x1314   :  { %v2576_v63 = vadd.f32 1e-06, %v2570_v16  ;;  %v2571_v43 = vmul.f32 0.03125, %v2561_v21 }
0x1316   :  { %7502 = vrsqrt.f32 %v2576_v63  ;;  %v2577_v19 = vadd.f32 1e-06, %v2571_v43 }
0x1318   :  { %v7499_v34 = vpop.eup %7498  ;;  %7504 = vrsqrt.f32 %v2577_v19 }
0x1319   :  { %v2586_v7 = vmul.f32 %v7499_v34, %v2538_v56  ;;  %v2564_v9 = vpop.xlane.xlu0 %2563 }
0x131a   :  { %v7501_v11 = vpop.eup %7500  ;;  %v2572_v26 = vmul.f32 0.03125, %v2564_v9 }
0x131b   :  { %v2598_v8 = vmul.f32 %v5881_v10, %v2586_v7  ;;  %v2587_v52 = vmul.f32 %v7501_v11, %v2539_v31  ;;  %v2567_v18 = vpop.xlane.xlu1 %2566 }
0x131c   :  { %v2578_v29 = vadd.f32 1e-06, %v2572_v26  ;;  %v2573_v23 = vmul.f32 0.03125, %v2567_v18 }
0x131d   :  { %v2599_v37 = vmul.f32 %v5881_v10, %v2587_v52  ;;  %v2610_v44 = vadd.f32 %v5882_v50, %v2598_v8 }
0x131e   :  { %7506 = vrsqrt.f32 %v2578_v29  ;;  %v2579_v62 = vadd.f32 1e-06, %v2573_v23 }
0x131f   :  { %v2611_v36 = vadd.f32 %v5882_v50, %v2599_v37 }
0x1320   :  { %v7503_v22 = vpop.eup %7502  ;;  %7508 = vrsqrt.f32 %v2579_v62 }
0x1321   :  { %v2588_v56 = vmul.f32 %v7503_v22, %v2540_v59  ;;  %v2616_v27 = vpack.c.bf16 %v2611_v36, %v2610_v44 }
0x1322   :  { %v7505_v39 = vpop.eup %7504 }
0x1323   :  { %v2589_v47 = vmul.f32 %v7505_v39, %v8677_v45  ;;  %6839 = vmatmul.mubr.msk.bf16.vlgmr.msra.gmra.mrb[148].mxu0 %vm143_vm2, %v2616_v27  ;;  %v2600_v31 = vmul.f32 %v5881_v10, %v2588_v56 }
0x1324   :  { %6842 = vmatprep.mubr.msk.bf16.mxu0 %vm7699_vm0, %v7698_v3 }
0x1325   :  { %v2601_v14 = vmul.f32 %v5881_v10, %v2589_v47  ;;  %v2612_v17 = vadd.f32 %v5882_v50, %v2600_v31 }
0x1327   :  { %v2613_v30 = vadd.f32 %v5882_v50, %v2601_v14 }
0x1328   :  { %v7507_v32 = vpop.eup %7506 }
0x1329   :  { %v2590_v4 = vmul.f32 %v7507_v32, %v2542_v25  ;;  %v2617_v5 = vpack.c.bf16 %v2613_v30, %v2612_v17  ;;  %v7351_v25 = vld [vmem:[%s9669_s5 + $0x18] sm:$0xff]  }
0x132a   :  { %v7509_v0 = vpop.eup %7508  ;;  %6853 = vmatpush3.bf16.xpose.msra.mxu1 %v7351_v25 }
0x132b   :  { %v2591_v13 = vmul.f32 %v7509_v0, %v2543_v46  ;;  %6843 = vmatmul.mubr.msk.bf16.gmra.mrb[152].mxu0 %vm143_vm2, %v2617_v5  ;;  %v2602_v59 = vmul.f32 %v5881_v10, %v2590_v4  ;;  %6882 = vmatprep.subr.bf16.mxu1 %v7698_v3 }
0x132c   :  { %6846 = vmatprep.mubr.msk.bf16.mxu0 %vm7699_vm0, %v7698_v3 }
0x132d   :  { %v2603_v45 = vmul.f32 %v5881_v10, %v2591_v13  ;;  %v2614_v12 = vadd.f32 %v5882_v50, %v2602_v59 }
0x132f   :  { %v2615_v35 = vadd.f32 %v5882_v50, %v2603_v45 }
0x1331   :  { %v2618_v6 = vpack.c.bf16 %v2615_v35, %v2614_v12 }
0x1333   :  { %6847 = vmatmul.mubr.msk.bf16.gmra.mrb[156].mxu0 %vm143_vm2, %v2618_v6 }
0x1334   :  { %6870 = vmatprep.mubr.msk.bf16.mxu0 %vm7699_vm0, %v7698_v3 }
0x13f6   :  { %v2685_v46 = vpop.f32.mrb[148].mxu0 }
0x13f7   :  { %v2686_v42 = vadd.f32 %v5883_v28, %v2685_v46  ;;  %v6840_v48 = vpop.f32.mrb[149].mxu0 }
0x13f8   :  { %v2688_v51 = vpop.f32.mrb[150].mxu0 }
0x13f9   :  { %v2714_v60 = vmul.f32 0.044715, %v2686_v42  ;;  %v2689_v53 = vadd.f32 %v5883_v28, %v2688_v51  ;;  %v6841_v54 = vpop.f32.mrb[151].mxu0  ;;  %v2708_v13 = vmul.f32 0.5, %v2686_v42 }
0x13fb   :  { %v2720_v57 = vmul.f32 %v2714_v60, %v2686_v42  ;;  %v2715_v58 = vmul.f32 0.044715, %v2689_v53  ;;  %v2709_v59 = vmul.f32 0.5, %v2689_v53 }
0x13fd   :  { %v2726_v1 = vmul.f32 %v2720_v57, %v2686_v42  ;;  %v2721_v41 = vmul.f32 %v2715_v58, %v2689_v53 }
0x13fe   :  { %v2693_v61 = vpop.f32.mrb[152].mxu0 }
0x13ff   :  { %v2732_v15 = vadd.f32 %v2726_v1, %v2686_v42  ;;  %v2727_v55 = vmul.f32 %v2721_v41, %v2689_v53  ;;  %v2694_v16 = vadd.f32 %v5883_v28, %v2693_v61  ;;  %v6844_v21 = vpop.f32.mrb[153].mxu0 }
0x1400   :  { %v2696_v63 = vpop.f32.mrb[154].mxu0 }
0x1401   :  { %v2738_v43 = vmul.f32 0.7978846, %v2732_v15  ;;  %v2733_v19 = vadd.f32 %v2727_v55, %v2689_v53  ;;  %v2716_v34 = vmul.f32 0.044715, %v2694_v16  ;;  %v2697_v10 = vadd.f32 %v5883_v28, %v2696_v63  ;;  %v6845_v7 = vpop.f32.mrb[155].mxu0 }
0x1402   :  { %v2710_v60 = vmul.f32 0.5, %v2694_v16 }
0x1403   :  { %7510 = vtanh.f32 %v2738_v43  ;;  %v2739_v9 = vmul.f32 0.7978846, %v2733_v19  ;;  %v2722_v11 = vmul.f32 %v2716_v34, %v2694_v16  ;;  %v2717_v26 = vmul.f32 0.044715, %v2697_v10 }
0x1404   :  { %v2711_v54 = vmul.f32 0.5, %v2697_v10 }
0x1405   :  { %7512 = vtanh.f32 %v2739_v9  ;;  %v2728_v8 = vmul.f32 %v2722_v11, %v2694_v16  ;;  %v2723_v52 = vmul.f32 %v2717_v26, %v2697_v10 }
0x1406   :  { %v2701_v18 = vpop.f32.mrb[156].mxu0 }
0x1407   :  { %v2729_v29 = vmul.f32 %v2723_v52, %v2697_v10  ;;  %v2702_v23 = vadd.f32 %v5883_v28, %v2701_v18  ;;  %v6848_v50 = vpop.f32.mrb[157].mxu0  ;;  %v2734_v37 = vadd.f32 %v2728_v8, %v2694_v16  ;;  %v5894_v16 = vld [vmem:[%s9670_s6 + $0x5] ss:$0 sm:$0xff] }
0x1408   :  { %v2704_v62 = vpop.f32.mrb[158].mxu0 }
0x1409   :  { %v2718_v44 = vmul.f32 0.044715, %v2702_v23  ;;  %v2705_v36 = vadd.f32 %v5883_v28, %v2704_v62  ;;  %v6849_v22 = vpop.f32.mrb[159].mxu0  ;;  %v2735_v56 = vadd.f32 %v2729_v29, %v2697_v10  ;;  %v2740_v27 = vmul.f32 0.7978846, %v2734_v37 }
0x140a   :  { %v2712_v15 = vmul.f32 0.5, %v2702_v23 }
0x140b   :  { %v2724_v39 = vmul.f32 %v2718_v44, %v2702_v23  ;;  %v2719_v47 = vmul.f32 0.044715, %v2705_v36  ;;  %v2741_v31 = vmul.f32 0.7978846, %v2735_v56  ;;  %7514 = vtanh.f32 %v2740_v27 }
0x140c   :  { %v2713_v55 = vmul.f32 0.5, %v2705_v36 }
0x140d   :  { %v7511_v14 = vpop.eup %7510  ;;  %v2730_v17 = vmul.f32 %v2724_v39, %v2702_v23  ;;  %v2725_v30 = vmul.f32 %v2719_v47, %v2705_v36  ;;  %7516 = vtanh.f32 %v2741_v31 }
0x140e   :  { %v2750_v32 = vadd.f32 1.0, %v7511_v14 }
0x140f   :  { %v7513_v4 = vpop.eup %7512  ;;  %v2731_v5 = vmul.f32 %v2725_v30, %v2705_v36  ;;  %v2736_v0 = vadd.f32 %v2730_v17, %v2702_v23 }
0x1410   :  { %v2751_v45 = vadd.f32 1.0, %v7513_v4  ;;  %v2756_v6 = vmul.f32 %v2750_v32, %v2708_v13 }
0x1411   :  { %v2737_v12 = vadd.f32 %v2731_v5, %v2705_v36  ;;  %v2742_v35 = vmul.f32 0.7978846, %v2736_v0 }
0x1412   :  { %v2757_v24 = vmul.f32 %v2751_v45, %v2709_v59 }
0x1413   :  { %v2743_v25 = vmul.f32 0.7978846, %v2737_v12  ;;  %7518 = vtanh.f32 %v2742_v35 }
0x1414   :  { %v2762_v28 = vpack.c.bf16 %v2757_v24, %v2756_v6 }
0x1415   :  { %v7515_v46 = vpop.eup %7514  ;;  %7520 = vtanh.f32 %v2743_v25 }
0x1416   :  { %6855 = vmatmul.mubr.bf16.vlgmr.msra.gmra.mrb[152].mxu1 %v2762_v28  ;;  %v2752_v48 = vadd.f32 1.0, %v7515_v46 }
0x1417   :  { %v7517_v51 = vpop.eup %7516  ;;  %6858 = vmatprep.mubr.msk.bf16.mxu1 %vm7699_vm0, %v7698_v3 }
0x1418   :  { %v2753_v42 = vadd.f32 1.0, %v7517_v51  ;;  %v2758_v53 = vmul.f32 %v2752_v48, %v2710_v60 }
0x141a   :  { %v2759_v57 = vmul.f32 %v2753_v42, %v2711_v54 }
0x141c   :  { %v2763_v58 = vpack.c.bf16 %v2759_v57, %v2758_v53 }
0x141d   :  { %v7519_v1 = vpop.eup %7518 }
0x141e   :  { %6859 = vmatmul.mubr.bf16.gmra.mrb[156].mxu1 %v2763_v58  ;;  %v2754_v41 = vadd.f32 1.0, %v7519_v1 }
0x141f   :  { %v7521_v61 = vpop.eup %7520  ;;  %6862 = vmatprep.mubr.msk.bf16.mxu1 %vm7699_vm0, %v7698_v3 }
0x1420   :  { %v2755_v21 = vadd.f32 1.0, %v7521_v61  ;;  %v2760_v63 = vmul.f32 %v2754_v41, %v2712_v15 }
0x1422   :  { %v2761_v43 = vmul.f32 %v2755_v21, %v2713_v55 }
0x1424   :  { %v2764_v19 = vpack.c.bf16 %v2761_v43, %v2760_v63  ;;  %v7352_v43 = vld [vmem:[%s9667_s3 + $0x140] sm:$0xff]  }
0x1425   :  { %6883 = vmatpush3.bf16.msra.mxu1 %v7352_v43 }
0x1426   :  { %6863 = vmatmul.mubr.bf16.gmra.mrb[160].mxu1 %v2764_v19  ;;  %v7354_v19 = vld [vmem:[%s9667_s3 + $0x100] sm:$0xff]   ;;  %6884 = vmatprep.subr.bf16.mxu1 %v7698_v3 }
0x1427   :  { %6886 = vmatprep.mubr.msk.bf16.mxu1 %vm7699_vm0, %v7698_v3  ;;  %6867 = vmatpush3.bf16.msra.mxu0 %v7354_v19 }
0x1428   :  { %6868 = vmatprep.subr.bf16.mxu0 %v7698_v3 }
0x14e9   :  { %v2824_v34 = vpop.f32.mrb[152].mxu1 }
0x14ea   :  { %v2825_v10 = vadd.f32 %v5894_v16, %v2824_v34  ;;  %v6856_v7 = vpop.f32.mrb[153].mxu1  ;;  %v7355_v34 = vld [vmem:[%s9667_s3 + $0x108] sm:$0xff]  }
0x14eb   :  { %v2827_v9 = vpop.f32.mrb[154].mxu1  ;;  %6869 = vmatpush3.bf16.msra.mxu0 %v7355_v34 }
0x14ec   :  { %v8732_v11 = vadd.f32 %v2825_v10, %v8638_v2  ;;  %v2828_v26 = vadd.f32 %v5894_v16, %v2827_v9  ;;  %v6857_v8 = vpop.f32.mrb[155].mxu1  ;;  %6898 = vmatprep.subr.bf16.mxu0 %v7698_v3 }
0x14ee   :  { %v8735_v52 = vadd.f32 %v2828_v26, %v8641_v49  ;;  %v2857_v18 = vsel %vm143_vm2, %v8732_v11, 0.0 }
0x14ef   :  { %2858 = vadd.xlane.f32.xlu0 %v2857_v18 }
0x14f0   :  { %v2860_v29 = vsel %vm143_vm2, %v8735_v52, 0.0 }
0x14f1   :  { %2861 = vadd.xlane.f32.xlu1 %v2860_v29  ;;  %v2832_v23 = vpop.f32.mrb[156].mxu1 }
0x14f2   :  { %v2833_v50 = vadd.f32 %v5894_v16, %v2832_v23  ;;  %v6860_v37 = vpop.f32.mrb[157].mxu1 }
0x14f3   :  { %v2835_v62 = vpop.f32.mrb[158].mxu1 }
0x14f4   :  { %v8742_v2 = vadd.f32 %v2833_v50, %v8650_v38  ;;  %v2836_v44 = vadd.f32 %v5894_v16, %v2835_v62  ;;  %v6861_v36 = vpop.f32.mrb[159].mxu1 }
0x14f6   :  { %v8745_v49 = vadd.f32 %v2836_v44, %v8653_v40  ;;  %v2863_v22 = vsel %vm143_vm2, %v8742_v2, 0.0 }
0x14f7   :  { %2864 = vadd.xlane.f32.xlu0 %v2863_v22  ;;  %v5899_v22 = vld [vmem:[%s9670_s6 + $0x6] ss:$0 sm:$0xff] }
0x14f8   :  { %v2866_v56 = vsel %vm143_vm2, %v8745_v49, 0.0 }
0x14f9   :  { %2867 = vadd.xlane.f32.xlu1 %v2866_v56  ;;  %v2840_v27 = vpop.f32.mrb[160].mxu1 }
0x14fa   :  { %v2841_v39 = vadd.f32 %v5894_v16, %v2840_v27  ;;  %v6864_v47 = vpop.f32.mrb[161].mxu1 }
0x14fb   :  { %v2843_v31 = vpop.f32.mrb[162].mxu1 }
0x14fc   :  { %v8752_v38 = vadd.f32 %v2841_v39, %v8662_v20  ;;  %v2844_v14 = vadd.f32 %v5894_v16, %v2843_v31  ;;  %v6865_v17 = vpop.f32.mrb[163].mxu1  ;;  %v7353_v16 = vld [vmem:[%s9667_s3 + $0x148] sm:$0xff]  }
0x14fd   :  { %6885 = vmatpush3.bf16.msra.mxu1 %v7353_v16 }
0x14fe   :  { %v8755_v40 = vadd.f32 %v2844_v14, %v8665_v33  ;;  %v2869_v30 = vsel %vm143_vm2, %v8752_v38, 0.0  ;;  %6914 = vmatprep.subr.bf16.mxu1 %v7698_v3 }
0x14ff   :  { %2870 = vadd.xlane.f32.xlu0 %v2869_v30  ;;  %v5900_v30 = vld [vmem:[%s9670_s6 + $0x7] ss:$0 sm:$0xff] }
0x1500   :  { %v2872_v32 = vsel %vm143_vm2, %v8755_v40, 0.0 }
0x1501   :  { %2873 = vadd.xlane.f32.xlu1 %v2872_v32 }
0x157c   :  { %v2859_v4 = vpop.xlane.xlu0 %2858 }
0x157d   :  { %v2875_v5 = vmul.f32 0.03125, %v2859_v4 }
0x157e   :  { %v2862_v0 = vpop.xlane.xlu1 %2861 }
0x157f   :  { %v8762_v13 = vsub.f32 %v8732_v11, %v2875_v5  ;;  %v2876_v20 = vmul.f32 0.03125, %v2862_v0 }
0x1581   :  { %v8765_v59 = vsub.f32 %v8735_v52, %v2876_v20  ;;  %v2887_v33 = vmul.f32 %v8762_v13, %v8762_v13 }
0x1583   :  { %v2893_v45 = vsel %vm143_vm2, %v2887_v33, 0.0  ;;  %v2888_v12 = vmul.f32 %v8765_v59, %v8765_v59 }
0x1584   :  { %v2865_v35 = vpop.xlane.xlu0 %2864  ;;  %2894 = vadd.xlane.f32.xlu0 %v2893_v45 }
0x1585   :  { %v2877_v6 = vmul.f32 0.03125, %v2865_v35  ;;  %v2896_v24 = vsel %vm143_vm2, %v2888_v12, 0.0 }
0x1586   :  { %v2868_v25 = vpop.xlane.xlu1 %2867  ;;  %2897 = vadd.xlane.f32.xlu1 %v2896_v24 }
0x1587   :  { %v8774_v28 = vsub.f32 %v8742_v2, %v2877_v6  ;;  %v2878_v46 = vmul.f32 0.03125, %v2868_v25 }
0x1589   :  { %v8777_v48 = vsub.f32 %v8745_v49, %v2878_v46  ;;  %v2889_v51 = vmul.f32 %v8774_v28, %v8774_v28 }
0x158b   :  { %v2899_v60 = vsel %vm143_vm2, %v2889_v51, 0.0  ;;  %v2890_v54 = vmul.f32 %v8777_v48, %v8777_v48 }
0x158c   :  { %2900 = vadd.xlane.f32.xlu0 %v2899_v60  ;;  %v2871_v42 = vpop.xlane.xlu0 %2870 }
0x158d   :  { %v2879_v53 = vmul.f32 0.03125, %v2871_v42  ;;  %v2902_v57 = vsel %vm143_vm2, %v2890_v54, 0.0 }
0x158e   :  { %2903 = vadd.xlane.f32.xlu1 %v2902_v57  ;;  %v2874_v58 = vpop.xlane.xlu1 %2873 }
0x158f   :  { %v8786_v1 = vsub.f32 %v8752_v38, %v2879_v53  ;;  %v2880_v41 = vmul.f32 0.03125, %v2874_v58 }
0x1591   :  { %v8789_v61 = vsub.f32 %v8755_v40, %v2880_v41  ;;  %v2891_v15 = vmul.f32 %v8786_v1, %v8786_v1 }
0x1593   :  { %v2905_v55 = vsel %vm143_vm2, %v2891_v15, 0.0  ;;  %v2892_v21 = vmul.f32 %v8789_v61, %v8789_v61 }
0x1594   :  { %2906 = vadd.xlane.f32.xlu0 %v2905_v55 }
0x1595   :  { %v2908_v63 = vsel %vm143_vm2, %v2892_v21, 0.0  ;;  %v5917_v21 = vld [vmem:[%s9668_s4 + $0x10] ss:$0 sm:$0xff] }
0x1596   :  { %2909 = vadd.xlane.f32.xlu1 %v2908_v63 }
0x1611   :  { %v2895_v10 = vpop.xlane.xlu0 %2894 }
0x1612   :  { %v2911_v7 = vmul.f32 0.03125, %v2895_v10 }
0x1613   :  { %v2898_v9 = vpop.xlane.xlu1 %2897 }
0x1614   :  { %v2917_v26 = vadd.f32 1e-06, %v2911_v7  ;;  %v2912_v8 = vmul.f32 0.03125, %v2898_v9 }
0x1616   :  { %7522 = vrsqrt.f32 %v2917_v26  ;;  %v2918_v18 = vadd.f32 1e-06, %v2912_v8 }
0x1618   :  { %7524 = vrsqrt.f32 %v2918_v18 }
0x1619   :  { %v2901_v29 = vpop.xlane.xlu0 %2900 }
0x161a   :  { %v2913_v23 = vmul.f32 0.03125, %v2901_v29 }
0x161b   :  { %v2904_v50 = vpop.xlane.xlu1 %2903 }
0x161c   :  { %v2919_v37 = vadd.f32 1e-06, %v2913_v23  ;;  %v2914_v62 = vmul.f32 0.03125, %v2904_v50 }
0x161e   :  { %7526 = vrsqrt.f32 %v2919_v37  ;;  %v2920_v44 = vadd.f32 1e-06, %v2914_v62 }
0x1620   :  { %v7523_v36 = vpop.eup %7522  ;;  %7528 = vrsqrt.f32 %v2920_v44 }
0x1621   :  { %v2929_v56 = vmul.f32 %v7523_v36, %v8762_v13  ;;  %v2907_v27 = vpop.xlane.xlu0 %2906 }
0x1622   :  { %v7525_v39 = vpop.eup %7524  ;;  %v2915_v47 = vmul.f32 0.03125, %v2907_v27 }
0x1623   :  { %v2941_v31 = vmul.f32 %v5899_v22, %v2929_v56  ;;  %v2930_v14 = vmul.f32 %v7525_v39, %v8765_v59  ;;  %v2910_v17 = vpop.xlane.xlu1 %2909  ;;  %v7356_v59 = vld [vmem:[%s9667_s3 + $0x180] sm:$0xff]  }
0x1624   :  { %v2921_v32 = vadd.f32 1e-06, %v2915_v47  ;;  %v2916_v4 = vmul.f32 0.03125, %v2910_v17 }
0x1625   :  { %v2942_v5 = vmul.f32 %v5899_v22, %v2930_v14  ;;  %v2953_v20 = vadd.f32 %v5900_v30, %v2941_v31 }
0x1626   :  { %7530 = vrsqrt.f32 %v2921_v32  ;;  %v2922_v0 = vadd.f32 1e-06, %v2916_v4 }
0x1627   :  { %v2954_v33 = vadd.f32 %v5900_v30, %v2942_v5 }
0x1628   :  { %v7527_v45 = vpop.eup %7526  ;;  %7532 = vrsqrt.f32 %v2922_v0 }
0x1629   :  { %v8821_v13 = vpack.c.bf16 %v2954_v33, %v2953_v20  ;;  %v2931_v12 = vmul.f32 %v7527_v45, %v8774_v28  ;;  %v7357_v28 = vld [vmem:[%s9667_s3 + $0x188] sm:$0xff]  }
0x162a   :  { %v7529_v35 = vpop.eup %7528 }
0x162b   :  { %v2943_v6 = vmul.f32 %v5899_v22, %v2931_v12  ;;  %v2932_v24 = vmul.f32 %v7529_v35, %v8777_v48  ;;  %6871 = vmatmul.mubr.msk.bf16.vlgmr.msra.gmra.mrb[160].mxu0 %vm143_vm2, %v8821_v13  ;;  %6887 = vmatmul.mubr.msk.bf16.vlgmr.msra.gmra.mrb[164].mxu1 %vm143_vm2, %v8821_v13 }
0x162c   :  { %6874 = vmatprep.mubr.msk.bf16.mxu0 %vm7699_vm0, %v7698_v3  ;;  %6890 = vmatprep.mubr.msk.bf16.mxu1 %vm7699_vm0, %v7698_v3 }
0x162d   :  { %v2944_v25 = vmul.f32 %v5899_v22, %v2932_v24  ;;  %6899 = vmatpush3.bf16.msra.mxu0 %v7356_v59  ;;  %v2955_v46 = vadd.f32 %v5900_v30, %v2943_v6 }
0x162e   :  { %6900 = vmatprep.subr.bf16.mxu0 %v7698_v3 }
0x162f   :  { %v2956_v48 = vadd.f32 %v5900_v30, %v2944_v25 }
0x1630   :  { %v7531_v51 = vpop.eup %7530 }
0x1631   :  { %v8840_v60 = vpack.c.bf16 %v2956_v48, %v2955_v46  ;;  %v2933_v54 = vmul.f32 %v7531_v51, %v8786_v1  ;;  %6901 = vmatpush3.bf16.msra.mxu0 %v7357_v28 }
0x1632   :  { %v7533_v42 = vpop.eup %7532  ;;  %6932 = vmatprep.subr.bf16.mxu0 %v7698_v3 }
0x1633   :  { %v2945_v53 = vmul.f32 %v5899_v22, %v2933_v54  ;;  %v2934_v57 = vmul.f32 %v7533_v42, %v8789_v61  ;;  %6875 = vmatmul.mubr.msk.bf16.gmra.mrb[164].mxu0 %vm143_vm2, %v8840_v60  ;;  %6891 = vmatmul.mubr.msk.bf16.gmra.mrb[168].mxu1 %vm143_vm2, %v8840_v60  ;;  %v5906_v61 = vld [vmem:[%s9668_s4 + $0xc] ss:$0 sm:$0xff]  ;;  %v5928_v54 = vld [vmem:[%s9668_s4 + $0x14] ss:$0 sm:$0xff] }
0x1634   :  { %6878 = vmatprep.mubr.msk.bf16.mxu0 %vm7699_vm0, %v7698_v3  ;;  %6894 = vmatprep.mubr.msk.bf16.mxu1 %vm7699_vm0, %v7698_v3 }
0x1635   :  { %v2946_v58 = vmul.f32 %v5899_v22, %v2934_v57  ;;  %v2957_v1 = vadd.f32 %v5900_v30, %v2945_v53 }
0x1637   :  { %v2958_v41 = vadd.f32 %v5900_v30, %v2946_v58 }
0x1639   :  { %v8853_v15 = vpack.c.bf16 %v2958_v41, %v2957_v1 }
0x163b   :  { %6879 = vmatmul.mubr.msk.bf16.gmra.mrb[168].mxu0 %vm143_vm2, %v8853_v15  ;;  %6895 = vmatmul.mubr.msk.bf16.gmra.mrb[172].mxu1 %vm143_vm2, %v8853_v15 }
0x163c   :  { %6902 = vmatprep.mubr.msk.bf16.mxu0 %vm7699_vm0, %v7698_v3  ;;  %6920 = vmatprep.mubr.msk.bf16.mxu1 %vm7699_vm0, %v7698_v3 }
0x1643   :  { %6903 = vmatmul.mubr.msk.bf16.vlgmr.msra.gmra.mrb[172].mxu0 %vm143_vm2, %v8821_v13 }
0x1644   :  { %6906 = vmatprep.mubr.msk.bf16.mxu0 %vm7699_vm0, %v7698_v3 }
0x164b   :  { %6907 = vmatmul.mubr.msk.bf16.gmra.mrb[176].mxu0 %vm143_vm2, %v8840_v60 }
0x164c   :  { %6910 = vmatprep.mubr.msk.bf16.mxu0 %vm7699_vm0, %v7698_v3 }
0x1653   :  { %6911 = vmatmul.mubr.msk.bf16.gmra.mrb[180].mxu0 %vm143_vm2, %v8853_v15 }
0x1654   :  { %6938 = vmatprep.mubr.msk.bf16.mxu0 %vm7699_vm0, %v7698_v3 }
0x16fe   :  { %v3030_v55 = vpop.f32.mrb[160].mxu0  ;;  %v3112_v63 = vpop.f32.mrb[164].mxu1 }
0x16ff   :  { %v6872_v43 = vpop.f32.mrb[161].mxu0  ;;  %v6888_v19 = vpop.f32.mrb[165].mxu1  ;;  %v3031_v10 = vadd.f32 %v5906_v61, %v3030_v55  ;;  %v3113_v7 = vadd.f32 %v5917_v21, %v3112_v63  ;;  %v7358_v55 = vld [vmem:[%s9667_s3 + $0x110] sm:$0xff]  }
0x1700   :  { %v3033_v16 = vpop.f32.mrb[162].mxu0  ;;  %v3115_v34 = vpop.f32.mrb[166].mxu1  ;;  %v7359_v43 = vld [vmem:[%s9667_s3 + $0x118] sm:$0xff]  }
0x1701   :  { %v3034_v9 = vadd.f32 %v5906_v61, %v3033_v16  ;;  %v3116_v26 = vadd.f32 %v5917_v21, %v3115_v34  ;;  %v6873_v8 = vpop.f32.mrb[163].mxu0  ;;  %v6889_v18 = vpop.f32.mrb[167].mxu1 }
0x1703   :  { %v3217_v29 = vpack.c.bf16 %v3034_v9, %v3031_v10  ;;  %v3220_v23 = vpack.c.bf16 %v3116_v26, %v3113_v7 }
0x1705   :  { %v3233_v50 = vsel %vm509_vm3, %v3220_v23, 0 }
0x1706   :  { %v3038_v37 = vpop.f32.mrb[164].mxu0  ;;  %v3120_v62 = vpop.f32.mrb[168].mxu1  ;;  %6915 = vmatpush3.bf16.xpose.msra.mxu1 %v3233_v50 }
0x1707   :  { %v6876_v44 = vpop.f32.mrb[165].mxu0  ;;  %v6892_v36 = vpop.f32.mrb[169].mxu1  ;;  %6916 = vmatprep.subr.bf16.mxu1 %v7698_v3  ;;  %v3039_v27 = vadd.f32 %v5906_v61, %v3038_v37  ;;  %v3121_v39 = vadd.f32 %v5917_v21, %v3120_v62  ;;  %v7360_v37 = vld [vmem:[%s9667_s3 + $0x190] sm:$0xff]   ;;  %v7361_v62 = vld [vmem:[%s9667_s3 + $0x198] sm:$0xff]  }
0x1708   :  { %v3041_v22 = vpop.f32.mrb[166].mxu0  ;;  %v3123_v56 = vpop.f32.mrb[170].mxu1  ;;  %v8945_v36 = vld [vmem:[%s9665_s1] sm:$0xff] }
0x1709   :  { %v3042_v47 = vadd.f32 %v5906_v61, %v3041_v22  ;;  %v3124_v31 = vadd.f32 %v5917_v21, %v3123_v56  ;;  %v6877_v14 = vpop.f32.mrb[167].mxu0  ;;  %v6893_v17 = vpop.f32.mrb[171].mxu1 }
0x170b   :  { %v3218_v30 = vpack.c.bf16 %v3042_v47, %v3039_v27  ;;  %v3221_v32 = vpack.c.bf16 %v3124_v31, %v3121_v39  ;;  %v8953_v39 = vld [vmem:[%s9665_s1 + $0x8] sm:$0xff] }
0x170d   :  { %v3236_v4 = vsel %vm509_vm3, %v3221_v32, 0  ;;  %v8965_v32 = vld [vmem:[%s9665_s1 + $0x10] sm:$0xff] }
0x170e   :  { %v3046_v5 = vpop.f32.mrb[168].mxu0  ;;  %v3128_v0 = vpop.f32.mrb[172].mxu1  ;;  %6917 = vmatpush3.bf16.xpose.msra.mxu1 %v3236_v4 }
0x170f   :  { %v6880_v20 = vpop.f32.mrb[169].mxu0  ;;  %v6896_v33 = vpop.f32.mrb[173].mxu1  ;;  %6918 = vmatprep.subr.bf16.mxu1 %v7698_v3  ;;  %v3047_v59 = vadd.f32 %v5906_v61, %v3046_v5  ;;  %v3129_v35 = vadd.f32 %v5917_v21, %v3128_v0 }
0x1710   :  { %v3049_v45 = vpop.f32.mrb[170].mxu0  ;;  %v3131_v12 = vpop.f32.mrb[174].mxu1  ;;  %v8973_v20 = vld [vmem:[%s9665_s1 + $0x18] sm:$0xff] }
0x1711   :  { %v3050_v6 = vadd.f32 %v5906_v61, %v3049_v45  ;;  %v3132_v24 = vadd.f32 %v5917_v21, %v3131_v12  ;;  %v6881_v25 = vpop.f32.mrb[171].mxu0  ;;  %v6897_v28 = vpop.f32.mrb[175].mxu1 }
0x1713   :  { %v3219_v46 = vpack.c.bf16 %v3050_v6, %v3047_v59  ;;  %v3222_v48 = vpack.c.bf16 %v3132_v24, %v3129_v35  ;;  %v8985_v6 = vld [vmem:[%s9665_s1 + $0x20] sm:$0xff] }
0x1715   :  { %v3239_v51 = vsel %vm509_vm3, %v3222_v48, 0 }
0x1716   :  { %v3194_v42 = vpop.f32.mrb[172].mxu0  ;;  %6919 = vmatpush3.bf16.xpose.msra.mxu1 %v3239_v51 }
0x1717   :  { %v6904_v53 = vpop.f32.mrb[173].mxu0  ;;  %6950 = vmatprep.subr.bf16.mxu1 %v7698_v3  ;;  %v3195_v58 = vadd.f32 %v5928_v54, %v3194_v42 }
0x1718   :  { %v3197_v57 = vpop.f32.mrb[174].mxu0  ;;  %v5949_v53 = vld [vmem:[%s9668_s4 + $0xd] ss:$0 sm:$0xff] }
0x1719   :  { %v3198_v1 = vadd.f32 %v5928_v54, %v3197_v57  ;;  %v6905_v41 = vpop.f32.mrb[175].mxu0 }
0x171b   :  { %v3367_v61 = vpack.c.bf16 %v3198_v1, %v3195_v58 }
0x171d   :  { %6921 = vmatmul.mubr.msk.bf16.vlgmr.msra.gmra.mrb[176].mxu1 %vm509_vm3, %v3217_v29  ;;  %6933 = vmatpush3.bf16.msra.mxu0 %v3367_v61 }
0x171e   :  { %v3202_v21 = vpop.f32.mrb[176].mxu0  ;;  %6924 = vmatprep.mubr.msk.bf16.mxu1 %vm7699_vm0, %v7698_v3  ;;  %6934 = vmatprep.subr.bf16.mxu0 %v7698_v3 }
0x171f   :  { %v6908_v63 = vpop.f32.mrb[177].mxu0  ;;  %6951 = vmatpush3.bf16.msra.mxu1 %v7358_v55  ;;  %v3203_v16 = vadd.f32 %v5928_v54, %v3202_v21 }
0x1720   :  { %v3205_v19 = vpop.f32.mrb[178].mxu0  ;;  %6952 = vmatprep.subr.bf16.mxu1 %v7698_v3 }
0x1721   :  { %v3206_v34 = vadd.f32 %v5928_v54, %v3205_v19  ;;  %v6909_v10 = vpop.f32.mrb[179].mxu0 }
0x1723   :  { %v3368_v7 = vpack.c.bf16 %v3206_v34, %v3203_v16  ;;  %6953 = vmatpush3.bf16.msra.mxu1 %v7359_v43 }
0x1724   :  { %6982 = vmatprep.subr.bf16.mxu1 %v7698_v3 }
0x1725   :  { %6925 = vmatmul.mubr.msk.bf16.gmra.mrb[180].mxu1 %vm509_vm3, %v3218_v30  ;;  %6935 = vmatpush3.bf16.msra.mxu0 %v3368_v7 }
0x1726   :  { %v3210_v9 = vpop.f32.mrb[180].mxu0  ;;  %6928 = vmatprep.mubr.msk.bf16.mxu1 %vm7699_vm0, %v7698_v3  ;;  %6936 = vmatprep.subr.bf16.mxu0 %v7698_v3 }
0x1727   :  { %v6912_v26 = vpop.f32.mrb[181].mxu0  ;;  %v3211_v18 = vadd.f32 %v5928_v54, %v3210_v9 }
0x1728   :  { %v3213_v8 = vpop.f32.mrb[182].mxu0 }
0x1729   :  { %v3214_v29 = vadd.f32 %v5928_v54, %v3213_v8  ;;  %v6913_v23 = vpop.f32.mrb[183].mxu0 }
0x172b   :  { %v3369_v50 = vpack.c.bf16 %v3214_v29, %v3211_v18 }
0x172d   :  { %6929 = vmatmul.mubr.msk.bf16.gmra.mrb[184].mxu1 %vm509_vm3, %v3219_v46  ;;  %6937 = vmatpush3.bf16.msra.mxu0 %v3369_v50  ;;  %v8993_v46 = vld [vmem:[%s9665_s1 + $0x28] sm:$0xff] }
0x172e   :  { %6954 = vmatprep.mubr.msk.bf16.mxu1 %vm7699_vm0, %v7698_v3  ;;  %6966 = vmatprep.subr.bf16.mxu0 %v7698_v3 }
0x1735   :  { %6955 = vmatmul.mubr.msk.bf16.vlgmr.msra.gmra.mrb[188].mxu1 %vm143_vm2, %v8821_v13 }
0x1736   :  { %6958 = vmatprep.mubr.msk.bf16.mxu1 %vm7699_vm0, %v7698_v3  ;;  %6983 = vmatpush3.bf16.msra.mxu1 %v7360_v37  ;;  %v5971_v37 = vld [vmem:[%s9668_s4 + $0x15] ss:$0 sm:$0xff] }
0x1737   :  { %6984 = vmatprep.subr.bf16.mxu1 %v7698_v3 }
0x173a   :  { %6985 = vmatpush3.bf16.msra.mxu1 %v7361_v62 }
0x173b   :  { %7016 = vmatprep.subr.bf16.mxu1 %v7698_v3 }
0x173d   :  { %6959 = vmatmul.mubr.msk.bf16.gmra.mrb[192].mxu1 %vm143_vm2, %v8840_v60 }
0x173e   :  { %6962 = vmatprep.mubr.msk.bf16.mxu1 %vm7699_vm0, %v7698_v3 }
0x1745   :  { %6963 = vmatmul.mubr.msk.bf16.gmra.mrb[196].mxu1 %vm143_vm2, %v8853_v15 }
0x1746   :  { %6986 = vmatprep.mubr.msk.bf16.mxu1 %vm7699_vm0, %v7698_v3 }
0x174d   :  { %6987 = vmatmul.mubr.msk.bf16.vlgmr.msra.gmra.mrb[200].mxu1 %vm143_vm2, %v8821_v13 }
0x174e   :  { %6990 = vmatprep.mubr.msk.bf16.mxu1 %vm7699_vm0, %v7698_v3 }
0x1755   :  { %6991 = vmatmul.mubr.msk.bf16.gmra.mrb[204].mxu1 %vm143_vm2, %v8840_v60 }
0x1756   :  { %6994 = vmatprep.mubr.msk.bf16.mxu1 %vm7699_vm0, %v7698_v3 }
0x175d   :  { %6995 = vmatmul.mubr.msk.bf16.gmra.mrb[208].mxu1 %vm143_vm2, %v8853_v15 }
0x175e   :  { %7022 = vmatprep.mubr.msk.bf16.mxu1 %vm7699_vm0, %v7698_v3 }
0x17f0   :  { %v3275_v44 = vpop.f32.mrb[176].mxu1 }
0x17f1   :  { %v8948_v22 = vadd.f32 %v8945_v36, %v3275_v44  ;;  %v6922_v56 = vpop.f32.mrb[177].mxu1 }
0x17f2   :  { %v3278_v27 = vpop.f32.mrb[178].mxu1 }
0x17f3   :  { %v8956_v47 = vadd.f32 %v8953_v39, %v3278_v27  ;;  %v6923_v31 = vpop.f32.mrb[179].mxu1  ;;  %v3298_v14 = vsel %vm67_vm1, %v8948_v22, -inf }
0x17f4   :  { %3299 = vmax.xlane.f32.xlu0 %v3298_v14 }
0x17f5   :  { %v3301_v17 = vsel %vm67_vm1, %v8956_v47, -inf }
0x17f6   :  { %3302 = vmax.xlane.f32.xlu1 %v3301_v17 }
0x17f8   :  { %v3283_v30 = vpop.f32.mrb[180].mxu1 }
0x17f9   :  { %v8968_v4 = vadd.f32 %v8965_v32, %v3283_v30  ;;  %v6926_v5 = vpop.f32.mrb[181].mxu1 }
0x17fa   :  { %v3286_v0 = vpop.f32.mrb[182].mxu1 }
0x17fb   :  { %v8976_v33 = vadd.f32 %v8973_v20, %v3286_v0  ;;  %v6927_v45 = vpop.f32.mrb[183].mxu1  ;;  %v3304_v12 = vsel %vm67_vm1, %v8968_v4, -inf }
0x17fc   :  { %3305 = vmax.xlane.f32.xlu0 %v3304_v12 }
0x17fd   :  { %v3307_v59 = vsel %vm67_vm1, %v8976_v33, -inf }
0x17fe   :  { %3308 = vmax.xlane.f32.xlu1 %v3307_v59 }
0x1800   :  { %v3291_v35 = vpop.f32.mrb[184].mxu1 }
0x1801   :  { %v8988_v24 = vadd.f32 %v8985_v6, %v3291_v35  ;;  %v6930_v25 = vpop.f32.mrb[185].mxu1 }
0x1802   :  { %v3294_v28 = vpop.f32.mrb[186].mxu1 }
0x1803   :  { %v8996_v48 = vadd.f32 %v8993_v46, %v3294_v28  ;;  %v6931_v51 = vpop.f32.mrb[187].mxu1  ;;  %v3310_v54 = vsel %vm67_vm1, %v8988_v24, -inf }
0x1804   :  { %3311 = vmax.xlane.f32.xlu0 %v3310_v54 }
0x1805   :  { %v3313_v42 = vsel %vm67_vm1, %v8996_v48, -inf }
0x1806   :  { %3314 = vmax.xlane.f32.xlu1 %v3313_v42 }
0x1808   :  { %v3503_v57 = vpop.f32.mrb[188].mxu1 }
0x1809   :  { %v6956_v58 = vpop.f32.mrb[189].mxu1  ;;  %v9005_v41 = vadd.f32 %v5949_v53, %v3503_v57 }
0x180a   :  { %v3506_v1 = vpop.f32.mrb[190].mxu1 }
0x180b   :  { %v9007_v61 = vadd.f32 %v5949_v53, %v3506_v1  ;;  %v6957_v55 = vpop.f32.mrb[191].mxu1 }
0x180d   :  { %v3690_v21 = vpack.c.bf16 %v9007_v61, %v9005_v41 }
0x1810   :  { %v3511_v63 = vpop.f32.mrb[192].mxu1 }
0x1811   :  { %v6960_v43 = vpop.f32.mrb[193].mxu1  ;;  %v9011_v16 = vadd.f32 %v5949_v53, %v3511_v63 }
0x1812   :  { %v3514_v19 = vpop.f32.mrb[194].mxu1 }
0x1813   :  { %v9013_v34 = vadd.f32 %v5949_v53, %v3514_v19  ;;  %v6961_v10 = vpop.f32.mrb[195].mxu1 }
0x1815   :  { %v3691_v7 = vpack.c.bf16 %v9013_v34, %v9011_v16 }
0x1818   :  { %v3519_v9 = vpop.f32.mrb[196].mxu1 }
0x1819   :  { %v6964_v26 = vpop.f32.mrb[197].mxu1  ;;  %v9017_v18 = vadd.f32 %v5949_v53, %v3519_v9 }
0x181a   :  { %v3522_v8 = vpop.f32.mrb[198].mxu1 }
0x181b   :  { %v9019_v29 = vadd.f32 %v5949_v53, %v3522_v8  ;;  %v6965_v23 = vpop.f32.mrb[199].mxu1 }
0x181d   :  { %v3692_v50 = vpack.c.bf16 %v9019_v29, %v9017_v18 }
0x1820   :  { %v3667_v62 = vpop.f32.mrb[200].mxu1 }
0x1821   :  { %v6988_v44 = vpop.f32.mrb[201].mxu1  ;;  %v3668_v27 = vadd.f32 %v5971_v37, %v3667_v62 }
0x1822   :  { %v3670_v56 = vpop.f32.mrb[202].mxu1 }
0x1823   :  { %v3671_v31 = vadd.f32 %v5971_v37, %v3670_v56  ;;  %v6989_v14 = vpop.f32.mrb[203].mxu1 }
0x1825   :  { %v3840_v17 = vpack.c.bf16 %v3671_v31, %v3668_v27 }
0x1827   :  { %7017 = vmatpush3.bf16.msra.mxu1 %v3840_v17 }
0x1828   :  { %v3675_v30 = vpop.f32.mrb[204].mxu1  ;;  %7018 = vmatprep.subr.bf16.mxu1 %v7698_v3 }
0x1829   :  { %v6992_v5 = vpop.f32.mrb[205].mxu1  ;;  %v3676_v45 = vadd.f32 %v5971_v37, %v3675_v30 }
0x182a   :  { %v3678_v0 = vpop.f32.mrb[206].mxu1 }
0x182b   :  { %v3679_v12 = vadd.f32 %v5971_v37, %v3678_v0  ;;  %v6993_v59 = vpop.f32.mrb[207].mxu1 }
0x182d   :  { %v3841_v35 = vpack.c.bf16 %v3679_v12, %v3676_v45 }
0x182f   :  { %7019 = vmatpush3.bf16.msra.mxu1 %v3841_v35 }
0x1830   :  { %v3683_v25 = vpop.f32.mrb[208].mxu1  ;;  %7020 = vmatprep.subr.bf16.mxu1 %v7698_v3 }
0x1831   :  { %v6996_v28 = vpop.f32.mrb[209].mxu1  ;;  %v3684_v54 = vadd.f32 %v5971_v37, %v3683_v25 }
0x1832   :  { %v3686_v51 = vpop.f32.mrb[210].mxu1 }
0x1833   :  { %v3687_v42 = vadd.f32 %v5971_v37, %v3686_v51  ;;  %v6997_v53 = vpop.f32.mrb[211].mxu1 }
0x1835   :  { %v3842_v57 = vpack.c.bf16 %v3687_v42, %v3684_v54 }
0x1837   :  { %7021 = vmatpush3.bf16.msra.mxu1 %v3842_v57  ;;  %v7362_v57 = vld [vmem:[%s9667_s3 + $0x150] sm:$0xff]  }
0x1838   :  { %7050 = vmatprep.subr.bf16.mxu1 %v7698_v3 }
0x1881   :  { %v3300_v58 = vpop.xlane.xlu0 %3299 }
0x1882   :  { %v3316_v1 = vsub.f32 %v8948_v22, %v3300_v58 }
0x1883   :  { %v3303_v55 = vpop.xlane.xlu1 %3302 }
0x1884   :  { %v3322_v63 = vmul.f32 1.442695, %v3316_v1  ;;  %v3317_v43 = vsub.f32 %v8956_v47, %v3303_v55 }
0x1886   :  { %7534 = vpow2.f32 %v3322_v63  ;;  %v3324_v19 = vmul.f32 1.442695, %v3317_v43  ;;  %v7363_v43 = vld [vmem:[%s9667_s3 + $0x158] sm:$0xff]  }
0x1888   :  { %7536 = vpow2.f32 %v3324_v19 }
0x1889   :  { %v3306_v10 = vpop.xlane.xlu0 %3305 }
0x188a   :  { %v3318_v9 = vsub.f32 %v8968_v4, %v3306_v10 }
0x188b   :  { %v3309_v26 = vpop.xlane.xlu1 %3308 }
0x188c   :  { %v3326_v8 = vmul.f32 1.442695, %v3318_v9  ;;  %v3319_v23 = vsub.f32 %v8976_v33, %v3309_v26 }
0x188e   :  { %7538 = vpow2.f32 %v3326_v8  ;;  %v3328_v37 = vmul.f32 1.442695, %v3319_v23 }
0x1890   :  { %v7535_v62 = vpop.eup %7534  ;;  %7540 = vpow2.f32 %v3328_v37 }
0x1891   :  { %v3312_v44 = vpop.xlane.xlu0 %3311  ;;  %v3334_v22 = vsel %vm67_vm1, %v7535_v62, 0.0 }
0x1892   :  { %v7537_v56 = vpop.eup %7536  ;;  %v3320_v47 = vsub.f32 %v8988_v24, %v3312_v44  ;;  %3335 = vadd.xlane.f32.xlu0 %v3334_v22 }
0x1893   :  { %v3315_v27 = vpop.xlane.xlu1 %3314  ;;  %v3337_v31 = vsel %vm67_vm1, %v7537_v56, 0.0 }
0x1894   :  { %v3330_v14 = vmul.f32 1.442695, %v3320_v47  ;;  %v3321_v4 = vsub.f32 %v8996_v48, %v3315_v27  ;;  %3338 = vadd.xlane.f32.xlu1 %v3337_v31 }
0x1896   :  { %7542 = vpow2.f32 %v3330_v14  ;;  %v3332_v33 = vmul.f32 1.442695, %v3321_v4 }
0x1898   :  { %v7539_v17 = vpop.eup %7538  ;;  %7544 = vpow2.f32 %v3332_v33 }
0x1899   :  { %v3340_v30 = vsel %vm67_vm1, %v7539_v17, 0.0 }
0x189a   :  { %v7541_v5 = vpop.eup %7540  ;;  %3341 = vadd.xlane.f32.xlu0 %v3340_v30 }
0x189b   :  { %v3343_v0 = vsel %vm67_vm1, %v7541_v5, 0.0 }
0x189c   :  { %3344 = vadd.xlane.f32.xlu1 %v3343_v0 }
0x18a0   :  { %v7543_v24 = vpop.eup %7542 }
0x18a1   :  { %v3346_v45 = vsel %vm67_vm1, %v7543_v24, 0.0 }
0x18a2   :  { %v7545_v12 = vpop.eup %7544  ;;  %3347 = vadd.xlane.f32.xlu0 %v3346_v45 }
0x18a3   :  { %v3349_v59 = vsel %vm67_vm1, %v7545_v12, 0.0 }
0x18a4   :  { %3350 = vadd.xlane.f32.xlu1 %v3349_v59  ;;  %v5960_v59 = vld [vmem:[%s9668_s4 + $0x11] ss:$0 sm:$0xff] }
0x191f   :  { %v3336_v48 = vpop.xlane.xlu0 %3335 }
0x1920   :  { %7546 = vrcp.f32 %v3336_v48 }
0x1921   :  { %v3339_v35 = vpop.xlane.xlu1 %3338 }
0x1922   :  { %7548 = vrcp.f32 %v3339_v35 }
0x1927   :  { %v3342_v25 = vpop.xlane.xlu0 %3341 }
0x1928   :  { %7550 = vrcp.f32 %v3342_v25 }
0x1929   :  { %v3345_v28 = vpop.xlane.xlu1 %3344 }
0x192a   :  { %v7547_v51 = vpop.eup %7546  ;;  %7552 = vrcp.f32 %v3345_v28 }
0x192b   :  { %v3358_v42 = vmul.f32 %v7547_v51, %v7535_v62 }
0x192c   :  { %v7549_v54 = vpop.eup %7548 }
0x192d   :  { %v3359_v53 = vmul.f32 %v7549_v54, %v7537_v56 }
0x192f   :  { %v3364_v58 = vpack.c.bf16 %v3359_v53, %v3358_v42  ;;  %v3348_v1 = vpop.xlane.xlu0 %3347 }
0x1930   :  { %7554 = vrcp.f32 %v3348_v1 }
0x1931   :  { %v3351_v55 = vpop.xlane.xlu1 %3350  ;;  %6939 = vmatmul.mubr.msk.bf16.vlgmr.msra.gmra.mrb[184].mxu0 %vm67_vm1, %v3364_v58 }
0x1932   :  { %v7551_v63 = vpop.eup %7550  ;;  %7556 = vrcp.f32 %v3351_v55  ;;  %6967 = vmatpush3.bf16.msra.mxu0 %v7362_v57  ;;  %6942 = vmatprep.mubr.msk.bf16.mxu0 %vm7699_vm0, %v7698_v3 }
0x1933   :  { %6968 = vmatprep.subr.bf16.mxu0 %v7698_v3  ;;  %v3360_v10 = vmul.f32 %v7551_v63, %v7539_v17 }
0x1934   :  { %v7553_v19 = vpop.eup %7552 }
0x1935   :  { %v3361_v9 = vmul.f32 %v7553_v19, %v7541_v5 }
0x1936   :  { %6969 = vmatpush3.bf16.msra.mxu0 %v7363_v43 }
0x1937   :  { %v3365_v26 = vpack.c.bf16 %v3361_v9, %v3360_v10  ;;  %6998 = vmatprep.subr.bf16.mxu0 %v7698_v3 }
0x1939   :  { %6943 = vmatmul.mubr.msk.bf16.gmra.mrb[188].mxu0 %vm67_vm1, %v3365_v26 }
0x193a   :  { %v7555_v8 = vpop.eup %7554  ;;  %6946 = vmatprep.mubr.msk.bf16.mxu0 %vm7699_vm0, %v7698_v3 }
0x193b   :  { %v3362_v37 = vmul.f32 %v7555_v8, %v7543_v24 }
0x193c   :  { %v7557_v23 = vpop.eup %7556 }
0x193d   :  { %v3363_v62 = vmul.f32 %v7557_v23, %v7545_v12 }
0x193f   :  { %v3366_v44 = vpack.c.bf16 %v3363_v62, %v3362_v37 }
0x1941   :  { %6947 = vmatmul.mubr.msk.bf16.gmra.mrb[192].mxu0 %vm67_vm1, %v3366_v44 }
0x1942   :  { %6970 = vmatprep.mubr.msk.bf16.mxu0 %vm7699_vm0, %v7698_v3 }
0x1949   :  { %6971 = vmatmul.mubr.msk.bf16.vlgmr.msra.gmra.mrb[196].mxu0 %vm143_vm2, %v8821_v13 }
0x194a   :  { %6974 = vmatprep.mubr.msk.bf16.mxu0 %vm7699_vm0, %v7698_v3 }
0x1951   :  { %6975 = vmatmul.mubr.msk.bf16.gmra.mrb[200].mxu0 %vm143_vm2, %v8840_v60 }
0x1952   :  { %6978 = vmatprep.mubr.msk.bf16.mxu0 %vm7699_vm0, %v7698_v3 }
0x1959   :  { %6979 = vmatmul.mubr.msk.bf16.gmra.mrb[204].mxu0 %vm143_vm2, %v8853_v15 }
0x195a   :  { %7004 = vmatprep.mubr.msk.bf16.mxu0 %vm7699_vm0, %v7698_v3 }
0x1a04   :  { %v9070_v22 = vpop.f32.mrb[184].mxu0 }
0x1a05   :  { %v6940_v56 = vpop.f32.mrb[185].mxu0 }
0x1a06   :  { %v9072_v47 = vpop.f32.mrb[186].mxu0 }
0x1a07   :  { %v3436_v27 = vpack.c.bf16 %v9072_v47, %v9070_v22  ;;  %v6941_v31 = vpop.f32.mrb[187].mxu0 }
0x1a0c   :  { %v9076_v14 = vpop.f32.mrb[188].mxu0 }
0x1a0d   :  { %v6944_v4 = vpop.f32.mrb[189].mxu0 }
0x1a0e   :  { %v9078_v33 = vpop.f32.mrb[190].mxu0 }
0x1a0f   :  { %v3437_v17 = vpack.c.bf16 %v9078_v33, %v9076_v14  ;;  %v6945_v30 = vpop.f32.mrb[191].mxu0  ;;  %v7370_v14 = vld [vmem:[%s9667_s3 + $0x120] sm:$0xff]  }
0x1a14   :  { %v9082_v5 = vpop.f32.mrb[192].mxu0 }
0x1a15   :  { %v6948_v0 = vpop.f32.mrb[193].mxu0 }
0x1a16   :  { %v9084_v24 = vpop.f32.mrb[194].mxu0 }
0x1a17   :  { %v3438_v45 = vpack.c.bf16 %v9084_v24, %v9082_v5  ;;  %v6949_v12 = vpop.f32.mrb[195].mxu0  ;;  %v7371_v5 = vld [vmem:[%s9667_s3 + $0x128] sm:$0xff]  }
0x1a1c   :  { %v3585_v48 = vpop.f32.mrb[196].mxu0 }
0x1a1d   :  { %v6972_v35 = vpop.f32.mrb[197].mxu0  ;;  %v3586_v28 = vadd.f32 %v5960_v59, %v3585_v48 }
0x1a1e   :  { %v3588_v25 = vpop.f32.mrb[198].mxu0 }
0x1a1f   :  { %v3589_v51 = vadd.f32 %v5960_v59, %v3588_v25  ;;  %v6973_v54 = vpop.f32.mrb[199].mxu0 }
0x1a21   :  { %v3693_v42 = vpack.c.bf16 %v3589_v51, %v3586_v28 }
0x1a23   :  { %v3706_v53 = vsel %vm509_vm3, %v3693_v42, 0 }
0x1a24   :  { %v3593_v57 = vpop.f32.mrb[200].mxu0  ;;  %6999 = vmatpush3.bf16.xpose.msra.mxu0 %v3706_v53 }
0x1a25   :  { %v6976_v58 = vpop.f32.mrb[201].mxu0  ;;  %7000 = vmatprep.subr.bf16.mxu0 %v7698_v3  ;;  %v3594_v55 = vadd.f32 %v5960_v59, %v3593_v57 }
0x1a26   :  { %v3596_v1 = vpop.f32.mrb[202].mxu0 }
0x1a27   :  { %v3597_v63 = vadd.f32 %v5960_v59, %v3596_v1  ;;  %v6977_v43 = vpop.f32.mrb[203].mxu0 }
0x1a29   :  { %v3694_v19 = vpack.c.bf16 %v3597_v63, %v3594_v55 }
0x1a2b   :  { %v3709_v10 = vsel %vm509_vm3, %v3694_v19, 0 }
0x1a2c   :  { %v3601_v9 = vpop.f32.mrb[204].mxu0  ;;  %7001 = vmatpush3.bf16.xpose.msra.mxu0 %v3709_v10 }
0x1a2d   :  { %v6980_v26 = vpop.f32.mrb[205].mxu0  ;;  %7002 = vmatprep.subr.bf16.mxu0 %v7698_v3  ;;  %v3602_v23 = vadd.f32 %v5960_v59, %v3601_v9 }
0x1a2e   :  { %v3604_v8 = vpop.f32.mrb[206].mxu0 }
0x1a2f   :  { %v3605_v37 = vadd.f32 %v5960_v59, %v3604_v8  ;;  %v6981_v62 = vpop.f32.mrb[207].mxu0 }
0x1a31   :  { %v3695_v44 = vpack.c.bf16 %v3605_v37, %v3602_v23 }
0x1a33   :  { %v3712_v56 = vsel %vm509_vm3, %v3695_v44, 0 }
0x1a34   :  { %7003 = vmatpush3.bf16.xpose.msra.mxu0 %v3712_v56 }
0x1a35   :  { %7034 = vmatprep.subr.bf16.mxu0 %v7698_v3 }
0x1a3b   :  { %7005 = vmatmul.mubr.msk.bf16.vlgmr.msra.gmra.mrb[208].mxu0 %vm509_vm3, %v3690_v21 }
0x1a3c   :  { %7008 = vmatprep.mubr.msk.bf16.mxu0 %vm7699_vm0, %v7698_v3 }
0x1a43   :  { %7009 = vmatmul.mubr.msk.bf16.gmra.mrb[212].mxu0 %vm509_vm3, %v3691_v7 }
0x1a44   :  { %7012 = vmatprep.mubr.msk.bf16.mxu0 %vm7699_vm0, %v7698_v3 }
0x1a4b   :  { %7013 = vmatmul.mubr.msk.bf16.gmra.mrb[216].mxu0 %vm509_vm3, %v3692_v50 }
0x1a4c   :  { %7038 = vmatprep.mubr.msk.bf16.mxu0 %vm7699_vm0, %v7698_v3 }
0x1b0e   :  { %v3748_v41 = vpop.f32.mrb[208].mxu0 }
0x1b0f   :  { %v3749_v61 = vadd.f32 %v8945_v36, %v3748_v41  ;;  %v7006_v21 = vpop.f32.mrb[209].mxu0 }
0x1b10   :  { %v3751_v31 = vpop.f32.mrb[210].mxu0 }
0x1b11   :  { %v3752_v16 = vadd.f32 %v8953_v39, %v3751_v31  ;;  %v7007_v34 = vpop.f32.mrb[211].mxu0  ;;  %v3771_v7 = vsel %vm67_vm1, %v3749_v61, -inf }
0x1b12   :  { %3772 = vmax.xlane.f32.xlu0 %v3771_v7 }
0x1b13   :  { %v3774_v4 = vsel %vm67_vm1, %v3752_v16, -inf }
0x1b14   :  { %3775 = vmax.xlane.f32.xlu1 %v3774_v4 }
0x1b16   :  { %v3756_v18 = vpop.f32.mrb[212].mxu0 }
0x1b17   :  { %v3757_v29 = vadd.f32 %v8965_v32, %v3756_v18  ;;  %v7010_v50 = vpop.f32.mrb[213].mxu0 }
0x1b18   :  { %v3759_v30 = vpop.f32.mrb[214].mxu0 }
0x1b19   :  { %v3760_v0 = vadd.f32 %v8973_v20, %v3759_v30  ;;  %v7011_v12 = vpop.f32.mrb[215].mxu0  ;;  %v3777_v36 = vsel %vm67_vm1, %v3757_v29, -inf  ;;  %v7369_v30 = vld [vmem:[%s9667_s3 + $0x1d8] sm:$0xff]  }
0x1b1a   :  { %3778 = vmax.xlane.f32.xlu0 %v3777_v36 }
0x1b1b   :  { %v3780_v39 = vsel %vm67_vm1, %v3760_v0, -inf }
0x1b1c   :  { %3781 = vmax.xlane.f32.xlu1 %v3780_v39 }
0x1b1e   :  { %v3764_v59 = vpop.f32.mrb[216].mxu0 }
0x1b1f   :  { %v3765_v48 = vadd.f32 %v8985_v6, %v3764_v59  ;;  %v7014_v35 = vpop.f32.mrb[217].mxu0 }
0x1b20   :  { %v3767_v25 = vpop.f32.mrb[218].mxu0  ;;  %v7364_v35 = vld [vmem:[%s9667_s3 + $0x1c0] sm:$0xff]  }
0x1b21   :  { %v3768_v28 = vadd.f32 %v8993_v46, %v3767_v25  ;;  %v7015_v51 = vpop.f32.mrb[219].mxu0  ;;  %v3783_v32 = vsel %vm67_vm1, %v3765_v48, -inf }
0x1b22   :  { %3784 = vmax.xlane.f32.xlu0 %v3783_v32 }
0x1b23   :  { %v3786_v20 = vsel %vm67_vm1, %v3768_v28, -inf }
0x1b24   :  { %3787 = vmax.xlane.f32.xlu1 %v3786_v20 }
0x1b9f   :  { %v3773_v54 = vpop.xlane.xlu0 %3772 }
0x1ba0   :  { %v3789_v42 = vsub.f32 %v3749_v61, %v3773_v54  ;;  %v4019_v54 = vsel %vm509_vm3, %v7364_v35, 0 }
0x1ba1   :  { %v3776_v53 = vpop.xlane.xlu1 %3775 }
0x1ba2   :  { %v3795_v57 = vmul.f32 1.442695, %v3789_v42  ;;  %v3790_v58 = vsub.f32 %v3752_v16, %v3776_v53 }
0x1ba4   :  { %7558 = vpow2.f32 %v3795_v57  ;;  %v3797_v1 = vmul.f32 1.442695, %v3790_v58  ;;  %v7365_v57 = vld [vmem:[%s9667_s3 + $0x1c8] sm:$0xff]  }
0x1ba6   :  { %7560 = vpow2.f32 %v3797_v1 }
0x1ba7   :  { %v3779_v6 = vpop.xlane.xlu0 %3778 }
0x1ba8   :  { %v3791_v55 = vsub.f32 %v3757_v29, %v3779_v6  ;;  %v7368_v29 = vld [vmem:[%s9667_s3 + $0x1d0] sm:$0xff]  }
0x1ba9   :  { %v3782_v63 = vpop.xlane.xlu1 %3781  ;;  %v3937_v50 = vsel %vm509_vm3, %v7368_v29, 0 }
0x1baa   :  { %v3799_v43 = vmul.f32 1.442695, %v3791_v55  ;;  %v3792_v46 = vsub.f32 %v3760_v0, %v3782_v63  ;;  %7035 = vmatpush3.bf16.xpose.msra.mxu0 %v3937_v50  ;;  %v3940_v0 = vsel %vm509_vm3, %v7369_v30, 0  ;;  %v4022_v63 = vsel %vm509_vm3, %v7365_v57, 0 }
0x1bab   :  { %7036 = vmatprep.subr.bf16.mxu0 %v7698_v3 }
0x1bac   :  { %7562 = vpow2.f32 %v3799_v43  ;;  %v3801_v19 = vmul.f32 1.442695, %v3792_v46 }
0x1bae   :  { %v7559_v10 = vpop.eup %7558  ;;  %7564 = vpow2.f32 %v3801_v19 }
0x1baf   :  { %v3785_v9 = vpop.xlane.xlu0 %3784  ;;  %v3807_v26 = vsel %vm67_vm1, %v7559_v10, 0.0 }
0x1bb0   :  { %v7561_v8 = vpop.eup %7560  ;;  %v3793_v23 = vsub.f32 %v3765_v48, %v3785_v9  ;;  %3808 = vadd.xlane.f32.xlu0 %v3807_v26  ;;  %v7366_v26 = vld [vmem:[%s9667_s3 + $0x160] sm:$0xff]  }
0x1bb1   :  { %v3788_v37 = vpop.xlane.xlu1 %3787  ;;  %v3810_v62 = vsel %vm67_vm1, %v7561_v8, 0.0 }
0x1bb2   :  { %v3803_v44 = vmul.f32 1.442695, %v3793_v23  ;;  %v3794_v56 = vsub.f32 %v3768_v28, %v3788_v37  ;;  %3811 = vadd.xlane.f32.xlu1 %v3810_v62  ;;  %7037 = vmatpush3.bf16.xpose.msra.mxu0 %v3940_v0 }
0x1bb3   :  { %7066 = vmatprep.subr.bf16.mxu0 %v7698_v3 }
0x1bb4   :  { %7566 = vpow2.f32 %v3803_v44  ;;  %v3805_v41 = vmul.f32 1.442695, %v3794_v56 }
0x1bb6   :  { %v7563_v61 = vpop.eup %7562  ;;  %7568 = vpow2.f32 %v3805_v41 }
0x1bb7   :  { %v3813_v21 = vsel %vm67_vm1, %v7563_v61, 0.0 }
0x1bb8   :  { %v7565_v31 = vpop.eup %7564  ;;  %3814 = vadd.xlane.f32.xlu0 %v3813_v21 }
0x1bb9   :  { %v3816_v16 = vsel %vm67_vm1, %v7565_v31, 0.0 }
0x1bba   :  { %3817 = vadd.xlane.f32.xlu1 %v3816_v16 }
0x1bbe   :  { %v7567_v34 = vpop.eup %7566 }
0x1bbf   :  { %v3819_v7 = vsel %vm67_vm1, %v7567_v34, 0.0 }
0x1bc0   :  { %v7569_v4 = vpop.eup %7568  ;;  %3820 = vadd.xlane.f32.xlu0 %v3819_v7  ;;  %v7372_v7 = vld [vmem:[%s9667_s3 + $0x1a0] sm:$0xff]  }
0x1bc1   :  { %v3822_v18 = vsel %vm67_vm1, %v7569_v4, 0.0 }
0x1bc2   :  { %3823 = vadd.xlane.f32.xlu1 %v3822_v18  ;;  %v7373_v18 = vld [vmem:[%s9667_s3 + $0x1a8] sm:$0xff]  }
0x1c3d   :  { %v3809_v12 = vpop.xlane.xlu0 %3808 }
0x1c3e   :  { %7570 = vrcp.f32 %v3809_v12 }
0x1c3f   :  { %v3812_v36 = vpop.xlane.xlu1 %3811 }
0x1c40   :  { %7572 = vrcp.f32 %v3812_v36 }
0x1c45   :  { %v3815_v39 = vpop.xlane.xlu0 %3814 }
0x1c46   :  { %7574 = vrcp.f32 %v3815_v39 }
0x1c47   :  { %v3818_v59 = vpop.xlane.xlu1 %3817 }
0x1c48   :  { %v7571_v48 = vpop.eup %7570  ;;  %7576 = vrcp.f32 %v3818_v59 }
0x1c49   :  { %v3831_v28 = vmul.f32 %v7571_v48, %v7559_v10  ;;  %v6013_v48 = vld [vmem:[%s9668_s4 + $0x12] ss:$0 sm:$0xff] }
0x1c4a   :  { %v7573_v25 = vpop.eup %7572 }
0x1c4b   :  { %v3832_v51 = vmul.f32 %v7573_v25, %v7561_v8  ;;  %v7367_v8 = vld [vmem:[%s9667_s3 + $0x168] sm:$0xff]  }
0x1c4d   :  { %v3837_v32 = vpack.c.bf16 %v3832_v51, %v3831_v28  ;;  %v3821_v20 = vpop.xlane.xlu0 %3820 }
0x1c4e   :  { %7578 = vrcp.f32 %v3821_v20 }
0x1c4f   :  { %7023 = vmatmul.mubr.msk.bf16.vlgmr.msra.gmra.mrb[212].mxu1 %vm67_vm1, %v3837_v32  ;;  %v3824_v42 = vpop.xlane.xlu1 %3823 }
0x1c50   :  { %v7575_v53 = vpop.eup %7574  ;;  %7580 = vrcp.f32 %v3824_v42  ;;  %7026 = vmatprep.mubr.msk.bf16.mxu1 %vm7699_vm0, %v7698_v3  ;;  %7051 = vmatpush3.bf16.xpose.msra.mxu1 %v4019_v54 }
0x1c51   :  { %7052 = vmatprep.subr.bf16.mxu1 %v7698_v3  ;;  %v3833_v1 = vmul.f32 %v7575_v53, %v7563_v61 }
0x1c52   :  { %v7577_v58 = vpop.eup %7576 }
0x1c53   :  { %v3834_v6 = vmul.f32 %v7577_v58, %v7565_v31 }
0x1c55   :  { %v3838_v55 = vpack.c.bf16 %v3834_v6, %v3833_v1 }
0x1c57   :  { %7027 = vmatmul.mubr.msk.bf16.gmra.mrb[216].mxu1 %vm67_vm1, %v3838_v55 }
0x1c58   :  { %v7579_v43 = vpop.eup %7578  ;;  %7030 = vmatprep.mubr.msk.bf16.mxu1 %vm7699_vm0, %v7698_v3  ;;  %7053 = vmatpush3.bf16.xpose.msra.mxu1 %v4022_v63 }
0x1c59   :  { %7082 = vmatprep.subr.bf16.mxu1 %v7698_v3  ;;  %v3835_v19 = vmul.f32 %v7579_v43, %v7567_v34 }
0x1c5a   :  { %v7581_v46 = vpop.eup %7580 }
0x1c5b   :  { %v3836_v10 = vmul.f32 %v7581_v46, %v7569_v4 }
0x1c5d   :  { %v3839_v9 = vpack.c.bf16 %v3836_v10, %v3835_v19 }
0x1c5f   :  { %7031 = vmatmul.mubr.msk.bf16.gmra.mrb[220].mxu1 %vm67_vm1, %v3839_v9 }
0x1c60   :  { %7054 = vmatprep.mubr.msk.bf16.mxu1 %vm7699_vm0, %v7698_v3 }
0x1c67   :  { %7055 = vmatmul.mubr.msk.bf16.vlgmr.msra.gmra.mrb[224].mxu1 %vm509_vm3, %v3436_v27 }
0x1c68   :  { %7058 = vmatprep.mubr.msk.bf16.mxu1 %vm7699_vm0, %v7698_v3  ;;  %7083 = vmatpush3.bf16.msra.mxu1 %v7366_v26 }
0x1c69   :  { %7084 = vmatprep.subr.bf16.mxu1 %v7698_v3 }
0x1c6c   :  { %7085 = vmatpush3.bf16.msra.mxu1 %v7367_v8 }
0x1c6d   :  { %7114 = vmatprep.subr.bf16.mxu1 %v7698_v3 }
0x1c6f   :  { %7059 = vmatmul.mubr.msk.bf16.gmra.mrb[228].mxu1 %vm509_vm3, %v3437_v17 }
0x1c70   :  { %7062 = vmatprep.mubr.msk.bf16.mxu1 %vm7699_vm0, %v7698_v3 }
0x1c77   :  { %7063 = vmatmul.mubr.msk.bf16.gmra.mrb[232].mxu1 %vm509_vm3, %v3438_v45 }
0x1c78   :  { %7086 = vmatprep.mubr.msk.bf16.mxu1 %vm7699_vm0, %v7698_v3 }
0x1c7f   :  { %7087 = vmatmul.mubr.msk.bf16.vlgmr.msra.gmra.mrb[236].mxu1 %vm143_vm2, %v8821_v13 }
0x1c80   :  { %7090 = vmatprep.mubr.msk.bf16.mxu1 %vm7699_vm0, %v7698_v3 }
0x1c87   :  { %7091 = vmatmul.mubr.msk.bf16.gmra.mrb[240].mxu1 %vm143_vm2, %v8840_v60 }
0x1c88   :  { %7094 = vmatprep.mubr.msk.bf16.mxu1 %vm7699_vm0, %v7698_v3 }
0x1c8f   :  { %7095 = vmatmul.mubr.msk.bf16.gmra.mrb[244].mxu1 %vm143_vm2, %v8853_v15 }
0x1c90   :  { %7120 = vmatprep.mubr.msk.bf16.mxu1 %vm7699_vm0, %v7698_v3 }
0x1d22   :  { %v3886_v22 = vpop.f32.mrb[212].mxu1 }
0x1d23   :  { %v7024_v47 = vpop.f32.mrb[213].mxu1 }
0x1d24   :  { %v3889_v27 = vpop.f32.mrb[214].mxu1 }
0x1d25   :  { %v3909_v33 = vpack.c.bf16 %v3889_v27, %v3886_v22  ;;  %v7025_v17 = vpop.f32.mrb[215].mxu1 }
0x1d27   :  { %7039 = vmatmul.mubr.msk.bf16.vlgmr.msra.gmra.mrb[220].mxu0 %vm509_vm3, %v3909_v33 }
0x1d28   :  { %7067 = vmatpush3.bf16.msra.mxu0 %v7370_v14  ;;  %7042 = vmatprep.mubr.msk.bf16.mxu0 %vm7699_vm0, %v7698_v3 }
0x1d29   :  { %7068 = vmatprep.subr.bf16.mxu0 %v7698_v3 }
0x1d2a   :  { %v3894_v24 = vpop.f32.mrb[216].mxu1 }
0x1d2b   :  { %v7028_v45 = vpop.f32.mrb[217].mxu1 }
0x1d2c   :  { %v3897_v23 = vpop.f32.mrb[218].mxu1  ;;  %7069 = vmatpush3.bf16.msra.mxu0 %v7371_v5 }
0x1d2d   :  { %v3910_v37 = vpack.c.bf16 %v3897_v23, %v3894_v24  ;;  %v7029_v62 = vpop.f32.mrb[219].mxu1  ;;  %7098 = vmatprep.subr.bf16.mxu0 %v7698_v3 }
0x1d2f   :  { %7043 = vmatmul.mubr.msk.bf16.gmra.mrb[224].mxu0 %vm509_vm3, %v3910_v37 }
0x1d30   :  { %7046 = vmatprep.mubr.msk.bf16.mxu0 %vm7699_vm0, %v7698_v3 }
0x1d32   :  { %v3902_v44 = vpop.f32.mrb[220].mxu1 }
0x1d33   :  { %v7032_v56 = vpop.f32.mrb[221].mxu1 }
0x1d34   :  { %v3905_v41 = vpop.f32.mrb[222].mxu1 }
0x1d35   :  { %v3911_v61 = vpack.c.bf16 %v3905_v41, %v3902_v44  ;;  %v7033_v21 = vpop.f32.mrb[223].mxu1 }
0x1d37   :  { %7047 = vmatmul.mubr.msk.bf16.gmra.mrb[228].mxu0 %vm509_vm3, %v3911_v61 }
0x1d38   :  { %7070 = vmatprep.mubr.msk.bf16.mxu0 %vm7699_vm0, %v7698_v3 }
0x1d3a   :  { %v4058_v31 = vpop.f32.mrb[224].mxu1 }
0x1d3b   :  { %v7056_v16 = vpop.f32.mrb[225].mxu1 }
0x1d3c   :  { %v9217_v34 = vpop.f32.mrb[226].mxu1 }
0x1d3d   :  { %v7057_v4 = vpop.f32.mrb[227].mxu1 }
0x1d3f   :  { %7071 = vmatmul.mubr.msk.bf16.vlgmr.msra.gmra.mrb[232].mxu0 %vm143_vm2, %v8821_v13 }
0x1d40   :  { %7074 = vmatprep.mubr.msk.bf16.mxu0 %vm7699_vm0, %v7698_v3  ;;  %7099 = vmatpush3.bf16.msra.mxu0 %v7372_v7 }
0x1d41   :  { %7100 = vmatprep.subr.bf16.mxu0 %v7698_v3 }
0x1d42   :  { %v4066_v29 = vpop.f32.mrb[228].mxu1 }
0x1d43   :  { %v7060_v50 = vpop.f32.mrb[229].mxu1 }
0x1d44   :  { %v4069_v30 = vpop.f32.mrb[230].mxu1  ;;  %7101 = vmatpush3.bf16.msra.mxu0 %v7373_v18 }
0x1d45   :  { %v7061_v0 = vpop.f32.mrb[231].mxu1  ;;  %7132 = vmatprep.subr.bf16.mxu0 %v7698_v3 }
0x1d47   :  { %7075 = vmatmul.mubr.msk.bf16.gmra.mrb[236].mxu0 %vm143_vm2, %v8840_v60 }
0x1d48   :  { %7078 = vmatprep.mubr.msk.bf16.mxu0 %vm7699_vm0, %v7698_v3 }
0x1d4a   :  { %v4074_v12 = vpop.f32.mrb[232].mxu1 }
0x1d4b   :  { %v7064_v36 = vpop.f32.mrb[233].mxu1 }
0x1d4c   :  { %v4077_v39 = vpop.f32.mrb[234].mxu1 }
0x1d4d   :  { %v7065_v59 = vpop.f32.mrb[235].mxu1 }
0x1d4f   :  { %7079 = vmatmul.mubr.msk.bf16.gmra.mrb[240].mxu0 %vm143_vm2, %v8853_v15 }
0x1d50   :  { %7102 = vmatprep.mubr.msk.bf16.mxu0 %vm7699_vm0, %v7698_v3 }
0x1d52   :  { %v4222_v35 = vpop.f32.mrb[236].mxu1 }
0x1d53   :  { %v7088_v25 = vpop.f32.mrb[237].mxu1  ;;  %v4223_v51 = vadd.f32 %v6013_v48, %v4222_v35 }
0x1d54   :  { %v4225_v28 = vpop.f32.mrb[238].mxu1 }
0x1d55   :  { %v4226_v32 = vadd.f32 %v6013_v48, %v4225_v28  ;;  %v7089_v20 = vpop.f32.mrb[239].mxu1 }
0x1d57   :  { %v4330_v54 = vpack.c.bf16 %v4226_v32, %v4223_v51  ;;  %7103 = vmatmul.mubr.msk.bf16.vlgmr.msra.gmra.mrb[244].mxu0 %vm143_vm2, %v8821_v13 }
0x1d58   :  { %7106 = vmatprep.mubr.msk.bf16.mxu0 %vm7699_vm0, %v7698_v3 }
0x1d59   :  { %v4343_v42 = vsel %vm509_vm3, %v4330_v54, 0 }
0x1d5a   :  { %v4230_v53 = vpop.f32.mrb[240].mxu1  ;;  %7115 = vmatpush3.bf16.xpose.msra.mxu1 %v4343_v42 }
0x1d5b   :  { %v7092_v57 = vpop.f32.mrb[241].mxu1  ;;  %7116 = vmatprep.subr.bf16.mxu1 %v7698_v3  ;;  %v4231_v1 = vadd.f32 %v6013_v48, %v4230_v53 }
0x1d5c   :  { %v4233_v58 = vpop.f32.mrb[242].mxu1 }
0x1d5d   :  { %v4234_v6 = vadd.f32 %v6013_v48, %v4233_v58  ;;  %v7093_v55 = vpop.f32.mrb[243].mxu1  ;;  %v6024_v58 = vld [vmem:[%s9668_s4 + $0x16] ss:$0 sm:$0xff] }
0x1d5f   :  { %v4331_v63 = vpack.c.bf16 %v4234_v6, %v4231_v1  ;;  %7107 = vmatmul.mubr.msk.bf16.gmra.mrb[248].mxu0 %vm143_vm2, %v8840_v60 }
0x1d60   :  { %7110 = vmatprep.mubr.msk.bf16.mxu0 %vm7699_vm0, %v7698_v3 }
0x1d61   :  { %v4346_v43 = vsel %vm509_vm3, %v4331_v63, 0 }
0x1d62   :  { %v4238_v46 = vpop.f32.mrb[244].mxu1  ;;  %7117 = vmatpush3.bf16.xpose.msra.mxu1 %v4346_v43 }
0x1d63   :  { %v7096_v19 = vpop.f32.mrb[245].mxu1  ;;  %7118 = vmatprep.subr.bf16.mxu1 %v7698_v3  ;;  %v4239_v9 = vadd.f32 %v6013_v48, %v4238_v46 }
0x1d64   :  { %v4241_v10 = vpop.f32.mrb[246].mxu1 }
0x1d65   :  { %v4242_v26 = vadd.f32 %v6013_v48, %v4241_v10  ;;  %v7097_v8 = vpop.f32.mrb[247].mxu1 }
0x1d67   :  { %v4332_v22 = vpack.c.bf16 %v4242_v26, %v4239_v9  ;;  %7111 = vmatmul.mubr.msk.bf16.gmra.mrb[252].mxu0 %vm143_vm2, %v8853_v15 }
0x1d68   :  { %7138 = vmatprep.mubr.msk.bf16.mxu0 %vm7699_vm0, %v7698_v3 }
0x1d69   :  { %v4349_v47 = vsel %vm509_vm3, %v4332_v22, 0 }
0x1d6a   :  { %7119 = vmatpush3.bf16.xpose.msra.mxu1 %v4349_v47 }
0x1d6b   :  { %7150 = vmatprep.subr.bf16.mxu1 %v7698_v3 }
0x1dfa   :  { %v3976_v27 = vpop.f32.mrb[220].mxu0 }
0x1dfb   :  { %v9260_v14 = vadd.f32 %v4058_v31, %v3976_v27  ;;  %v7040_v33 = vpop.f32.mrb[221].mxu0 }
0x1dfc   :  { %v3979_v17 = vpop.f32.mrb[222].mxu0 }
0x1dfd   :  { %v9263_v5 = vadd.f32 %v9217_v34, %v3979_v17  ;;  %v7041_v24 = vpop.f32.mrb[223].mxu0  ;;  %v6002_v34 = vld [vmem:[%s9668_s4 + $0xe] ss:$0 sm:$0xff] }
0x1e02   :  { %v3984_v45 = vpop.f32.mrb[224].mxu0 }
0x1e03   :  { %v9265_v23 = vadd.f32 %v4066_v29, %v3984_v45  ;;  %v7044_v37 = vpop.f32.mrb[225].mxu0 }
0x1e04   :  { %v3987_v62 = vpop.f32.mrb[226].mxu0 }
0x1e05   :  { %v9267_v44 = vadd.f32 %v4069_v30, %v3987_v62  ;;  %v7045_v56 = vpop.f32.mrb[227].mxu0 }
0x1e0a   :  { %v3992_v41 = vpop.f32.mrb[228].mxu0 }
0x1e0b   :  { %v9269_v61 = vadd.f32 %v4074_v12, %v3992_v41  ;;  %v7048_v21 = vpop.f32.mrb[229].mxu0 }
0x1e0c   :  { %v3995_v31 = vpop.f32.mrb[230].mxu0  ;;  %v9294_v21 = vld [vmem:[%s9665_s1] sm:$0xff] }
0x1e0d   :  { %v9271_v16 = vadd.f32 %v4077_v39, %v3995_v31  ;;  %v7049_v7 = vpop.f32.mrb[231].mxu0 }
0x1e12   :  { %v4140_v4 = vpop.f32.mrb[232].mxu0 }
0x1e13   :  { %v7072_v18 = vpop.f32.mrb[233].mxu0  ;;  %v4141_v50 = vadd.f32 %v6002_v34, %v4140_v4  ;;  %v9300_v4 = vld [vmem:[%s9665_s1 + $0x8] sm:$0xff] }
0x1e14   :  { %v4143_v29 = vpop.f32.mrb[234].mxu0 }
0x1e15   :  { %v4144_v0 = vadd.f32 %v6002_v34, %v4143_v29  ;;  %v7073_v30 = vpop.f32.mrb[235].mxu0 }
0x1e17   :  { %v4327_v36 = vpack.c.bf16 %v4144_v0, %v4141_v50 }
0x1e19   :  { %7121 = vmatmul.mubr.msk.bf16.vlgmr.msra.gmra.mrb[248].mxu1 %vm509_vm3, %v4327_v36  ;;  %v9308_v36 = vld [vmem:[%s9665_s1 + $0x10] sm:$0xff] }
0x1e1a   :  { %v4148_v12 = vpop.f32.mrb[236].mxu0  ;;  %7124 = vmatprep.mubr.msk.bf16.mxu1 %vm7699_vm0, %v7698_v3 }
0x1e1b   :  { %v7076_v39 = vpop.f32.mrb[237].mxu0  ;;  %v4149_v48 = vadd.f32 %v6002_v34, %v4148_v12 }
0x1e1c   :  { %v4151_v59 = vpop.f32.mrb[238].mxu0 }
0x1e1d   :  { %v4152_v35 = vadd.f32 %v6002_v34, %v4151_v59  ;;  %v7077_v25 = vpop.f32.mrb[239].mxu0 }
0x1e1f   :  { %v4328_v28 = vpack.c.bf16 %v4152_v35, %v4149_v48  ;;  %v9314_v48 = vld [vmem:[%s9665_s1 + $0x18] sm:$0xff] }
0x1e21   :  { %7125 = vmatmul.mubr.msk.bf16.gmra.mrb[252].mxu1 %vm509_vm3, %v4328_v28 }
0x1e22   :  { %v4156_v51 = vpop.f32.mrb[240].mxu0  ;;  %7128 = vmatprep.mubr.msk.bf16.mxu1 %vm7699_vm0, %v7698_v3 }
0x1e23   :  { %v7080_v32 = vpop.f32.mrb[241].mxu0  ;;  %v4157_v54 = vadd.f32 %v6002_v34, %v4156_v51 }
0x1e24   :  { %v4159_v20 = vpop.f32.mrb[242].mxu0 }
0x1e25   :  { %v4160_v42 = vadd.f32 %v6002_v34, %v4159_v20  ;;  %v7081_v53 = vpop.f32.mrb[243].mxu0  ;;  %v9322_v20 = vld [vmem:[%s9665_s1 + $0x20] sm:$0xff] }
0x1e27   :  { %v4329_v57 = vpack.c.bf16 %v4160_v42, %v4157_v54 }
0x1e29   :  { %7129 = vmatmul.mubr.msk.bf16.gmra.mrb[0].mxu1 %vm509_vm3, %v4329_v57  ;;  %v9328_v57 = vld [vmem:[%s9665_s1 + $0x28] sm:$0xff] }
0x1e2a   :  { %v4304_v1 = vpop.f32.mrb[244].mxu0  ;;  %7154 = vmatprep.mubr.msk.bf16.mxu1 %vm7699_vm0, %v7698_v3 }
0x1e2b   :  { %v7104_v6 = vpop.f32.mrb[245].mxu0  ;;  %v4305_v63 = vadd.f32 %v6024_v58, %v4304_v1 }
0x1e2c   :  { %v4307_v55 = vpop.f32.mrb[246].mxu0 }
0x1e2d   :  { %v4308_v43 = vadd.f32 %v6024_v58, %v4307_v55  ;;  %v7105_v46 = vpop.f32.mrb[247].mxu0 }
0x1e2f   :  { %v4477_v19 = vpack.c.bf16 %v4308_v43, %v4305_v63 }
0x1e31   :  { %7133 = vmatpush3.bf16.msra.mxu0 %v4477_v19 }
0x1e32   :  { %v4312_v10 = vpop.f32.mrb[248].mxu0  ;;  %7134 = vmatprep.subr.bf16.mxu0 %v7698_v3 }
0x1e33   :  { %v7108_v9 = vpop.f32.mrb[249].mxu0  ;;  %v4313_v8 = vadd.f32 %v6024_v58, %v4312_v10 }
0x1e34   :  { %v4315_v26 = vpop.f32.mrb[250].mxu0 }
0x1e35   :  { %v4316_v22 = vadd.f32 %v6024_v58, %v4315_v26  ;;  %v7109_v47 = vpop.f32.mrb[251].mxu0 }
0x1e37   :  { %v4478_v27 = vpack.c.bf16 %v4316_v22, %v4313_v8 }
0x1e39   :  { %7135 = vmatpush3.bf16.msra.mxu0 %v4478_v27 }
0x1e3a   :  { %v4320_v33 = vpop.f32.mrb[252].mxu0  ;;  %7136 = vmatprep.subr.bf16.mxu0 %v7698_v3 }
0x1e3b   :  { %v7112_v17 = vpop.f32.mrb[253].mxu0  ;;  %v4321_v45 = vadd.f32 %v6024_v58, %v4320_v33 }
0x1e3c   :  { %v4323_v24 = vpop.f32.mrb[254].mxu0 }
0x1e3d   :  { %v4324_v37 = vadd.f32 %v6024_v58, %v4323_v24  ;;  %v7113_v62 = vpop.f32.mrb[255].mxu0 }
0x1e3f   :  { %v4479_v56 = vpack.c.bf16 %v4324_v37, %v4321_v45 }
0x1e41   :  { %7137 = vmatpush3.bf16.msra.mxu0 %v4479_v56 }
0x1e42   :  { %7166 = vmatprep.subr.bf16.mxu0 %v7698_v3 }
0x1eec   :  { %v4385_v41 = vpop.f32.mrb[248].mxu1 }
0x1eed   :  { %v4386_v31 = vadd.f32 %v9294_v21, %v4385_v41  ;;  %v7122_v7 = vpop.f32.mrb[249].mxu1 }
0x1eee   :  { %v4388_v34 = vpop.f32.mrb[250].mxu1 }
0x1eef   :  { %v4389_v18 = vadd.f32 %v9300_v4, %v4388_v34  ;;  %v7123_v29 = vpop.f32.mrb[251].mxu1  ;;  %v4408_v50 = vsel %vm67_vm1, %v4386_v31, -inf }
0x1ef0   :  { %4409 = vmax.xlane.f32.xlu0 %v4408_v50 }
0x1ef1   :  { %v4411_v0 = vsel %vm67_vm1, %v4389_v18, -inf }
0x1ef2   :  { %4412 = vmax.xlane.f32.xlu1 %v4411_v0 }
0x1ef4   :  { %v4393_v30 = vpop.f32.mrb[252].mxu1 }
0x1ef5   :  { %v4394_v12 = vadd.f32 %v9308_v36, %v4393_v30  ;;  %v7126_v39 = vpop.f32.mrb[253].mxu1 }
0x1ef6   :  { %v4396_v59 = vpop.f32.mrb[254].mxu1 }
0x1ef7   :  { %v4397_v35 = vadd.f32 %v9314_v48, %v4396_v59  ;;  %v7127_v25 = vpop.f32.mrb[255].mxu1  ;;  %v4414_v28 = vsel %vm67_vm1, %v4394_v12, -inf }
0x1ef8   :  { %4415 = vmax.xlane.f32.xlu0 %v4414_v28  ;;  %v7379_v28 = vld [vmem:[%s9667_s3 + $0x1e8] sm:$0xff]  }
0x1ef9   :  { %v4417_v51 = vsel %vm67_vm1, %v4397_v35, -inf }
0x1efa   :  { %4418 = vmax.xlane.f32.xlu1 %v4417_v51  ;;  %v4577_v51 = vsel %vm509_vm3, %v7379_v28, 0 }
0x1efc   :  { %v4401_v32 = vpop.f32.mrb[0].mxu1 }
0x1efd   :  { %v4402_v54 = vadd.f32 %v9322_v20, %v4401_v32  ;;  %v7130_v42 = vpop.f32.mrb[1].mxu1 }
0x1efe   :  { %v4404_v53 = vpop.f32.mrb[2].mxu1 }
0x1eff   :  { %v4405_v58 = vadd.f32 %v9328_v57, %v4404_v53  ;;  %v7131_v1 = vpop.f32.mrb[3].mxu1  ;;  %v4420_v6 = vsel %vm67_vm1, %v4402_v54, -inf }
0x1f00   :  { %4421 = vmax.xlane.f32.xlu0 %v4420_v6 }
0x1f01   :  { %v4423_v55 = vsel %vm67_vm1, %v4405_v58, -inf }
0x1f02   :  { %4424 = vmax.xlane.f32.xlu1 %v4423_v55 }
0x1f7d   :  { %v4410_v63 = vpop.xlane.xlu0 %4409 }
0x1f7e   :  { %v4426_v43 = vsub.f32 %v4386_v31, %v4410_v63  ;;  %v7374_v63 = vld [vmem:[%s9667_s3 + $0x130] sm:$0xff]  }
0x1f7f   :  { %v4413_v46 = vpop.xlane.xlu1 %4412 }
0x1f80   :  { %v4432_v19 = vmul.f32 1.442695, %v4426_v43  ;;  %v4427_v10 = vsub.f32 %v4389_v18, %v4413_v46 }
0x1f82   :  { %7582 = vpow2.f32 %v4432_v19  ;;  %v4434_v9 = vmul.f32 1.442695, %v4427_v10 }
0x1f84   :  { %7584 = vpow2.f32 %v4434_v9  ;;  %v7375_v9 = vld [vmem:[%s9667_s3 + $0x138] sm:$0xff]  }
0x1f85   :  { %v4416_v26 = vpop.xlane.xlu0 %4415 }
0x1f86   :  { %v4428_v8 = vsub.f32 %v4394_v12, %v4416_v26 }
0x1f87   :  { %v4419_v22 = vpop.xlane.xlu1 %4418 }
0x1f88   :  { %v4436_v47 = vmul.f32 1.442695, %v4428_v8  ;;  %v4429_v27 = vsub.f32 %v4397_v35, %v4419_v22  ;;  %v7378_v35 = vld [vmem:[%s9667_s3 + $0x1e0] sm:$0xff]  }
0x1f89   :  { %v4574_v25 = vsel %vm509_vm3, %v7378_v35, 0 }
0x1f8a   :  { %7586 = vpow2.f32 %v4436_v47  ;;  %v4438_v33 = vmul.f32 1.442695, %v4429_v27  ;;  %7151 = vmatpush3.bf16.xpose.msra.mxu1 %v4574_v25 }
0x1f8b   :  { %7152 = vmatprep.subr.bf16.mxu1 %v7698_v3 }
0x1f8c   :  { %v7583_v17 = vpop.eup %7582  ;;  %7588 = vpow2.f32 %v4438_v33 }
0x1f8d   :  { %v4422_v24 = vpop.xlane.xlu0 %4421  ;;  %v4444_v45 = vsel %vm67_vm1, %v7583_v17, 0.0 }
0x1f8e   :  { %v7585_v37 = vpop.eup %7584  ;;  %v4430_v62 = vsub.f32 %v4402_v54, %v4422_v24  ;;  %4445 = vadd.xlane.f32.xlu0 %v4444_v45 }
0x1f8f   :  { %v4425_v56 = vpop.xlane.xlu1 %4424  ;;  %v4447_v41 = vsel %vm67_vm1, %v7585_v37, 0.0 }
0x1f90   :  { %v4440_v31 = vmul.f32 1.442695, %v4430_v62  ;;  %v4431_v7 = vsub.f32 %v4405_v58, %v4425_v56  ;;  %4448 = vadd.xlane.f32.xlu1 %v4447_v41  ;;  %v7377_v62 = vld [vmem:[%s9667_s3 + $0x1b8] sm:$0xff]  }
0x1f92   :  { %7590 = vpow2.f32 %v4440_v31  ;;  %v4442_v34 = vmul.f32 1.442695, %v4431_v7  ;;  %7153 = vmatpush3.bf16.xpose.msra.mxu1 %v4577_v51  ;;  %v7380_v7 = vld [vmem:[%s9667_s3 + $0x170] sm:$0xff]  }
0x1f93   :  { %7182 = vmatprep.subr.bf16.mxu1 %v7698_v3 }
0x1f94   :  { %v7587_v18 = vpop.eup %7586  ;;  %7592 = vpow2.f32 %v4442_v34 }
0x1f95   :  { %v4450_v29 = vsel %vm67_vm1, %v7587_v18, 0.0 }
0x1f96   :  { %v7589_v50 = vpop.eup %7588  ;;  %4451 = vadd.xlane.f32.xlu0 %v4450_v29  ;;  %v7381_v29 = vld [vmem:[%s9667_s3 + $0x178] sm:$0xff]  }
0x1f97   :  { %v4453_v0 = vsel %vm67_vm1, %v7589_v50, 0.0 }
0x1f98   :  { %4454 = vadd.xlane.f32.xlu1 %v4453_v0 }
0x1f9c   :  { %v7591_v30 = vpop.eup %7590 }
0x1f9d   :  { %v4456_v12 = vsel %vm67_vm1, %v7591_v30, 0.0 }
0x1f9e   :  { %v7593_v39 = vpop.eup %7592  ;;  %4457 = vadd.xlane.f32.xlu0 %v4456_v12 }
0x1f9f   :  { %v4459_v59 = vsel %vm67_vm1, %v7593_v39, 0.0 }
0x1fa0   :  { %4460 = vadd.xlane.f32.xlu1 %v4459_v59 }
0x201b   :  { %v4446_v32 = vpop.xlane.xlu0 %4445 }
0x201c   :  { %7594 = vrcp.f32 %v4446_v32  ;;  %v6050_v32 = vld [vmem:[%s9668_s4 + $0xf] ss:$0 sm:$0xff] }
0x201d   :  { %v4449_v54 = vpop.xlane.xlu1 %4448 }
0x201e   :  { %7596 = vrcp.f32 %v4449_v54 }
0x2023   :  { %v4452_v42 = vpop.xlane.xlu0 %4451 }
0x2024   :  { %7598 = vrcp.f32 %v4452_v42 }
0x2025   :  { %v4455_v53 = vpop.xlane.xlu1 %4454 }
0x2026   :  { %v7595_v58 = vpop.eup %7594  ;;  %7600 = vrcp.f32 %v4455_v53 }
0x2027   :  { %v4468_v6 = vmul.f32 %v7595_v58, %v7583_v17 }
0x2028   :  { %v7597_v1 = vpop.eup %7596 }
0x2029   :  { %v4469_v55 = vmul.f32 %v7597_v1, %v7585_v37  ;;  %v7376_v37 = vld [vmem:[%s9667_s3 + $0x1b0] sm:$0xff]  }
0x202b   :  { %v4474_v43 = vpack.c.bf16 %v4469_v55, %v4468_v6  ;;  %v4458_v46 = vpop.xlane.xlu0 %4457 }
0x202c   :  { %7602 = vrcp.f32 %v4458_v46 }
0x202d   :  { %v4461_v19 = vpop.xlane.xlu1 %4460  ;;  %7139 = vmatmul.mubr.msk.bf16.vlgmr.msra.gmra.mrb[0].mxu0 %vm67_vm1, %v4474_v43 }
0x202e   :  { %v7599_v10 = vpop.eup %7598  ;;  %7604 = vrcp.f32 %v4461_v19  ;;  %7142 = vmatprep.mubr.msk.bf16.mxu0 %vm7699_vm0, %v7698_v3  ;;  %7167 = vmatpush3.bf16.msra.mxu0 %v7374_v63 }
0x202f   :  { %7168 = vmatprep.subr.bf16.mxu0 %v7698_v3  ;;  %v4470_v8 = vmul.f32 %v7599_v10, %v7587_v18 }
0x2030   :  { %v7601_v26 = vpop.eup %7600 }
0x2031   :  { %v4471_v22 = vmul.f32 %v7601_v26, %v7589_v50 }
0x2032   :  { %7169 = vmatpush3.bf16.msra.mxu0 %v7375_v9 }
0x2033   :  { %v4475_v47 = vpack.c.bf16 %v4471_v22, %v4470_v8  ;;  %7198 = vmatprep.subr.bf16.mxu0 %v7698_v3 }
0x2035   :  { %7143 = vmatmul.mubr.msk.bf16.gmra.mrb[4].mxu0 %vm67_vm1, %v4475_v47 }
0x2036   :  { %v7603_v27 = vpop.eup %7602  ;;  %7146 = vmatprep.mubr.msk.bf16.mxu0 %vm7699_vm0, %v7698_v3 }
0x2037   :  { %v4472_v17 = vmul.f32 %v7603_v27, %v7591_v30 }
0x2038   :  { %v7605_v33 = vpop.eup %7604 }
0x2039   :  { %v4473_v24 = vmul.f32 %v7605_v33, %v7593_v39 }
0x203b   :  { %v4476_v45 = vpack.c.bf16 %v4473_v24, %v4472_v17 }
0x203d   :  { %7147 = vmatmul.mubr.msk.bf16.gmra.mrb[8].mxu0 %vm67_vm1, %v4476_v45 }
0x203e   :  { %7170 = vmatprep.mubr.msk.bf16.mxu0 %vm7699_vm0, %v7698_v3 }
0x2045   :  { %7171 = vmatmul.mubr.msk.bf16.vlgmr.msra.gmra.mrb[12].mxu0 %vm143_vm2, %v8821_v13 }
0x2046   :  { %7174 = vmatprep.mubr.msk.bf16.mxu0 %vm7699_vm0, %v7698_v3  ;;  %7199 = vmatpush3.bf16.msra.mxu0 %v7376_v37 }
0x2047   :  { %7200 = vmatprep.subr.bf16.mxu0 %v7698_v3 }
0x204a   :  { %7201 = vmatpush3.bf16.msra.mxu0 %v7377_v62 }
0x204b   :  { %7232 = vmatprep.subr.bf16.mxu0 %v7698_v3 }
0x204d   :  { %7175 = vmatmul.mubr.msk.bf16.gmra.mrb[16].mxu0 %vm143_vm2, %v8840_v60 }
0x204e   :  { %7178 = vmatprep.mubr.msk.bf16.mxu0 %vm7699_vm0, %v7698_v3 }
0x2055   :  { %7179 = vmatmul.mubr.msk.bf16.gmra.mrb[20].mxu0 %vm143_vm2, %v8853_v15 }
0x2056   :  { %7202 = vmatprep.mubr.msk.bf16.mxu0 %vm7699_vm0, %v7698_v3 }
0x205d   :  { %7203 = vmatmul.mubr.msk.bf16.vlgmr.msra.gmra.mrb[24].mxu0 %vm143_vm2, %v8821_v13 }
0x205e   :  { %7206 = vmatprep.mubr.msk.bf16.mxu0 %vm7699_vm0, %v7698_v3 }
0x2065   :  { %7207 = vmatmul.mubr.msk.bf16.gmra.mrb[28].mxu0 %vm143_vm2, %v8840_v60 }
0x2066   :  { %7210 = vmatprep.mubr.msk.bf16.mxu0 %vm7699_vm0, %v7698_v3 }
0x206d   :  { %7211 = vmatmul.mubr.msk.bf16.gmra.mrb[32].mxu0 %vm143_vm2, %v8853_v15 }
0x206e   :  { %7238 = vmatprep.mubr.msk.bf16.mxu0 %vm7699_vm0, %v7698_v3 }
0x2100   :  { %v4523_v56 = vpop.f32.mrb[0].mxu0 }
0x2101   :  { %v7140_v41 = vpop.f32.mrb[1].mxu0 }
0x2102   :  { %v4526_v31 = vpop.f32.mrb[2].mxu0 }
0x2103   :  { %v4546_v34 = vpack.c.bf16 %v4526_v31, %v4523_v56  ;;  %v7141_v18 = vpop.f32.mrb[3].mxu0 }
0x2105   :  { %7155 = vmatmul.mubr.msk.bf16.vlgmr.msra.gmra.mrb[4].mxu1 %vm509_vm3, %v4546_v34 }
0x2106   :  { %7183 = vmatpush3.bf16.msra.mxu1 %v7380_v7  ;;  %7158 = vmatprep.mubr.msk.bf16.mxu1 %vm7699_vm0, %v7698_v3 }
0x2107   :  { %7184 = vmatprep.subr.bf16.mxu1 %v7698_v3 }
0x2108   :  { %v4531_v50 = vpop.f32.mrb[4].mxu0 }
0x2109   :  { %v7144_v0 = vpop.f32.mrb[5].mxu0 }
0x210a   :  { %v4534_v30 = vpop.f32.mrb[6].mxu0  ;;  %7185 = vmatpush3.bf16.msra.mxu1 %v7381_v29 }
0x210b   :  { %v4547_v12 = vpack.c.bf16 %v4534_v30, %v4531_v50  ;;  %v7145_v39 = vpop.f32.mrb[7].mxu0  ;;  %7214 = vmatprep.subr.bf16.mxu1 %v7698_v3 }
0x210d   :  { %7159 = vmatmul.mubr.msk.bf16.gmra.mrb[8].mxu1 %vm509_vm3, %v4547_v12 }
0x210e   :  { %7162 = vmatprep.mubr.msk.bf16.mxu1 %vm7699_vm0, %v7698_v3 }
0x2110   :  { %v4539_v59 = vpop.f32.mrb[8].mxu0 }
0x2111   :  { %v7148_v35 = vpop.f32.mrb[9].mxu0 }
0x2112   :  { %v4542_v25 = vpop.f32.mrb[10].mxu0 }
0x2113   :  { %v4548_v28 = vpack.c.bf16 %v4542_v25, %v4539_v59  ;;  %v7149_v51 = vpop.f32.mrb[11].mxu0 }
0x2115   :  { %7163 = vmatmul.mubr.msk.bf16.gmra.mrb[12].mxu1 %vm509_vm3, %v4548_v28 }
0x2116   :  { %7186 = vmatprep.mubr.msk.bf16.mxu1 %vm7699_vm0, %v7698_v3 }
0x2118   :  { %v4701_v54 = vpop.f32.mrb[12].mxu0 }
0x2119   :  { %v7172_v42 = vpop.f32.mrb[13].mxu0  ;;  %v9418_v58 = vadd.f32 %v6050_v32, %v4701_v54 }
0x211a   :  { %v4704_v53 = vpop.f32.mrb[14].mxu0 }
0x211b   :  { %v9420_v1 = vadd.f32 %v6050_v32, %v4704_v53  ;;  %v7173_v6 = vpop.f32.mrb[15].mxu0 }
0x211d   :  { %v4888_v55 = vpack.c.bf16 %v9420_v1, %v9418_v58  ;;  %7187 = vmatmul.mubr.msk.bf16.vlgmr.msra.gmra.mrb[16].mxu1 %vm143_vm2, %v8821_v13 }
0x211e   :  { %7190 = vmatprep.mubr.msk.bf16.mxu1 %vm7699_vm0, %v7698_v3 }
0x2120   :  { %v4709_v63 = vpop.f32.mrb[16].mxu0 }
0x2121   :  { %v7176_v43 = vpop.f32.mrb[17].mxu0  ;;  %v9428_v19 = vadd.f32 %v6050_v32, %v4709_v63 }
0x2122   :  { %v4712_v46 = vpop.f32.mrb[18].mxu0 }
0x2123   :  { %v9430_v10 = vadd.f32 %v6050_v32, %v4712_v46  ;;  %v7177_v9 = vpop.f32.mrb[19].mxu0 }
0x2125   :  { %v4889_v26 = vpack.c.bf16 %v9430_v10, %v9428_v19  ;;  %7191 = vmatmul.mubr.msk.bf16.gmra.mrb[20].mxu1 %vm143_vm2, %v8840_v60  ;;  %v6072_v60 = vld [vmem:[%s9668_s4 + $0x17] ss:$0 sm:$0xff] }
0x2126   :  { %7194 = vmatprep.mubr.msk.bf16.mxu1 %vm7699_vm0, %v7698_v3 }
0x2128   :  { %v4717_v13 = vpop.f32.mrb[20].mxu0 }
0x2129   :  { %v7180_v8 = vpop.f32.mrb[21].mxu0  ;;  %v9438_v47 = vadd.f32 %v6050_v32, %v4717_v13 }
0x212a   :  { %v4720_v22 = vpop.f32.mrb[22].mxu0 }
0x212b   :  { %v9440_v27 = vadd.f32 %v6050_v32, %v4720_v22  ;;  %v7181_v33 = vpop.f32.mrb[23].mxu0 }
0x212d   :  { %v4890_v17 = vpack.c.bf16 %v9440_v27, %v9438_v47  ;;  %7195 = vmatmul.mubr.msk.bf16.gmra.mrb[24].mxu1 %vm143_vm2, %v8853_v15 }
0x212e   :  { %7220 = vmatprep.mubr.msk.bf16.mxu1 %vm7699_vm0, %v7698_v3 }
0x2130   :  { %v4865_v24 = vpop.f32.mrb[24].mxu0 }
0x2131   :  { %v7204_v45 = vpop.f32.mrb[25].mxu0  ;;  %v4866_v62 = vadd.f32 %v6072_v60, %v4865_v24 }
0x2132   :  { %v4868_v37 = vpop.f32.mrb[26].mxu0 }
0x2133   :  { %v4869_v56 = vadd.f32 %v6072_v60, %v4868_v37  ;;  %v7205_v41 = vpop.f32.mrb[27].mxu0 }
0x2135   :  { %v5038_v31 = vpack.c.bf16 %v4869_v56, %v4866_v62 }
0x2137   :  { %7233 = vmatpush3.bf16.msra.mxu0 %v5038_v31 }
0x2138   :  { %v4873_v7 = vpop.f32.mrb[28].mxu0  ;;  %7234 = vmatprep.subr.bf16.mxu0 %v7698_v3 }
0x2139   :  { %v7208_v34 = vpop.f32.mrb[29].mxu0  ;;  %v4874_v18 = vadd.f32 %v6072_v60, %v4873_v7 }
0x213a   :  { %v4876_v15 = vpop.f32.mrb[30].mxu0 }
0x213b   :  { %v4877_v29 = vadd.f32 %v6072_v60, %v4876_v15  ;;  %v7209_v50 = vpop.f32.mrb[31].mxu0 }
0x213d   :  { %v5039_v0 = vpack.c.bf16 %v4877_v29, %v4874_v18 }
0x213f   :  { %7235 = vmatpush3.bf16.msra.mxu0 %v5039_v0 }
0x2140   :  { %v4881_v30 = vpop.f32.mrb[32].mxu0  ;;  %7236 = vmatprep.subr.bf16.mxu0 %v7698_v3 }
0x2141   :  { %v7212_v12 = vpop.f32.mrb[33].mxu0  ;;  %v4882_v59 = vadd.f32 %v6072_v60, %v4881_v30 }
0x2142   :  { %v4884_v39 = vpop.f32.mrb[34].mxu0 }
0x2143   :  { %v4885_v35 = vadd.f32 %v6072_v60, %v4884_v39  ;;  %v7213_v25 = vpop.f32.mrb[35].mxu0 }
0x2145   :  { %v5040_v28 = vpack.c.bf16 %v4885_v35, %v4882_v59 }
0x2147   :  { %7237 = vmatpush3.bf16.msra.mxu0 %v5040_v28 }
0x2148   :  { %7266 = vmatprep.subr.bf16.mxu0 %v7698_v3 }
0x21d8   :  { %v4613_v51 = vpop.f32.mrb[4].mxu1 }
0x21d9   :  { %v9455_v32 = vadd.f32 %v4613_v51, %v9260_v14  ;;  %v7156_v54 = vpop.f32.mrb[5].mxu1 }
0x21da   :  { %v4616_v42 = vpop.f32.mrb[6].mxu1 }
0x21db   :  { %v9458_v53 = vadd.f32 %v4616_v42, %v9263_v5  ;;  %v7157_v6 = vpop.f32.mrb[7].mxu1 }
0x21e0   :  { %v4621_v63 = vpop.f32.mrb[8].mxu1 }
0x21e1   :  { %v9461_v43 = vadd.f32 %v4621_v63, %v9265_v23  ;;  %v7160_v46 = vpop.f32.mrb[9].mxu1  ;;  %v6061_v23 = vld [vmem:[%s9668_s4 + $0x13] ss:$0 sm:$0xff] }
0x21e2   :  { %v4624_v9 = vpop.f32.mrb[10].mxu1 }
0x21e3   :  { %v9464_v13 = vadd.f32 %v4624_v9, %v9267_v44  ;;  %v7161_v8 = vpop.f32.mrb[11].mxu1 }
0x21e8   :  { %v4629_v22 = vpop.f32.mrb[12].mxu1 }
0x21e9   :  { %v9467_v14 = vadd.f32 %v4629_v22, %v9269_v61  ;;  %v7164_v33 = vpop.f32.mrb[13].mxu1 }
0x21ea   :  { %v4632_v60 = vpop.f32.mrb[14].mxu1 }
0x21eb   :  { %v9470_v5 = vadd.f32 %v4632_v60, %v9271_v16  ;;  %v7165_v24 = vpop.f32.mrb[15].mxu1 }
0x21f0   :  { %v4783_v45 = vpop.f32.mrb[16].mxu1 }
0x21f1   :  { %v7188_v37 = vpop.f32.mrb[17].mxu1  ;;  %v4784_v44 = vadd.f32 %v6061_v23, %v4783_v45 }
0x21f2   :  { %v4786_v62 = vpop.f32.mrb[18].mxu1 }
0x21f3   :  { %v4787_v56 = vadd.f32 %v6061_v23, %v4786_v62  ;;  %v7189_v41 = vpop.f32.mrb[19].mxu1 }
0x21f5   :  { %v4891_v31 = vpack.c.bf16 %v4787_v56, %v4784_v44 }
0x21f7   :  { %v4904_v61 = vsel %vm509_vm3, %v4891_v31, 0 }
0x21f8   :  { %v4791_v7 = vpop.f32.mrb[20].mxu1  ;;  %7215 = vmatpush3.bf16.xpose.msra.mxu1 %v4904_v61 }
0x21f9   :  { %v7192_v34 = vpop.f32.mrb[21].mxu1  ;;  %7216 = vmatprep.subr.bf16.mxu1 %v7698_v3  ;;  %v4792_v15 = vadd.f32 %v6061_v23, %v4791_v7 }
0x21fa   :  { %v4794_v16 = vpop.f32.mrb[22].mxu1 }
0x21fb   :  { %v4795_v18 = vadd.f32 %v6061_v23, %v4794_v16  ;;  %v7193_v29 = vpop.f32.mrb[23].mxu1 }
0x21fd   :  { %v4892_v50 = vpack.c.bf16 %v4795_v18, %v4792_v15 }
0x21ff   :  { %v4907_v0 = vsel %vm509_vm3, %v4892_v50, 0 }
0x2200   :  { %v4799_v30 = vpop.f32.mrb[24].mxu1  ;;  %7217 = vmatpush3.bf16.xpose.msra.mxu1 %v4907_v0 }
0x2201   :  { %v7196_v12 = vpop.f32.mrb[25].mxu1  ;;  %7218 = vmatprep.subr.bf16.mxu1 %v7698_v3  ;;  %v4800_v59 = vadd.f32 %v6061_v23, %v4799_v30 }
0x2202   :  { %v4802_v39 = vpop.f32.mrb[26].mxu1 }
0x2203   :  { %v4803_v35 = vadd.f32 %v6061_v23, %v4802_v39  ;;  %v7197_v25 = vpop.f32.mrb[27].mxu1 }
0x2205   :  { %v4893_v28 = vpack.c.bf16 %v4803_v35, %v4800_v59 }
0x2207   :  { %v4910_v51 = vsel %vm509_vm3, %v4893_v28, 0 }
0x2208   :  { %7219 = vmatpush3.bf16.xpose.msra.mxu1 %v4910_v51 }
0x2209   :  { %7250 = vmatprep.subr.bf16.mxu1 %v7698_v3 }
0x220f   :  { %7221 = vmatmul.mubr.msk.bf16.vlgmr.msra.gmra.mrb[28].mxu1 %vm509_vm3, %v4888_v55 }
0x2210   :  { %7224 = vmatprep.mubr.msk.bf16.mxu1 %vm7699_vm0, %v7698_v3 }
0x2217   :  { %7225 = vmatmul.mubr.msk.bf16.gmra.mrb[32].mxu1 %vm509_vm3, %v4889_v26 }
0x2218   :  { %7228 = vmatprep.mubr.msk.bf16.mxu1 %vm7699_vm0, %v7698_v3 }
0x221f   :  { %7229 = vmatmul.mubr.msk.bf16.gmra.mrb[36].mxu1 %vm509_vm3, %v4890_v17 }
0x2220   :  { %7254 = vmatprep.mubr.msk.bf16.mxu1 %vm7699_vm0, %v7698_v3 }
0x22e2   :  { %v4946_v58 = vpop.f32.mrb[28].mxu1 }
0x22e3   :  { %v4947_v1 = vadd.f32 %v9294_v21, %v4946_v58  ;;  %v7222_v55 = vpop.f32.mrb[29].mxu1 }
0x22e4   :  { %v4949_v54 = vpop.f32.mrb[30].mxu1 }
0x22e5   :  { %v4950_v19 = vadd.f32 %v9300_v4, %v4949_v54  ;;  %v7223_v10 = vpop.f32.mrb[31].mxu1  ;;  %v4969_v26 = vsel %vm67_vm1, %v4947_v1, -inf }
0x22e6   :  { %4970 = vmax.xlane.f32.xlu0 %v4969_v26 }
0x22e7   :  { %v4972_v42 = vsel %vm67_vm1, %v4950_v19, -inf }
0x22e8   :  { %4973 = vmax.xlane.f32.xlu1 %v4972_v42 }
0x22ea   :  { %v4954_v47 = vpop.f32.mrb[32].mxu1 }
0x22eb   :  { %v4955_v27 = vadd.f32 %v9308_v36, %v4954_v47  ;;  %v7226_v17 = vpop.f32.mrb[33].mxu1 }
0x22ec   :  { %v4957_v6 = vpop.f32.mrb[34].mxu1 }
0x22ed   :  { %v4958_v63 = vadd.f32 %v9314_v48, %v4957_v6  ;;  %v7227_v46 = vpop.f32.mrb[35].mxu1  ;;  %v4975_v21 = vsel %vm67_vm1, %v4955_v27, -inf }
0x22ee   :  { %4976 = vmax.xlane.f32.xlu0 %v4975_v21 }
0x22ef   :  { %v4978_v4 = vsel %vm67_vm1, %v4958_v63, -inf }
0x22f0   :  { %4979 = vmax.xlane.f32.xlu1 %v4978_v4 }
0x22f2   :  { %v4962_v9 = vpop.f32.mrb[36].mxu1 }
0x22f3   :  { %v7230_v8 = vpop.f32.mrb[37].mxu1  ;;  %v4963_v18 = vadd.f32 %v9322_v20, %v4962_v9 }
0x22f4   :  { %v4965_v22 = vpop.f32.mrb[38].mxu1  ;;  %v7382_v8 = vld [vmem:[%s9667_s3 + $0x1f0] sm:$0xff]  }
0x22f5   :  { %v7231_v33 = vpop.f32.mrb[39].mxu1  ;;  %v4966_v0 = vadd.f32 %v9328_v57, %v4965_v22  ;;  %v4981_v12 = vsel %vm67_vm1, %v4963_v18, -inf  ;;  %v5135_v22 = vsel %vm509_vm3, %v7382_v8, 0 }
0x22f6   :  { %7251 = vmatpush3.bf16.xpose.msra.mxu1 %v5135_v22  ;;  %v7383_v33 = vld [vmem:[%s9667_s3 + $0x1f8] sm:$0xff]   ;;  %s7700_s3 = smov [#allocation2]  }
0x22f7   :  { %v4984_v39 = vsel %vm67_vm1, %v4966_v0, -inf  ;;  %7252 = vmatprep.subr.bf16.mxu1 %v7698_v3  ;;  %s5673_s1 = sshll.u32 %s7700_s3, 4  ;;  %s5674_s1 = int_to_ptr.vmem [resolvable:$true] %s5673_s1 }
0x22f8   :  { %s7674_s19 = scalar_lea.vmem %s5674_s1, 32  ;;  %p7679_p1 = scmp.lt.s32.totalorder %s5674_s1, %s5674_s1 }
0x22f9   :  { %p7675_p0 = scmp.ne.s32.totalorder %s5674_s1, %s7674_s19  ;;  %p7680_p2 = scmp.lt.s32.totalorder %s7674_s19, %s7674_s19 }
0x22fb   :  { %p7681_p3 = por %p7680_p2, %p7679_p1 }
0x22fd   :  { %p7682_p4 = pnand %p7681_p3, %p7675_p0 }
0x2373   :  { %v4971_v60 = vpop.xlane.xlu0 %4970 }
0x2374   :  { %v4987_v24 = vsub.f32 %v4947_v1, %v4971_v60  ;;  %v5138_v60 = vsel %vm509_vm3, %v7383_v33, 0 }
0x2375   :  { %v4974_v23 = vpop.xlane.xlu1 %4973  ;;  %7253 = vmatpush3.bf16.xpose.msra.mxu1 %v5138_v60 }
0x2376   :  { %v4993_v45 = vmul.f32 1.442695, %v4987_v24  ;;  %v4988_v36 = vsub.f32 %v4950_v19, %v4974_v23  ;;  %7282 = vmatprep.subr.bf16.mxu1 %v7698_v3 }
0x2378   :  { %7606 = vpow2.f32 %v4993_v45  ;;  %v4995_v37 = vmul.f32 1.442695, %v4988_v36 }
0x237a   :  { %7608 = vpow2.f32 %v4995_v37 }
0x237b   :  { %v4977_v48 = vpop.xlane.xlu0 %4976 }
0x237c   :  { %v4989_v62 = vsub.f32 %v4955_v27, %v4977_v48 }
0x237d   :  { %v4980_v44 = vpop.xlane.xlu1 %4979 }
0x237e   :  { %v4997_v56 = vmul.f32 1.442695, %v4989_v62  ;;  %v4990_v41 = vsub.f32 %v4958_v63, %v4980_v44 }
0x2380   :  { %7610 = vpow2.f32 %v4997_v56  ;;  %v4999_v31 = vmul.f32 1.442695, %v4990_v41 }
0x2382   :  { %v7607_v61 = vpop.eup %7606  ;;  %7612 = vpow2.f32 %v4999_v31 }
0x2383   :  { %v5005_v7 = vsel %vm67_vm1, %v7607_v61, 0.0 }
0x2384   :  { %v7609_v34 = vpop.eup %7608  ;;  %5006 = vadd.xlane.f32.xlu0 %v5005_v7 }
0x2385   :  { %v5008_v16 = vsel %vm67_vm1, %v7609_v34, 0.0 }
0x2386   :  { %5009 = vadd.xlane.f32.xlu1 %v5008_v16 }
0x238a   :  { %v7611_v15 = vpop.eup %7610 }
0x238b   :  { %v5011_v29 = vsel %vm67_vm1, %v7611_v15, 0.0 }
0x238c   :  { %v7613_v50 = vpop.eup %7612  ;;  %5012 = vadd.xlane.f32.xlu0 %v5011_v29 }
0x238d   :  { %v5014_v30 = vsel %vm67_vm1, %v7613_v50, 0.0 }
0x238e   :  { %5015 = vadd.xlane.f32.xlu1 %v5014_v30 }
0x2390   :  { %4982 = vmax.xlane.f32.xlu0 %v4981_v12 }
0x2392   :  { %4985 = vmax.xlane.f32.xlu1 %v4984_v39 }
0x2411   :  { %v5007_v59 = vpop.xlane.xlu0 %5006 }
0x2412   :  { %7614 = vrcp.f32 %v5007_v59 }
0x2413   :  { %v5010_v35 = vpop.xlane.xlu1 %5009 }
0x2414   :  { %7616 = vrcp.f32 %v5010_v35 }
0x2419   :  { %v5013_v20 = vpop.xlane.xlu0 %5012 }
0x241a   :  { %7618 = vrcp.f32 %v5013_v20  ;;  %v6094_v20 = vld [vmem:[%s9670_s6 + $0xa] ss:$0 sm:$0xff] }
0x241b   :  { %v5016_v25 = vpop.xlane.xlu1 %5015 }
0x241c   :  { %v7615_v28 = vpop.eup %7614  ;;  %7620 = vrcp.f32 %v5016_v25 }
0x241d   :  { %v4983_v51 = vpop.xlane.xlu0 %4982  ;;  %v5029_v1 = vmul.f32 %v7615_v28, %v7607_v61 }
0x241e   :  { %v7617_v57 = vpop.eup %7616  ;;  %v4991_v58 = vsub.f32 %v4963_v18, %v4983_v51 }
0x241f   :  { %v5030_v55 = vmul.f32 %v7617_v57, %v7609_v34  ;;  %v4986_v54 = vpop.xlane.xlu1 %4985 }
0x2420   :  { %v5001_v19 = vmul.f32 1.442695, %v4991_v58  ;;  %v4992_v10 = vsub.f32 %v4966_v0, %v4986_v54 }
0x2421   :  { %v5035_v26 = vpack.c.bf16 %v5030_v55, %v5029_v1 }
0x2422   :  { %7622 = vpow2.f32 %v5001_v19  ;;  %v5003_v42 = vmul.f32 1.442695, %v4992_v10 }
0x2423   :  { %7239 = vmatmul.mubr.msk.bf16.vlgmr.msra.gmra.mrb[36].mxu0 %vm67_vm1, %v5035_v26 }
0x2424   :  { %v7619_v47 = vpop.eup %7618  ;;  %7624 = vpow2.f32 %v5003_v42  ;;  %7242 = vmatprep.mubr.msk.bf16.mxu0 %vm7699_vm0, %v7698_v3 }
0x2425   :  { %v5031_v17 = vmul.f32 %v7619_v47, %v7611_v15 }
0x2426   :  { %v7621_v27 = vpop.eup %7620 }
0x2427   :  { %v5032_v6 = vmul.f32 %v7621_v27, %v7613_v50 }
0x2429   :  { %v5036_v63 = vpack.c.bf16 %v5032_v6, %v5031_v17 }
0x242b   :  { %7243 = vmatmul.mubr.msk.bf16.gmra.mrb[40].mxu0 %vm67_vm1, %v5036_v63 }
0x242c   :  { %v7623_v46 = vpop.eup %7622  ;;  %7246 = vmatprep.mubr.msk.bf16.mxu0 %vm7699_vm0, %v7698_v3 }
0x242d   :  { %v5017_v21 = vsel %vm67_vm1, %v7623_v46, 0.0 }
0x242e   :  { %v7625_v4 = vpop.eup %7624  ;;  %5018 = vadd.xlane.f32.xlu0 %v5017_v21 }
0x242f   :  { %v5020_v9 = vsel %vm67_vm1, %v7625_v4, 0.0 }
0x2430   :  { %5021 = vadd.xlane.f32.xlu1 %v5020_v9 }
0x24bb   :  { %v5019_v24 = vpop.xlane.xlu0 %5018 }
0x24bc   :  { %7626 = vrcp.f32 %v5019_v24 }
0x24bd   :  { %v5022_v23 = vpop.xlane.xlu1 %5021 }
0x24be   :  { %7628 = vrcp.f32 %v5022_v23 }
0x24c6   :  { %v7627_v45 = vpop.eup %7626 }
0x24c7   :  { %v5033_v37 = vmul.f32 %v7627_v45, %v7623_v46 }
0x24c8   :  { %v7629_v36 = vpop.eup %7628 }
0x24c9   :  { %v5034_v48 = vmul.f32 %v7629_v36, %v7625_v4 }
0x24cb   :  { %v5037_v62 = vpack.c.bf16 %v5034_v48, %v5033_v37 }
0x24cd   :  { %7247 = vmatmul.mubr.msk.bf16.gmra.mrb[44].mxu0 %vm67_vm1, %v5037_v62 }
0x24ce   :  { %7270 = vmatprep.mubr.msk.bf16.mxu0 %vm7699_vm0, %v7698_v3 }
0x24f6   :  { %v5084_v44 = vpop.f32.mrb[36].mxu0 }
0x24f7   :  { %v7240_v56 = vpop.f32.mrb[37].mxu0 }
0x24f8   :  { %v5087_v41 = vpop.f32.mrb[38].mxu0 }
0x24f9   :  { %v5107_v31 = vpack.c.bf16 %v5087_v41, %v5084_v44  ;;  %v7241_v61 = vpop.f32.mrb[39].mxu0 }
0x24fb   :  { %7255 = vmatmul.mubr.msk.bf16.vlgmr.msra.gmra.mrb[40].mxu1 %vm509_vm3, %v5107_v31 }
0x24fc   :  { %7258 = vmatprep.mubr.msk.bf16.mxu1 %vm7699_vm0, %v7698_v3 }
0x24fe   :  { %v5092_v7 = vpop.f32.mrb[40].mxu0 }
0x24ff   :  { %v7244_v34 = vpop.f32.mrb[41].mxu0 }
0x2500   :  { %v5095_v16 = vpop.f32.mrb[42].mxu0 }
0x2501   :  { %v5108_v15 = vpack.c.bf16 %v5095_v16, %v5092_v7  ;;  %v7245_v18 = vpop.f32.mrb[43].mxu0 }
0x2503   :  { %7259 = vmatmul.mubr.msk.bf16.gmra.mrb[44].mxu1 %vm509_vm3, %v5108_v15 }
0x2504   :  { %7262 = vmatprep.mubr.msk.bf16.mxu1 %vm7699_vm0, %v7698_v3 }
0x25a0   :  { %v5100_v29 = vpop.f32.mrb[44].mxu0 }
0x25a1   :  { %v7248_v50 = vpop.f32.mrb[45].mxu0 }
0x25a2   :  { %v5103_v0 = vpop.f32.mrb[46].mxu0 }
0x25a3   :  { %v5109_v30 = vpack.c.bf16 %v5103_v0, %v5100_v29  ;;  %v7249_v12 = vpop.f32.mrb[47].mxu0 }
0x25a5   :  { %7263 = vmatmul.mubr.msk.bf16.gmra.mrb[48].mxu1 %vm509_vm3, %v5109_v30 }
0x25a6   :  { %7286 = vmatprep.mubr.msk.bf16.mxu1 %vm7699_vm0, %v7698_v3 }
0x25ce   :  { %v5174_v39 = vpop.f32.mrb[40].mxu1 }
0x25cf   :  { %v5197_v59 = vadd.f32 %v5174_v39, %v9455_v32  ;;  %v7256_v35 = vpop.f32.mrb[41].mxu1 }
0x25d0   :  { %v5177_v25 = vpop.f32.mrb[42].mxu1 }
0x25d1   :  { %v5203_v28 = vadd.f32 %v5197_v59, %v8732_v11  ;;  %v5198_v51 = vadd.f32 %v5177_v25, %v9458_v53  ;;  %v7257_v57 = vpop.f32.mrb[43].mxu1 }
0x25d3   :  { %v9551_v58 = vadd.f32 %v6094_v20, %v5203_v28  ;;  %v5204_v1 = vadd.f32 %v5198_v51, %v8735_v52 }
0x25d5   :  { %v5227_v55 = vsel %vm143_vm2, %v9551_v58, 0.0  ;;  %v5218_v54 = vadd.f32 %v6094_v20, %v5204_v1 }
0x25d6   :  { %5228 = vadd.xlane.f32.xlu0 %v5227_v55  ;;  %v5182_v32 = vpop.f32.mrb[44].mxu1  ;;  %v6097_v55 = vld [vmem:[%s9670_s6 + $0x8] ss:$0 sm:$0xff] }
0x25d7   :  { %v5199_v19 = vadd.f32 %v5182_v32, %v9461_v43  ;;  %v7260_v10 = vpop.f32.mrb[45].mxu1  ;;  %v5230_v26 = vsel %vm143_vm2, %v5218_v54, 0.0 }
0x25d8   :  { %5231 = vadd.xlane.f32.xlu1 %v5230_v26  ;;  %v5185_v11 = vpop.f32.mrb[46].mxu1  ;;  %v6098_v26 = vld [vmem:[%s9670_s6 + $0x9] ss:$0 sm:$0xff] }
0x25d9   :  { %v5205_v53 = vadd.f32 %v5199_v19, %v8742_v2  ;;  %v5200_v42 = vadd.f32 %v5185_v11, %v9464_v13  ;;  %v7261_v47 = vpop.f32.mrb[47].mxu1 }
0x25db   :  { %v5206_v52 = vadd.f32 %v5200_v42, %v8745_v49  ;;  %v5219_v27 = vadd.f32 %v6094_v20, %v5205_v53 }
0x25dd   :  { %v9561_v17 = vadd.f32 %v6094_v20, %v5206_v52  ;;  %v5233_v6 = vsel %vm143_vm2, %v5219_v27, 0.0 }
0x25de   :  { %5234 = vadd.xlane.f32.xlu0 %v5233_v6 }
0x25df   :  { %v5236_v43 = vsel %vm143_vm2, %v9561_v17, 0.0 }
0x25e0   :  { %5237 = vadd.xlane.f32.xlu1 %v5236_v43 }
0x2663   :  { %v5229_v63 = vpop.xlane.xlu0 %5228 }
0x2664   :  { %v5245_v46 = vmul.f32 0.03125, %v5229_v63 }
0x2665   :  { %v5232_v21 = vpop.xlane.xlu1 %5231 }
0x2666   :  { %v5251_v2 = vsub.f32 %v9551_v58, %v5245_v46  ;;  %v5246_v4 = vmul.f32 0.03125, %v5232_v21 }
0x2668   :  { %v5252_v13 = vsub.f32 %v5218_v54, %v5246_v4  ;;  %v5257_v9 = vmul.f32 %v5251_v2, %v5251_v2 }
0x266a   :  { %v5263_v49 = vsel %vm143_vm2, %v5257_v9, 0.0  ;;  %v5258_v8 = vmul.f32 %v5252_v13, %v5252_v13 }
0x266b   :  { %5264 = vadd.xlane.f32.xlu0 %v5263_v49  ;;  %v5235_v22 = vpop.xlane.xlu0 %5234 }
0x266c   :  { %v5247_v33 = vmul.f32 0.03125, %v5235_v22  ;;  %v5266_v60 = vsel %vm143_vm2, %v5258_v8, 0.0 }
0x266d   :  { %5267 = vadd.xlane.f32.xlu1 %v5266_v60  ;;  %v5238_v24 = vpop.xlane.xlu1 %5237 }
0x266e   :  { %v5253_v23 = vsub.f32 %v5219_v27, %v5247_v33  ;;  %v5248_v45 = vmul.f32 0.03125, %v5238_v24 }
0x2670   :  { %v9570_v36 = vsub.f32 %v9561_v17, %v5248_v45  ;;  %v5259_v37 = vmul.f32 %v5253_v23, %v5253_v23 }
0x2672   :  { %v5269_v48 = vsel %vm143_vm2, %v5259_v37, 0.0  ;;  %v5260_v62 = vmul.f32 %v9570_v36, %v9570_v36  ;;  %v7387_v37 = vld [vmem:[%s9669_s5 + $0x38] sm:$0xff]  }
0x2673   :  { %5270 = vadd.xlane.f32.xlu0 %v5269_v48 }
0x2674   :  { %v5272_v44 = vsel %vm143_vm2, %v5260_v62, 0.0 }
0x2675   :  { %5273 = vadd.xlane.f32.xlu1 %v5272_v44 }
0x2678   :  { %v5190_v56 = vpop.f32.mrb[48].mxu1 }
0x2679   :  { %v5201_v41 = vadd.f32 %v5190_v56, %v9467_v14  ;;  %v7264_v31 = vpop.f32.mrb[49].mxu1  ;;  %v7384_v14 = vld [vmem:[%s9669_s5 + $0x20] sm:$0xff]  }
0x267a   :  { %v5193_v61 = vpop.f32.mrb[50].mxu1  ;;  %7267 = vmatpush3.bf16.msra.mxu0 %v7384_v14  ;;  %v9618_v14 = vld [vmem:[%s9671_s7 + $0x1] ss:$0 sm:$0xff] }
0x267b   :  { %v5207_v7 = vadd.f32 %v5201_v41, %v8752_v38  ;;  %v5202_v34 = vadd.f32 %v5193_v61, %v9470_v5  ;;  %v7265_v16 = vpop.f32.mrb[51].mxu1  ;;  %7268 = vmatprep.subr.bf16.mxu0 %v7698_v3  ;;  %v7385_v38 = vld [vmem:[%s9669_s5 + $0x28] sm:$0xff]  }
0x267d   :  { %v5208_v15 = vadd.f32 %v5202_v34, %v8755_v40  ;;  %v5221_v18 = vadd.f32 %v6094_v20, %v5207_v7 }
0x267e   :  { %7269 = vmatpush3.bf16.msra.mxu0 %v7385_v38 }
0x267f   :  { %v5239_v29 = vsel %vm143_vm2, %v5221_v18, 0.0  ;;  %v5222_v50 = vadd.f32 %v6094_v20, %v5208_v15  ;;  %7298 = vmatprep.subr.bf16.mxu0 %v7698_v3 }
0x2680   :  { %5240 = vadd.xlane.f32.xlu0 %v5239_v29 }
0x2681   :  { %v5242_v0 = vsel %vm143_vm2, %v5222_v50, 0.0 }
0x2682   :  { %5243 = vadd.xlane.f32.xlu1 %v5242_v0 }
0x26f8   :  { %v5265_v40 = vpop.xlane.xlu0 %5264 }
0x26f9   :  { %v5281_v5 = vmul.f32 0.03125, %v5265_v40 }
0x26fa   :  { %v5268_v30 = vpop.xlane.xlu1 %5267 }
0x26fb   :  { %v5287_v12 = vadd.f32 1e-06, %v5281_v5  ;;  %v5282_v39 = vmul.f32 0.03125, %v5268_v30 }
0x26fd   :  { %7630 = vrsqrt.f32 %v5287_v12  ;;  %v5288_v59 = vadd.f32 1e-06, %v5282_v39 }
0x26ff   :  { %7632 = vrsqrt.f32 %v5288_v59 }
0x2700   :  { %v5271_v35 = vpop.xlane.xlu0 %5270 }
0x2701   :  { %v5283_v20 = vmul.f32 0.03125, %v5271_v35 }
0x2702   :  { %v5274_v25 = vpop.xlane.xlu1 %5273 }
0x2703   :  { %v5289_v28 = vadd.f32 1e-06, %v5283_v20  ;;  %v5284_v51 = vmul.f32 0.03125, %v5274_v25 }
0x2705   :  { %7634 = vrsqrt.f32 %v5289_v28  ;;  %v5290_v57 = vadd.f32 1e-06, %v5284_v51 }
0x2707   :  { %v7631_v1 = vpop.eup %7630  ;;  %7636 = vrsqrt.f32 %v5290_v57 }
0x2708   :  { %v5299_v54 = vmul.f32 %v7631_v1, %v5251_v2 }
0x2709   :  { %v7633_v32 = vpop.eup %7632 }
0x270a   :  { %v5311_v19 = vmul.f32 %v6097_v55, %v5299_v54  ;;  %v5300_v10 = vmul.f32 %v7633_v32, %v5252_v13 }
0x270c   :  { %v5312_v11 = vmul.f32 %v6097_v55, %v5300_v10  ;;  %v5323_v42 = vadd.f32 %v6098_v26, %v5311_v19 }
0x270d   :  { %v5241_v53 = vpop.xlane.xlu0 %5240 }
0x270e   :  { %v5324_v47 = vadd.f32 %v6098_v26, %v5312_v11  ;;  %v5249_v52 = vmul.f32 0.03125, %v5241_v53 }
0x270f   :  { %v7635_v27 = vpop.eup %7634  ;;  %v5244_v6 = vpop.xlane.xlu1 %5243 }
0x2710   :  { %v5329_v43 = vpack.c.bf16 %v5324_v47, %v5323_v42  ;;  %v5301_v63 = vmul.f32 %v7635_v27, %v5253_v23  ;;  %v5255_v46 = vsub.f32 %v5221_v18, %v5249_v52  ;;  %v5250_v21 = vmul.f32 0.03125, %v5244_v6 }
0x2711   :  { %v7637_v4 = vpop.eup %7636 }
0x2712   :  { %v5313_v2 = vmul.f32 %v6097_v55, %v5301_v63  ;;  %v5302_v9 = vmul.f32 %v7637_v4, %v9570_v36  ;;  %v5256_v13 = vsub.f32 %v5222_v50, %v5250_v21  ;;  %7271 = vmatmul.mubr.msk.bf16.vlgmr.msra.gmra.mrb[48].mxu0 %vm143_vm2, %v5329_v43  ;;  %v5261_v49 = vmul.f32 %v5255_v46, %v5255_v46  ;;  %v7386_v36 = vld [vmem:[%s9669_s5 + $0x30] sm:$0xff]  }
0x2713   :  { %7274 = vmatprep.mubr.msk.bf16.mxu0 %vm7699_vm0, %v7698_v3  ;;  %7283 = vmatpush3.bf16.xpose.msra.mxu1 %v7386_v36 }
0x2714   :  { %v5314_v8 = vmul.f32 %v6097_v55, %v5302_v9  ;;  %v5275_v22 = vsel %vm143_vm2, %v5261_v49, 0.0  ;;  %v5262_v33 = vmul.f32 %v5256_v13, %v5256_v13  ;;  %v5325_v60 = vadd.f32 %v6098_v26, %v5313_v2  ;;  %7284 = vmatprep.subr.bf16.mxu1 %v7698_v3 }
0x2715   :  { %5276 = vadd.xlane.f32.xlu0 %v5275_v22 }
0x2716   :  { %v5326_v24 = vadd.f32 %v6098_v26, %v5314_v8  ;;  %v5278_v23 = vsel %vm143_vm2, %v5262_v33, 0.0 }
0x2717   :  { %5279 = vadd.xlane.f32.xlu1 %v5278_v23 }
0x2718   :  { %v5330_v45 = vpack.c.bf16 %v5326_v24, %v5325_v60 }
0x271a   :  { %7275 = vmatmul.mubr.msk.bf16.gmra.mrb[52].mxu0 %vm143_vm2, %v5330_v45 }
0x271b   :  { %7278 = vmatprep.mubr.msk.bf16.mxu0 %vm7699_vm0, %v7698_v3  ;;  %7285 = vmatpush3.bf16.xpose.msra.mxu1 %v7387_v37 }
0x27a2   :  { %v5277_v48 = vpop.xlane.xlu0 %5276 }
0x27a3   :  { %v5285_v62 = vmul.f32 0.03125, %v5277_v48 }
0x27a4   :  { %v5280_v44 = vpop.xlane.xlu1 %5279 }
0x27a5   :  { %v5291_v56 = vadd.f32 1e-06, %v5285_v62  ;;  %v5286_v41 = vmul.f32 0.03125, %v5280_v44 }
0x27a7   :  { %7638 = vrsqrt.f32 %v5291_v56  ;;  %v5292_v31 = vadd.f32 1e-06, %v5286_v41 }
0x27a9   :  { %7640 = vrsqrt.f32 %v5292_v31 }
0x27b1   :  { %v7639_v61 = vpop.eup %7638 }
0x27b2   :  { %v5303_v7 = vmul.f32 %v7639_v61, %v5255_v46 }
0x27b3   :  { %v7641_v34 = vpop.eup %7640 }
0x27b4   :  { %v5315_v16 = vmul.f32 %v6097_v55, %v5303_v7  ;;  %v5304_v15 = vmul.f32 %v7641_v34, %v5256_v13 }
0x27b6   :  { %v5316_v18 = vmul.f32 %v6097_v55, %v5304_v15  ;;  %v5327_v29 = vadd.f32 %v6098_v26, %v5315_v16 }
0x27b8   :  { %v5328_v50 = vadd.f32 %v6098_v26, %v5316_v18 }
0x27ba   :  { %v5331_v0 = vpack.c.bf16 %v5328_v50, %v5327_v29 }
0x27bc   :  { %7279 = vmatmul.mubr.msk.bf16.gmra.mrb[56].mxu0 %vm143_vm2, %v5331_v0 }
0x27bd   :  { %7302 = vmatprep.mubr.msk.bf16.mxu0 %vm7699_vm0, %v7698_v3 }
0x27e5   :  { %v5400_v38 = vpop.f32.mrb[48].mxu0 }
0x27e6   :  { %v5401_v40 = vadd.f32 %v9618_v14, %v5400_v38  ;;  %v7272_v5 = vpop.f32.mrb[49].mxu0 }
0x27e7   :  { %v5403_v30 = vpop.f32.mrb[50].mxu0 }
0x27e8   :  { %v5429_v12 = vmul.f32 0.044715, %v5401_v40  ;;  %v5404_v39 = vadd.f32 %v9618_v14, %v5403_v30  ;;  %v7273_v59 = vpop.f32.mrb[51].mxu0  ;;  %v5423_v49 = vmul.f32 0.5, %v5401_v40 }
0x27ea   :  { %v5435_v35 = vmul.f32 %v5429_v12, %v5401_v40  ;;  %v5430_v20 = vmul.f32 0.044715, %v5404_v39  ;;  %v5424_v8 = vmul.f32 0.5, %v5404_v39 }
0x27ec   :  { %v5441_v25 = vmul.f32 %v5435_v35, %v5401_v40  ;;  %v5436_v28 = vmul.f32 %v5430_v20, %v5404_v39 }
0x27ed   :  { %v5408_v51 = vpop.f32.mrb[52].mxu0 }
0x27ee   :  { %v5447_v57 = vadd.f32 %v5441_v25, %v5401_v40  ;;  %v5442_v1 = vmul.f32 %v5436_v28, %v5404_v39  ;;  %v5409_v55 = vadd.f32 %v9618_v14, %v5408_v51  ;;  %v7276_v54 = vpop.f32.mrb[53].mxu0 }
0x27ef   :  { %v5411_v32 = vpop.f32.mrb[54].mxu0 }
0x27f0   :  { %v5453_v19 = vmul.f32 0.7978846, %v5447_v57  ;;  %v5448_v10 = vadd.f32 %v5442_v1, %v5404_v39  ;;  %v5431_v26 = vmul.f32 0.044715, %v5409_v55  ;;  %v7277_v11 = vpop.f32.mrb[55].mxu0  ;;  %v5412_v53 = vadd.f32 %v9618_v14, %v5411_v32 }
0x27f1   :  { %v5425_v37 = vmul.f32 0.5, %v5409_v55 }
0x27f2   :  { %7642 = vtanh.f32 %v5453_v19  ;;  %v5454_v42 = vmul.f32 0.7978846, %v5448_v10  ;;  %v5437_v47 = vmul.f32 %v5431_v26, %v5409_v55  ;;  %v5432_v52 = vmul.f32 0.044715, %v5412_v53  ;;  %v6115_v10 = vld [vmem:[%s9670_s6 + $0xb] ss:$0 sm:$0xff] }
0x27f3   :  { %v5426_v48 = vmul.f32 0.5, %v5412_v53 }
0x27f4   :  { %7644 = vtanh.f32 %v5454_v42  ;;  %v5443_v27 = vmul.f32 %v5437_v47, %v5409_v55  ;;  %v5438_v6 = vmul.f32 %v5432_v52, %v5412_v53 }
0x27f6   :  { %v5449_v43 = vadd.f32 %v5443_v27, %v5409_v55  ;;  %v5444_v63 = vmul.f32 %v5438_v6, %v5412_v53 }
0x27f8   :  { %v5455_v46 = vmul.f32 0.7978846, %v5449_v43  ;;  %v5450_v21 = vadd.f32 %v5444_v63, %v5412_v53 }
0x27fa   :  { %7646 = vtanh.f32 %v5455_v46  ;;  %v5456_v4 = vmul.f32 0.7978846, %v5450_v21 }
0x27fc   :  { %v7643_v2 = vpop.eup %7642  ;;  %7648 = vtanh.f32 %v5456_v4 }
0x27fd   :  { %v5465_v9 = vadd.f32 1.0, %v7643_v2 }
0x27fe   :  { %v7645_v13 = vpop.eup %7644 }
0x27ff   :  { %v5466_v22 = vadd.f32 1.0, %v7645_v13  ;;  %v5471_v33 = vmul.f32 %v5465_v9, %v5423_v49 }
0x2801   :  { %v5472_v60 = vmul.f32 %v5466_v22, %v5424_v8 }
0x2803   :  { %v5477_v24 = vpack.c.bf16 %v5472_v60, %v5471_v33 }
0x2804   :  { %v7647_v23 = vpop.eup %7646 }
0x2805   :  { %7287 = vmatmul.mubr.bf16.vlgmr.msra.gmra.mrb[52].mxu1 %v5477_v24  ;;  %v5467_v45 = vadd.f32 1.0, %v7647_v23 }
0x2806   :  { %7290 = vmatprep.mubr.msk.bf16.mxu1 %vm7699_vm0, %v7698_v3  ;;  %v7649_v36 = vpop.eup %7648 }
0x2807   :  { %v5468_v62 = vadd.f32 1.0, %v7649_v36  ;;  %v5473_v44 = vmul.f32 %v5467_v45, %v5425_v37  ;;  %v6120_v36 = vld [vmem:[%s9670_s6 + $0xc] ss:$0 sm:$0xff] }
0x2809   :  { %v5474_v56 = vmul.f32 %v5468_v62, %v5426_v48  ;;  %v6121_v48 = vld [vmem:[%s9670_s6 + $0xd] ss:$0 sm:$0xff] }
0x280b   :  { %v5478_v41 = vpack.c.bf16 %v5474_v56, %v5473_v44  ;;  %v6127_v56 = vld [vmem:[%s9671_s7 + $0x2] ss:$0 sm:$0xff] }
0x280d   :  { %7291 = vmatmul.mubr.bf16.gmra.mrb[56].mxu1 %v5478_v41 }
0x280e   :  { %7294 = vmatprep.mubr.msk.bf16.mxu1 %vm7699_vm0, %v7698_v3 }
0x288f   :  { %v5416_v31 = vpop.f32.mrb[56].mxu0 }
0x2890   :  { %v5417_v61 = vadd.f32 %v9618_v14, %v5416_v31  ;;  %v7280_v7 = vpop.f32.mrb[57].mxu0 }
0x2891   :  { %v5419_v34 = vpop.f32.mrb[58].mxu0 }
0x2892   :  { %v5433_v16 = vmul.f32 0.044715, %v5417_v61  ;;  %v5420_v15 = vadd.f32 %v9618_v14, %v5419_v34  ;;  %v7281_v18 = vpop.f32.mrb[59].mxu0  ;;  %v5427_v25 = vmul.f32 0.5, %v5417_v61 }
0x2894   :  { %v5439_v29 = vmul.f32 %v5433_v16, %v5417_v61  ;;  %v5434_v50 = vmul.f32 0.044715, %v5420_v15  ;;  %v5428_v28 = vmul.f32 0.5, %v5420_v15 }
0x2896   :  { %v5445_v0 = vmul.f32 %v5439_v29, %v5417_v61  ;;  %v5440_v38 = vmul.f32 %v5434_v50, %v5420_v15 }
0x2898   :  { %v5451_v40 = vadd.f32 %v5445_v0, %v5417_v61  ;;  %v5446_v5 = vmul.f32 %v5440_v38, %v5420_v15 }
0x289a   :  { %v5457_v30 = vmul.f32 0.7978846, %v5451_v40  ;;  %v5452_v12 = vadd.f32 %v5446_v5, %v5420_v15 }
0x289c   :  { %7650 = vtanh.f32 %v5457_v30  ;;  %v5458_v39 = vmul.f32 0.7978846, %v5452_v12 }
0x289e   :  { %7652 = vtanh.f32 %v5458_v39 }
0x28a6   :  { %v7651_v59 = vpop.eup %7650 }
0x28a7   :  { %v5469_v35 = vadd.f32 1.0, %v7651_v59 }
0x28a8   :  { %v7653_v20 = vpop.eup %7652 }
0x28a9   :  { %v5470_v51 = vadd.f32 1.0, %v7653_v20  ;;  %v5475_v57 = vmul.f32 %v5469_v35, %v5427_v25 }
0x28ab   :  { %v5476_v14 = vmul.f32 %v5470_v51, %v5428_v28 }
0x28ad   :  { %v5479_v1 = vpack.c.bf16 %v5476_v14, %v5475_v57 }
0x28af   :  { %7295 = vmatmul.mubr.bf16.gmra.mrb[60].mxu1 %v5479_v1 }
0x28d8   :  { %v5539_v55 = vpop.f32.mrb[52].mxu1 }
0x28d9   :  { %v7288_v54 = vpop.f32.mrb[53].mxu1  ;;  %v5540_v42 = vadd.f32 %v6115_v10, %v5539_v55 }
0x28da   :  { %v5542_v32 = vpop.f32.mrb[54].mxu1 }
0x28db   :  { %v7289_v19 = vpop.f32.mrb[55].mxu1  ;;  %v5558_v6 = vadd.f32 %v5540_v42, %v9551_v58  ;;  %v7389_v58 = vld [vmem:[%s9669_s5 + $0x48] sm:$0xff]  }
0x28e0   :  { %v5546_v26 = vpop.f32.mrb[56].mxu1 }
0x28e1   :  { %v7292_v11 = vpop.f32.mrb[57].mxu1 }
0x28e2   :  { %v5548_v53 = vpop.f32.mrb[58].mxu1 }
0x28e3   :  { %v5549_v47 = vadd.f32 %v6115_v10, %v5548_v53  ;;  %v7293_v52 = vpop.f32.mrb[59].mxu1 }
0x28e5   :  { %v5559_v27 = vadd.f32 %v5549_v47, %v9561_v17  ;;  %v7388_v17 = vld [vmem:[%s9669_s5 + $0x40] sm:$0xff]  }
0x28e6   :  { %7299 = vmatpush3.bf16.msra.mxu0 %v7388_v17 }
0x28e7   :  { %v5561_v43 = vrot.slane %v5559_v27, 7  ;;  %7300 = vmatprep.subr.bf16.mxu0 %v7698_v3 }
0x28e9   :  { %v5564_v63 = vsel %vm5563_vm4, %v5558_v6, %v5561_v43 }
0x28ea   :  { %v5570_v46 = vsel %vm5569_vm5, %v5564_v63, 0.0  ;;  %7301 = vmatpush3.bf16.msra.mxu0 %v7389_v58 }
0x28eb   :  { %5571 = vadd.xlane.f32.xlu0 %v5570_v46 }
0x2978   :  { %v5572_v21 = vpop.xlane.xlu0 %5571 }
0x2979   :  { %v5573_v4 = vmul.f32 0.03125, %v5572_v21 }
0x297b   :  { %v5574_v2 = vsub.f32 %v5564_v63, %v5573_v4 }
0x297d   :  { %v5575_v9 = vmul.f32 %v5574_v2, %v5574_v2 }
0x297f   :  { %v5576_v13 = vsel %vm5569_vm5, %v5575_v9, 0.0 }
0x2980   :  { %5577 = vadd.xlane.f32.xlu1 %v5576_v13 }
0x2982   :  { %v5553_v49 = vpop.f32.mrb[60].mxu1 }
0x2983   :  { %v7296_v8 = vpop.f32.mrb[61].mxu1 }
0x2984   :  { %v5555_v22 = vpop.f32.mrb[62].mxu1 }
0x2985   :  { %v7297_v33 = vpop.f32.mrb[63].mxu1 }
0x2a0d   :  { %v5578_v60 = vpop.xlane.xlu1 %5577 }
0x2a0e   :  { %v5579_v24 = vmul.f32 0.03125, %v5578_v60 }
0x2a10   :  { %v5580_v23 = vadd.f32 1e-06, %v5579_v24 }
0x2a12   :  { %7654 = vrsqrt.f32 %v5580_v23 }
0x2a1c   :  { %v7655_v45 = vpop.eup %7654 }
0x2a1d   :  { %v5582_v37 = vmul.f32 %v7655_v45, %v5574_v2 }
0x2a1f   :  { %v5589_v3 = vmul.f32 %v6120_v36, %v5582_v37 }
0x2a21   :  { %v5596_v62 = vadd.f32 %v6121_v48, %v5589_v3 }
0x2a23   :  { %v5597_v44 = vpack.c.bf16 %v5596_v62, %v5596_v62 }
0x2a25   :  { %7303 = vmatmul.mubr.msk.bf16.vlgmr.msra.gmra.mrb[60].mxu0 %vm143_vm2, %v5597_v44 }
0x2af8   :  { %v5660_v41 = vpop.f32.mrb[60].mxu0 }
0x2af9   :  { %v5661_v31 = vadd.f32 %v6127_v56, %v5660_v41  ;;  %v7304_v61 = vpop.f32.mrb[61].mxu0 }
0x2afa   :  { %v5663_v7 = vpop.f32.mrb[62].mxu0 }
0x2afb   :  { %5666 = vst [vmem:[#allocation2] sm:$0x3] %v5661_v31  ;;  %v7305_v34 = vpop.f32.mrb[63].mxu0 }
0x2afc   :  { %7685 = shalt.err (!%p7682_p4)
}
0x2afd   :  { %s7686_s7 = scalar_lea.hbm %s9672_s8, 32 }
0x2afe   :  { %p7687_p5 = scmp.ne.s32.totalorder %s9672_s8, %s7686_s7  ;;  %p7690_p6 = scmp.lt.u32.totalorder %s7686_s7, %s9672_s8 }
0x2b00   :  { %p7692_p7 = pnand %p7690_p6, %p7687_p5 }
0x2b02   :  { %7695 = shalt.err (!%p7692_p7)
}
0x2b03   :  { %5676 = dma.vmem_to_hbm [thread:$0]  %s5674_s1, 32, %s9672_s8, [#allocation3]  }
0x2b04   :  { %7696 = dma.done.wait [#allocation3], 32  }
0x2b05   :  { %7697 = vsyncadd [#allocation3], 4294967264 }
0x2b06   :  { %5680 = vsyncpa [#allocation3], 1 }

</bundles_post_ra>
